<compile_context>
chip_gen: v7x
topology: tpu7x:2x2x1
jax: 0.10.0
libtpu: 0.0.40
codegen_flags: <defaults>
</compile_context>

<pallas_src>
import jax
import jax.numpy as jnp
from jax.experimental import pallas as pl
from jax.experimental.pallas import tpu as pltpu

SCALE = 10.0
DROPOUT_P = 0.1


def attn_kernel(x_ref, k_ref, v_ref, drop_ref, o_ref):
    # x:    (G, M, D)   broadcast query slices
    # k, v: (G, N, D)   per-batch key / value
    # drop: (G, M, N)   inverted-scale dropout multiplier (keep / (1 - p))
    x = x_ref[...]
    k = k_ref[...]
    v = v_ref[...]

    # scores = (x @ k^T) * scale  -- contraction over d, transpose folded in.
    s = jnp.einsum("gmd,gnd->gmn", x, k,
                   preferred_element_type=jnp.float32) * SCALE

    # numerically-stable softmax along the last axis
    s = s - jnp.max(s, axis=-1, keepdims=True)
    e = jnp.exp(s)
    p = e / jnp.sum(e, axis=-1, keepdims=True)

    # dropout (F.dropout default training=True), precomputed multiplier.
    p = p * drop_ref[...]

    # out = p @ v
    o_ref[...] = jnp.einsum("gmn,gnd->gmd", p, v,
                            preferred_element_type=jnp.float32
                            ).astype(o_ref.dtype)


def model_forward(x1, key_p, value_p, dropout_rng):
    B1, B2, N, D = key_p.shape            # (8, 8, 16, 16)
    _, Bx, M, Dx = x1.shape               # (1, 8, 4, 16)
    assert Bx == B2 and Dx == D and N == D
    G = B1 * B2

    # torch.matmul broadcasting: x1's size-1 leading dim broadcasts over B1.
    x_g = jnp.broadcast_to(x1, (B1, B2, M, D)).reshape(G, M, D)
    k_flat = key_p.reshape(G, N, D)
    v_flat = value_p.reshape(G, N, D)

    # TODO(synk): torch's dropout RNG stream cannot be reproduced bit-exactly;
    #             the keep-mask is drawn once with jax.random in the wrapper.
    keep = jax.random.bernoulli(dropout_rng, p=1.0 - DROPOUT_P, shape=(G, M, N))
    drop_mult = keep.astype(jnp.float32) * (1.0 / (1.0 - DROPOUT_P))

    # Single program: whole arrays are mapped into VMEM (no grid, no per-step
    # pipeline overhead, one DMA in / one DMA out).
    out = pl.pallas_call(
        attn_kernel,
        out_shape=jax.ShapeDtypeStruct((G, M, D), jnp.float32),
        in_specs=[
            pl.BlockSpec(memory_space=pltpu.MemorySpace.VMEM),
            pl.BlockSpec(memory_space=pltpu.MemorySpace.VMEM),
            pl.BlockSpec(memory_space=pltpu.MemorySpace.VMEM),
            pl.BlockSpec(memory_space=pltpu.MemorySpace.VMEM),
        ],
        out_specs=pl.BlockSpec(memory_space=pltpu.MemorySpace.VMEM),
    )(x_g, k_flat, v_flat, drop_mult)

    return out.reshape(B1, B2, M, D)


if __name__ == "__main__":
    rng = jax.random.PRNGKey(0)
    k_x, k_key, k_val, k_drop = jax.random.split(rng, 4)

    B1, B2, D = 8, 8, 16
    M = 4  # "s" in the original module

    x1 = jax.random.normal(k_x, (1, B2, M, D), dtype=jnp.float32)
    key_p = jax.random.normal(k_key, (B1, B2, D, D), dtype=jnp.float32)
    value_p = jax.random.normal(k_val, (B1, B2, D, D), dtype=jnp.float32)

    out = model_forward(x1, key_p, value_p, k_drop)
    jax.block_until_ready(out)

    assert out.shape == (B1, B2, M, D)
    assert bool(jnp.all(jnp.isfinite(out)))
    print("KERNEL_OK")
</pallas_src>

<mosaic_0001>
module attributes {stable_mosaic.version = 11 : i64} {
  func.func @attn_kernel(%arg0: memref<64x4x16xf32, #tpu.memory_space<vmem>>, %arg1: memref<64x16x16xf32, #tpu.memory_space<vmem>>, %arg2: memref<64x16x16xf32, #tpu.memory_space<vmem>>, %arg3: memref<64x4x16xf32, #tpu.memory_space<vmem>>, %arg4: memref<64x4x16xf32, #tpu.memory_space<vmem>>) attributes {dimension_semantics = [], scalar_prefetch = 0 : i64, scratch_operands = 0 : i64, tpu.core_type = #tpu.core_type<tc>} {
    %c0 = arith.constant 0 : index
    %c0_0 = arith.constant 0 : index
    %c0_1 = arith.constant 0 : index
    %0 = vector.load %arg0[%c0, %c0_0, %c0_1] : memref<64x4x16xf32, #tpu.memory_space<vmem>>, vector<64x4x16xf32>
    %c0_2 = arith.constant 0 : index
    %c0_3 = arith.constant 0 : index
    %c0_4 = arith.constant 0 : index
    %1 = vector.load %arg1[%c0_2, %c0_3, %c0_4] : memref<64x16x16xf32, #tpu.memory_space<vmem>>, vector<64x16x16xf32>
    %c0_5 = arith.constant 0 : index
    %c0_6 = arith.constant 0 : index
    %c0_7 = arith.constant 0 : index
    %2 = vector.load %arg2[%c0_5, %c0_6, %c0_7] : memref<64x16x16xf32, #tpu.memory_space<vmem>>, vector<64x16x16xf32>
    "tpu.trace_start"() <{level = 10 : i32, message = "gmd,gnd->gmn"}> : () -> ()
    %cst = arith.constant dense<0.000000e+00> : vector<64x4x16xf32>
    %3 = tpu.matmul %0, %1, %cst {dimension_numbers = #tpu.dot_dimension_numbers<[2], [2], [1], [1], [0, 0, 0, 1, 1, 1], [0], [0]>} : vector<64x4x16xf32>, vector<64x16x16xf32>, vector<64x4x16xf32> -> vector<64x4x16xf32>
    "tpu.trace_stop"() : () -> ()
    %cst_8 = arith.constant 1.000000e+01 : f32
    %4 = vector.broadcast %cst_8 : f32 to vector<64x4x16xf32>
    %5 = arith.mulf %3, %4 : vector<64x4x16xf32>
    %cst_9 = arith.constant dense<0xFF800000> : vector<64x4xf32>
    %6 = vector.multi_reduction <maximumf>, %5, %cst_9 [2] : vector<64x4x16xf32> to vector<64x4xf32>
    %7 = vector.shape_cast %6 : vector<64x4xf32> to vector<64x4x1xf32>
    %8 = vector.broadcast %7 : vector<64x4x1xf32> to vector<64x4x16xf32>
    %9 = arith.subf %5, %8 : vector<64x4x16xf32>
    %10 = math.exp %9 : vector<64x4x16xf32>
    %cst_10 = arith.constant dense<0.000000e+00> : vector<64x4xf32>
    %11 = vector.multi_reduction <add>, %10, %cst_10 [2] : vector<64x4x16xf32> to vector<64x4xf32>
    %12 = vector.shape_cast %11 : vector<64x4xf32> to vector<64x4x1xf32>
    %13 = vector.broadcast %12 : vector<64x4x1xf32> to vector<64x4x16xf32>
    %14 = arith.divf %10, %13 : vector<64x4x16xf32>
    %c0_11 = arith.constant 0 : index
    %c0_12 = arith.constant 0 : index
    %c0_13 = arith.constant 0 : index
    %15 = vector.load %arg3[%c0_11, %c0_12, %c0_13] : memref<64x4x16xf32, #tpu.memory_space<vmem>>, vector<64x4x16xf32>
    %16 = arith.mulf %14, %15 : vector<64x4x16xf32>
    "tpu.trace_start"() <{level = 10 : i32, message = "gmn,gnd->gmd"}> : () -> ()
    %cst_14 = arith.constant dense<0.000000e+00> : vector<64x4x16xf32>
    %17 = tpu.matmul %16, %2, %cst_14 {dimension_numbers = #tpu.dot_dimension_numbers<[2], [1], [1], [2], [0, 0, 0, 1, 1, 2], [0], [0]>} : vector<64x4x16xf32>, vector<64x16x16xf32>, vector<64x4x16xf32> -> vector<64x4x16xf32>
    "tpu.trace_stop"() : () -> ()
    %c0_15 = arith.constant 0 : index
    %c0_16 = arith.constant 0 : index
    %c0_17 = arith.constant 0 : index
    %18 = vector.load %arg4[%c0_15, %c0_16, %c0_17] : memref<64x4x16xf32, #tpu.memory_space<vmem>>, vector<64x4x16xf32>
    tpu.vector_store %arg4[%c0_15, %c0_16, %c0_17], %17 {strides = array<i32>} : memref<64x4x16xf32, #tpu.memory_space<vmem>>, vector<64x4x16xf32>,
    return
  }
}

</mosaic_0001>

<bundles_post_ra>
// kernel: tpu_custom_call.1
= control target key start
LH: loop header
LB: loop body
LE: loop exit
PB: predicated region body
PF: predicated region fallthrough
CT: control target
= control target key end

     0   :  { %vm337_vm0 = vcmask 130048   ;;  %v16001_v0 = vmov 0.0|0.0   ;;  %vm13275_vm2 = vmmov 0   ;;  %v16003_v7 = vmov 0.0   ;;  %s15996_s1 = inlined_call_operand.vmem [shape: f32[64,16,16], index: 1, kind: input, shape index: {}]   ;;  %s15997_s0 = inlined_call_operand.vmem [shape: f32[64,4,16], index: 0, kind: input, shape index: {}]   ;;  %s15998_s2 = inlined_call_operand.vmem [shape: f32[64,16,16], index: 2, kind: input, shape index: {}]   ;;  %s15999_s3 = inlined_call_operand.vmem [shape: f32[64,4,16], index: 3, kind: input, shape index: {}]   ;;  %s16000_s4 = inlined_call_operand.vmem [shape: f32[64,4,16], index: 4, kind: output, shape index: {}]  }
   0x1   :  { %12567 = vmatprep.subr.bf16.mxu0 %v16001_v0  ;;  %12571 = vmatprep.subr.bf16.mxu1 %v16001_v0  ;;  %v81_v1 = vld [vmem:[%s15996_s1] sm:$0xff]  ;;  %v82_v2 = vld [vmem:[%s15996_s1 + $0x8] sm:$0xff]  ;;  %vm13312_vm1 = vmpackc.low %vm337_vm0, %vm337_vm0  ;;  %vm5458_vm3 = vcmask 125952  }
   0x2   :  { %v12568_v4 = vpack.c.bf16 %v82_v2, %v81_v1  ;;  %v83_v5 = vld [vmem:[%s15996_s1 + $0x10] sm:$0xff]  ;;  %v84_v6 = vld [vmem:[%s15996_s1 + $0x18] sm:$0xff]  ;;  %11675 = vmatprep.mubr.msk.f32.mxu0 %vm13275_vm2, %v16003_v7  ;;  %11682 = vmatprep.mubr.msk.f32.mxu1 %vm13275_vm2, %v16003_v7  ;;  %v85_v9 = vld [vmem:[%s15996_s1 + $0x20] sm:$0xff] }
   0x3   :  { %v12572_v8 = vpack.c.bf16 %v84_v6, %v83_v5  ;;  %v86_v10 = vld [vmem:[%s15996_s1 + $0x28] sm:$0xff]  ;;  %v87_v11 = vld [vmem:[%s15996_s1 + $0x30] sm:$0xff]  ;;  %v88_v12 = vld [vmem:[%s15996_s1 + $0x38] sm:$0xff] }
   0x4   :  { %12570 = vmatpush3.bf16.xpose.msk.msra.mxu0 %vm13312_vm1, %v12568_v4  ;;  %v17_v13 = vld [vmem:[%s15997_s0] sm:$0xf]  ;;  %v12576_v14 = vpack.c.bf16 %v86_v10, %v85_v9  ;;  %v18_v15 = vld [vmem:[%s15997_s0 + $0x4] sm:$0xf]  ;;  %v12580_v16 = vpack.c.bf16 %v88_v12, %v87_v11  ;;  %v90_v18 = vld [vmem:[%s15996_s1 + $0x48] sm:$0xff] }
   0x5   :  { %12574 = vmatpush3.bf16.xpose.msk.msra.mxu1 %vm13312_vm1, %v12572_v8  ;;  %12575 = vmatprep.subr.bf16.mxu0 %v16001_v0  ;;  %v89_v17 = vld [vmem:[%s15996_s1 + $0x40] sm:$0xff]  ;;  %v91_v19 = vld [vmem:[%s15996_s1 + $0x50] sm:$0xff]  ;;  %v92_v20 = vld [vmem:[%s15996_s1 + $0x58] sm:$0xff] }
   0x6   :  { %12579 = vmatprep.subr.bf16.mxu1 %v16001_v0  ;;  %v19_v21 = vld [vmem:[%s15997_s0 + $0x8] sm:$0xf]  ;;  %v12584_v22 = vpack.c.bf16 %v90_v18, %v89_v17  ;;  %v20_v23 = vld [vmem:[%s15997_s0 + $0xc] sm:$0xf]  ;;  %v12588_v24 = vpack.c.bf16 %v92_v20, %v91_v19  ;;  %v93_v25 = vld [vmem:[%s15996_s1 + $0x60] sm:$0xff] }
   0x7   :  { %v94_v26 = vld [vmem:[%s15996_s1 + $0x68] sm:$0xff]  ;;  %v95_v27 = vld [vmem:[%s15996_s1 + $0x70] sm:$0xff]  ;;  %v96_v28 = vld [vmem:[%s15996_s1 + $0x78] sm:$0xff] }
   0x8   :  { %v21_v29 = vld [vmem:[%s15997_s0 + $0x10] sm:$0xf]  ;;  %v12592_v30 = vpack.c.bf16 %v94_v26, %v93_v25  ;;  %v22_v31 = vld [vmem:[%s15997_s0 + $0x14] sm:$0xf]  ;;  %v12596_v32 = vpack.c.bf16 %v96_v28, %v95_v27  ;;  %v97_v33 = vld [vmem:[%s15996_s1 + $0x80] sm:$0xff] }
   0x9   :  { %v98_v34 = vld [vmem:[%s15996_s1 + $0x88] sm:$0xff]  ;;  %v99_v35 = vld [vmem:[%s15996_s1 + $0x90] sm:$0xff]  ;;  %v100_v36 = vld [vmem:[%s15996_s1 + $0x98] sm:$0xff] }
   0xa   :  { %v23_v37 = vld [vmem:[%s15997_s0 + $0x18] sm:$0xf]  ;;  %v12600_v38 = vpack.c.bf16 %v98_v34, %v97_v33  ;;  %v24_v39 = vld [vmem:[%s15997_s0 + $0x1c] sm:$0xf]  ;;  %v12604_v40 = vpack.c.bf16 %v100_v36, %v99_v35  ;;  %v101_v41 = vld [vmem:[%s15996_s1 + $0xa0] sm:$0xff] }
   0xb   :  { %11676 = vmatmul.mubr.msk.f32.vlgmr.msra.gmra.mrb[0].mxu0 %vm337_vm0, %v17_v13  ;;  %v102_v42 = vld [vmem:[%s15996_s1 + $0xa8] sm:$0xff]  ;;  %v103_v43 = vld [vmem:[%s15996_s1 + $0xb0] sm:$0xff]  ;;  %v104_v44 = vld [vmem:[%s15996_s1 + $0xb8] sm:$0xff] }
   0xc   :  { %11683 = vmatmul.mubr.msk.f32.vlgmr.msra.gmra.mrb[0].mxu1 %vm337_vm0, %v18_v15  ;;  %12578 = vmatpush3.bf16.xpose.msk.msra.mxu0 %vm13312_vm1, %v12576_v14  ;;  %v25_v45 = vld [vmem:[%s15997_s0 + $0x20] sm:$0xf]  ;;  %v12608_v46 = vpack.c.bf16 %v102_v42, %v101_v41  ;;  %v26_v47 = vld [vmem:[%s15997_s0 + $0x24] sm:$0xf]  ;;  %v12612_v48 = vpack.c.bf16 %v104_v44, %v103_v43  ;;  %v106_v50 = vld [vmem:[%s15996_s1 + $0xc8] sm:$0xff] }
   0xd   :  { %12582 = vmatpush3.bf16.xpose.msk.msra.mxu1 %vm13312_vm1, %v12580_v16  ;;  %11689 = vmatprep.mubr.msk.f32.mxu0 %vm13275_vm2, %v16003_v7  ;;  %v105_v49 = vld [vmem:[%s15996_s1 + $0xc0] sm:$0xff]  ;;  %v107_v51 = vld [vmem:[%s15996_s1 + $0xd0] sm:$0xff]  ;;  %v108_v52 = vld [vmem:[%s15996_s1 + $0xd8] sm:$0xff] }
   0xe   :  { %11696 = vmatprep.mubr.msk.f32.mxu1 %vm13275_vm2, %v16003_v7  ;;  %12583 = vmatprep.subr.bf16.mxu0 %v16001_v0  ;;  %v27_v53 = vld [vmem:[%s15997_s0 + $0x28] sm:$0xf]  ;;  %v12616_v54 = vpack.c.bf16 %v106_v50, %v105_v49  ;;  %v28_v55 = vld [vmem:[%s15997_s0 + $0x2c] sm:$0xf]  ;;  %v12620_v56 = vpack.c.bf16 %v108_v52, %v107_v51  ;;  %v109_v57 = vld [vmem:[%s15996_s1 + $0xe0] sm:$0xff] }
   0xf   :  { %12587 = vmatprep.subr.bf16.mxu1 %v16001_v0  ;;  %v110_v58 = vld [vmem:[%s15996_s1 + $0xe8] sm:$0xff]  ;;  %v111_v59 = vld [vmem:[%s15996_s1 + $0xf0] sm:$0xff]  ;;  %v112_v60 = vld [vmem:[%s15996_s1 + $0xf8] sm:$0xff] }
  0x10   :  { %v29_v61 = vld [vmem:[%s15997_s0 + $0x30] sm:$0xf]  ;;  %v12624_v62 = vpack.c.bf16 %v110_v58, %v109_v57  ;;  %v30_v63 = vld [vmem:[%s15997_s0 + $0x34] sm:$0xf]  ;;  %v12628_v1 = vpack.c.bf16 %v112_v60, %v111_v59  ;;  %v113_v2 = vld [vmem:[%s15996_s1 + $0x100] sm:$0xff] }
  0x11   :  { %v114_v4 = vld [vmem:[%s15996_s1 + $0x108] sm:$0xff]  ;;  %v115_v5 = vld [vmem:[%s15996_s1 + $0x110] sm:$0xff]  ;;  %v116_v6 = vld [vmem:[%s15996_s1 + $0x118] sm:$0xff] }
  0x12   :  { %v31_v8 = vld [vmem:[%s15997_s0 + $0x38] sm:$0xf]  ;;  %v12632_v9 = vpack.c.bf16 %v114_v4, %v113_v2  ;;  %v32_v10 = vld [vmem:[%s15997_s0 + $0x3c] sm:$0xf]  ;;  %v12636_v11 = vpack.c.bf16 %v116_v6, %v115_v5  ;;  %v117_v12 = vld [vmem:[%s15996_s1 + $0x120] sm:$0xff] }
  0x13   :  { %11690 = vmatmul.mubr.msk.f32.vlgmr.msra.gmra.mrb[2].mxu0 %vm337_vm0, %v19_v21  ;;  %v118_v13 = vld [vmem:[%s15996_s1 + $0x128] sm:$0xff]  ;;  %v119_v14 = vld [vmem:[%s15996_s1 + $0x130] sm:$0xff]  ;;  %v120_v15 = vld [vmem:[%s15996_s1 + $0x138] sm:$0xff] }
  0x14   :  { %11697 = vmatmul.mubr.msk.f32.vlgmr.msra.gmra.mrb[2].mxu1 %vm337_vm0, %v20_v23  ;;  %12586 = vmatpush3.bf16.xpose.msk.msra.mxu0 %vm13312_vm1, %v12584_v22  ;;  %v33_v16 = vld [vmem:[%s15997_s0 + $0x40] sm:$0xf]  ;;  %v12640_v17 = vpack.c.bf16 %v118_v13, %v117_v12  ;;  %v34_v18 = vld [vmem:[%s15997_s0 + $0x44] sm:$0xf]  ;;  %v12644_v19 = vpack.c.bf16 %v120_v15, %v119_v14  ;;  %v122_v21 = vld [vmem:[%s15996_s1 + $0x148] sm:$0xff] }
  0x15   :  { %12590 = vmatpush3.bf16.xpose.msk.msra.mxu1 %vm13312_vm1, %v12588_v24  ;;  %11703 = vmatprep.mubr.msk.f32.mxu0 %vm13275_vm2, %v16003_v7  ;;  %v121_v20 = vld [vmem:[%s15996_s1 + $0x140] sm:$0xff]  ;;  %v123_v22 = vld [vmem:[%s15996_s1 + $0x150] sm:$0xff]  ;;  %v124_v23 = vld [vmem:[%s15996_s1 + $0x158] sm:$0xff] }
  0x16   :  { %11710 = vmatprep.mubr.msk.f32.mxu1 %vm13275_vm2, %v16003_v7  ;;  %12591 = vmatprep.subr.bf16.mxu0 %v16001_v0  ;;  %v35_v24 = vld [vmem:[%s15997_s0 + $0x48] sm:$0xf]  ;;  %v12648_v25 = vpack.c.bf16 %v122_v21, %v121_v20  ;;  %v36_v26 = vld [vmem:[%s15997_s0 + $0x4c] sm:$0xf]  ;;  %v12652_v27 = vpack.c.bf16 %v124_v23, %v123_v22  ;;  %v125_v28 = vld [vmem:[%s15996_s1 + $0x160] sm:$0xff] }
  0x17   :  { %12595 = vmatprep.subr.bf16.mxu1 %v16001_v0  ;;  %v38_v34 = vld [vmem:[%s15997_s0 + $0x54] sm:$0xf]  ;;  %v129_v36 = vld [vmem:[%s15996_s1 + $0x180] sm:$0xff]  ;;  %v40_v42 = vld [vmem:[%s15997_s0 + $0x5c] sm:$0xf] }
  0x18   :  { %v133_v44 = vld [vmem:[%s15996_s1 + $0x1a0] sm:$0xff]  ;;  %v44_v58 = vld [vmem:[%s15997_s0 + $0x6c] sm:$0xf]  ;;  %v46_v4 = vld [vmem:[%s15997_s0 + $0x74] sm:$0xf] }
  0x19   :  { %v42_v50 = vld [vmem:[%s15997_s0 + $0x64] sm:$0xf]  ;;  %v48_v13 = vld [vmem:[%s15997_s0 + $0x7c] sm:$0xf]  ;;  %v79_v3 = vld [vmem:[%s15997_s0 + $0xf8] sm:$0xf] }
  0x1a   :  { %v137_v52 = vld [vmem:[%s15996_s1 + $0x1c0] sm:$0xff] }
  0x1b   :  { %11704 = vmatmul.mubr.msk.f32.vlgmr.msra.gmra.mrb[4].mxu0 %vm337_vm0, %v21_v29  ;;  %v126_v29 = vld [vmem:[%s15996_s1 + $0x168] sm:$0xff]  ;;  %v141_v60 = vld [vmem:[%s15996_s1 + $0x1e0] sm:$0xff] }
  0x1c   :  { %11711 = vmatmul.mubr.msk.f32.vlgmr.msra.gmra.mrb[4].mxu1 %vm337_vm0, %v22_v31  ;;  %12594 = vmatpush3.bf16.xpose.msk.msra.mxu0 %vm13312_vm1, %v12592_v30  ;;  %v127_v30 = vld [vmem:[%s15996_s1 + $0x170] sm:$0xff]  ;;  %v128_v31 = vld [vmem:[%s15996_s1 + $0x178] sm:$0xff]  ;;  %v12656_v33 = vpack.c.bf16 %v126_v29, %v125_v28  ;;  %v145_v6 = vld [vmem:[%s15996_s1 + $0x200] sm:$0xff] }
  0x1d   :  { %12598 = vmatpush3.bf16.xpose.msk.msra.mxu1 %vm13312_vm1, %v12596_v32  ;;  %11717 = vmatprep.mubr.msk.f32.mxu0 %vm13275_vm2, %v16003_v7  ;;  %v37_v32 = vld [vmem:[%s15997_s0 + $0x50] sm:$0xf]  ;;  %v12660_v35 = vpack.c.bf16 %v128_v31, %v127_v30  ;;  %v149_v15 = vld [vmem:[%s15996_s1 + $0x220] sm:$0xff]  ;;  %v52_v29 = vld [vmem:[%s15997_s0 + $0x8c] sm:$0xf] }
  0x1e   :  { %11724 = vmatprep.mubr.msk.f32.mxu1 %vm13275_vm2, %v16003_v7  ;;  %12599 = vmatprep.subr.bf16.mxu0 %v16001_v0  ;;  %v50_v21 = vld [vmem:[%s15997_s0 + $0x84] sm:$0xf] }
  0x1f   :  { %12603 = vmatprep.subr.bf16.mxu1 %v16001_v0  ;;  %v153_v23 = vld [vmem:[%s15996_s1 + $0x240] sm:$0xff] }
  0x20   :  { %v157_v31 = vld [vmem:[%s15996_s1 + $0x260] sm:$0xff] }
  0x23   :  { %11718 = vmatmul.mubr.msk.f32.vlgmr.msra.gmra.mrb[6].mxu0 %vm337_vm0, %v23_v37  ;;  %v130_v37 = vld [vmem:[%s15996_s1 + $0x188] sm:$0xff] }
  0x24   :  { %11725 = vmatmul.mubr.msk.f32.vlgmr.msra.gmra.mrb[6].mxu1 %vm337_vm0, %v24_v39  ;;  %12602 = vmatpush3.bf16.xpose.msk.msra.mxu0 %vm13312_vm1, %v12600_v38  ;;  %v131_v38 = vld [vmem:[%s15996_s1 + $0x190] sm:$0xff]  ;;  %v132_v39 = vld [vmem:[%s15996_s1 + $0x198] sm:$0xff]  ;;  %v12664_v41 = vpack.c.bf16 %v130_v37, %v129_v36 }
  0x25   :  { %12606 = vmatpush3.bf16.xpose.msk.msra.mxu1 %vm13312_vm1, %v12604_v40  ;;  %11731 = vmatprep.mubr.msk.f32.mxu0 %vm13275_vm2, %v16003_v7  ;;  %v39_v40 = vld [vmem:[%s15997_s0 + $0x58] sm:$0xf]  ;;  %v12668_v43 = vpack.c.bf16 %v132_v39, %v131_v38  ;;  %v54_v37 = vld [vmem:[%s15997_s0 + $0x94] sm:$0xf]  ;;  %v161_v39 = vld [vmem:[%s15996_s1 + $0x280] sm:$0xff] }
  0x26   :  { %11738 = vmatprep.mubr.msk.f32.mxu1 %vm13275_vm2, %v16003_v7  ;;  %12607 = vmatprep.subr.bf16.mxu0 %v16001_v0 }
  0x27   :  { %12611 = vmatprep.subr.bf16.mxu1 %v16001_v0 }
  0x2b   :  { %11732 = vmatmul.mubr.msk.f32.vlgmr.msra.gmra.mrb[8].mxu0 %vm337_vm0, %v25_v45  ;;  %v134_v45 = vld [vmem:[%s15996_s1 + $0x1a8] sm:$0xff] }
  0x2c   :  { %11739 = vmatmul.mubr.msk.f32.vlgmr.msra.gmra.mrb[8].mxu1 %vm337_vm0, %v26_v47  ;;  %12610 = vmatpush3.bf16.xpose.msk.msra.mxu0 %vm13312_vm1, %v12608_v46  ;;  %v135_v46 = vld [vmem:[%s15996_s1 + $0x1b0] sm:$0xff]  ;;  %v136_v47 = vld [vmem:[%s15996_s1 + $0x1b8] sm:$0xff]  ;;  %v12672_v49 = vpack.c.bf16 %v134_v45, %v133_v44 }
  0x2d   :  { %12614 = vmatpush3.bf16.xpose.msk.msra.mxu1 %vm13312_vm1, %v12612_v48  ;;  %11745 = vmatprep.mubr.msk.f32.mxu0 %vm13275_vm2, %v16003_v7  ;;  %v41_v48 = vld [vmem:[%s15997_s0 + $0x60] sm:$0xf]  ;;  %v12676_v51 = vpack.c.bf16 %v136_v47, %v135_v46  ;;  %v56_v45 = vld [vmem:[%s15997_s0 + $0x9c] sm:$0xf] }
  0x2e   :  { %11752 = vmatprep.mubr.msk.f32.mxu1 %vm13275_vm2, %v16003_v7  ;;  %12615 = vmatprep.subr.bf16.mxu0 %v16001_v0  ;;  %v165_v47 = vld [vmem:[%s15996_s1 + $0x2a0] sm:$0xff] }
  0x2f   :  { %12619 = vmatprep.subr.bf16.mxu1 %v16001_v0 }
  0x33   :  { %11746 = vmatmul.mubr.msk.f32.vlgmr.msra.gmra.mrb[10].mxu0 %vm337_vm0, %v27_v53  ;;  %v138_v53 = vld [vmem:[%s15996_s1 + $0x1c8] sm:$0xff] }
  0x34   :  { %11753 = vmatmul.mubr.msk.f32.vlgmr.msra.gmra.mrb[10].mxu1 %vm337_vm0, %v28_v55  ;;  %12618 = vmatpush3.bf16.xpose.msk.msra.mxu0 %vm13312_vm1, %v12616_v54  ;;  %v139_v54 = vld [vmem:[%s15996_s1 + $0x1d0] sm:$0xff]  ;;  %v140_v55 = vld [vmem:[%s15996_s1 + $0x1d8] sm:$0xff]  ;;  %v12680_v57 = vpack.c.bf16 %v138_v53, %v137_v52  ;;  %v58_v53 = vld [vmem:[%s15997_s0 + $0xa4] sm:$0xf] }
  0x35   :  { %12622 = vmatpush3.bf16.xpose.msk.msra.mxu1 %vm13312_vm1, %v12620_v56  ;;  %11759 = vmatprep.mubr.msk.f32.mxu0 %vm13275_vm2, %v16003_v7  ;;  %v43_v56 = vld [vmem:[%s15997_s0 + $0x68] sm:$0xf]  ;;  %v12684_v59 = vpack.c.bf16 %v140_v55, %v139_v54  ;;  %v169_v55 = vld [vmem:[%s15996_s1 + $0x2c0] sm:$0xff] }
  0x36   :  { %11766 = vmatprep.mubr.msk.f32.mxu1 %vm13275_vm2, %v16003_v7  ;;  %12623 = vmatprep.subr.bf16.mxu0 %v16001_v0 }
  0x37   :  { %12627 = vmatprep.subr.bf16.mxu1 %v16001_v0 }
  0x3b   :  { %11760 = vmatmul.mubr.msk.f32.vlgmr.msra.gmra.mrb[12].mxu0 %vm337_vm0, %v29_v61  ;;  %v142_v61 = vld [vmem:[%s15996_s1 + $0x1e8] sm:$0xff] }
  0x3c   :  { %11767 = vmatmul.mubr.msk.f32.vlgmr.msra.gmra.mrb[12].mxu1 %vm337_vm0, %v30_v63  ;;  %12626 = vmatpush3.bf16.xpose.msk.msra.mxu0 %vm13312_vm1, %v12624_v62  ;;  %v143_v62 = vld [vmem:[%s15996_s1 + $0x1f0] sm:$0xff]  ;;  %v144_v63 = vld [vmem:[%s15996_s1 + $0x1f8] sm:$0xff]  ;;  %v12688_v2 = vpack.c.bf16 %v142_v61, %v141_v60  ;;  %v60_v61 = vld [vmem:[%s15997_s0 + $0xac] sm:$0xf] }
  0x3d   :  { %12630 = vmatpush3.bf16.xpose.msk.msra.mxu1 %vm13312_vm1, %v12628_v1  ;;  %11773 = vmatprep.mubr.msk.f32.mxu0 %vm13275_vm2, %v16003_v7  ;;  %v45_v1 = vld [vmem:[%s15997_s0 + $0x70] sm:$0xf]  ;;  %v12692_v5 = vpack.c.bf16 %v144_v63, %v143_v62  ;;  %v173_v63 = vld [vmem:[%s15996_s1 + $0x2e0] sm:$0xff] }
  0x3e   :  { %11780 = vmatprep.mubr.msk.f32.mxu1 %vm13275_vm2, %v16003_v7  ;;  %12631 = vmatprep.subr.bf16.mxu0 %v16001_v0 }
  0x3f   :  { %12635 = vmatprep.subr.bf16.mxu1 %v16001_v0 }
  0x43   :  { %11774 = vmatmul.mubr.msk.f32.vlgmr.msra.gmra.mrb[14].mxu0 %vm337_vm0, %v31_v8  ;;  %v146_v8 = vld [vmem:[%s15996_s1 + $0x208] sm:$0xff] }
  0x44   :  { %11781 = vmatmul.mubr.msk.f32.vlgmr.msra.gmra.mrb[14].mxu1 %vm337_vm0, %v32_v10  ;;  %12634 = vmatpush3.bf16.xpose.msk.msra.mxu0 %vm13312_vm1, %v12632_v9  ;;  %v147_v9 = vld [vmem:[%s15996_s1 + $0x210] sm:$0xff]  ;;  %v148_v10 = vld [vmem:[%s15996_s1 + $0x218] sm:$0xff]  ;;  %v12696_v12 = vpack.c.bf16 %v146_v8, %v145_v6 }
  0x45   :  { %12638 = vmatpush3.bf16.xpose.msk.msra.mxu1 %vm13312_vm1, %v12636_v11  ;;  %11787 = vmatprep.mubr.msk.f32.mxu0 %vm13275_vm2, %v16003_v7  ;;  %v47_v11 = vld [vmem:[%s15997_s0 + $0x78] sm:$0xf]  ;;  %v12700_v14 = vpack.c.bf16 %v148_v10, %v147_v9  ;;  %v62_v8 = vld [vmem:[%s15997_s0 + $0xb4] sm:$0xf]  ;;  %v177_v10 = vld [vmem:[%s15996_s1 + $0x300] sm:$0xff] }
  0x46   :  { %11794 = vmatprep.mubr.msk.f32.mxu1 %vm13275_vm2, %v16003_v7  ;;  %12639 = vmatprep.subr.bf16.mxu0 %v16001_v0 }
  0x47   :  { %12643 = vmatprep.subr.bf16.mxu1 %v16001_v0 }
  0x4b   :  { %11788 = vmatmul.mubr.msk.f32.vlgmr.msra.gmra.mrb[16].mxu0 %vm337_vm0, %v33_v16  ;;  %v150_v16 = vld [vmem:[%s15996_s1 + $0x228] sm:$0xff] }
  0x4c   :  { %11795 = vmatmul.mubr.msk.f32.vlgmr.msra.gmra.mrb[16].mxu1 %vm337_vm0, %v34_v18  ;;  %12642 = vmatpush3.bf16.xpose.msk.msra.mxu0 %vm13312_vm1, %v12640_v17  ;;  %v151_v17 = vld [vmem:[%s15996_s1 + $0x230] sm:$0xff]  ;;  %v152_v18 = vld [vmem:[%s15996_s1 + $0x238] sm:$0xff]  ;;  %v12704_v20 = vpack.c.bf16 %v150_v16, %v149_v15 }
  0x4d   :  { %12646 = vmatpush3.bf16.xpose.msk.msra.mxu1 %vm13312_vm1, %v12644_v19  ;;  %11801 = vmatprep.mubr.msk.f32.mxu0 %vm13275_vm2, %v16003_v7  ;;  %v49_v19 = vld [vmem:[%s15997_s0 + $0x80] sm:$0xf]  ;;  %v12708_v22 = vpack.c.bf16 %v152_v18, %v151_v17  ;;  %v64_v16 = vld [vmem:[%s15997_s0 + $0xbc] sm:$0xf] }
  0x4e   :  { %11808 = vmatprep.mubr.msk.f32.mxu1 %vm13275_vm2, %v16003_v7  ;;  %12647 = vmatprep.subr.bf16.mxu0 %v16001_v0  ;;  %v181_v18 = vld [vmem:[%s15996_s1 + $0x320] sm:$0xff] }
  0x4f   :  { %12651 = vmatprep.subr.bf16.mxu1 %v16001_v0 }
  0x53   :  { %11802 = vmatmul.mubr.msk.f32.vlgmr.msra.gmra.mrb[18].mxu0 %vm337_vm0, %v35_v24  ;;  %v154_v24 = vld [vmem:[%s15996_s1 + $0x248] sm:$0xff] }
  0x54   :  { %11809 = vmatmul.mubr.msk.f32.vlgmr.msra.gmra.mrb[18].mxu1 %vm337_vm0, %v36_v26  ;;  %12650 = vmatpush3.bf16.xpose.msk.msra.mxu0 %vm13312_vm1, %v12648_v25  ;;  %v155_v25 = vld [vmem:[%s15996_s1 + $0x250] sm:$0xff]  ;;  %v156_v26 = vld [vmem:[%s15996_s1 + $0x258] sm:$0xff]  ;;  %v12712_v28 = vpack.c.bf16 %v154_v24, %v153_v23  ;;  %v66_v24 = vld [vmem:[%s15997_s0 + $0xc4] sm:$0xf] }
  0x55   :  { %12654 = vmatpush3.bf16.xpose.msk.msra.mxu1 %vm13312_vm1, %v12652_v27  ;;  %11815 = vmatprep.mubr.msk.f32.mxu0 %vm13275_vm2, %v16003_v7  ;;  %v51_v27 = vld [vmem:[%s15997_s0 + $0x88] sm:$0xf]  ;;  %v12716_v30 = vpack.c.bf16 %v156_v26, %v155_v25  ;;  %v185_v26 = vld [vmem:[%s15996_s1 + $0x340] sm:$0xff] }
  0x56   :  { %11822 = vmatprep.mubr.msk.f32.mxu1 %vm13275_vm2, %v16003_v7  ;;  %12655 = vmatprep.subr.bf16.mxu0 %v16001_v0 }
  0x57   :  { %12659 = vmatprep.subr.bf16.mxu1 %v16001_v0 }
  0x5b   :  { %11816 = vmatmul.mubr.msk.f32.vlgmr.msra.gmra.mrb[20].mxu0 %vm337_vm0, %v37_v32  ;;  %v158_v32 = vld [vmem:[%s15996_s1 + $0x268] sm:$0xff] }
  0x5c   :  { %11823 = vmatmul.mubr.msk.f32.vlgmr.msra.gmra.mrb[20].mxu1 %vm337_vm0, %v38_v34  ;;  %12658 = vmatpush3.bf16.xpose.msk.msra.mxu0 %vm13312_vm1, %v12656_v33  ;;  %v159_v33 = vld [vmem:[%s15996_s1 + $0x270] sm:$0xff]  ;;  %v160_v34 = vld [vmem:[%s15996_s1 + $0x278] sm:$0xff]  ;;  %v12720_v36 = vpack.c.bf16 %v158_v32, %v157_v31  ;;  %v68_v32 = vld [vmem:[%s15997_s0 + $0xcc] sm:$0xf] }
  0x5d   :  { %12662 = vmatpush3.bf16.xpose.msk.msra.mxu1 %vm13312_vm1, %v12660_v35  ;;  %11829 = vmatprep.mubr.msk.f32.mxu0 %vm13275_vm2, %v16003_v7  ;;  %v53_v35 = vld [vmem:[%s15997_s0 + $0x90] sm:$0xf]  ;;  %v12724_v38 = vpack.c.bf16 %v160_v34, %v159_v33  ;;  %v189_v34 = vld [vmem:[%s15996_s1 + $0x360] sm:$0xff] }
  0x5e   :  { %11836 = vmatprep.mubr.msk.f32.mxu1 %vm13275_vm2, %v16003_v7  ;;  %12663 = vmatprep.subr.bf16.mxu0 %v16001_v0 }
  0x5f   :  { %12667 = vmatprep.subr.bf16.mxu1 %v16001_v0 }
  0x63   :  { %11830 = vmatmul.mubr.msk.f32.vlgmr.msra.gmra.mrb[22].mxu0 %vm337_vm0, %v39_v40  ;;  %v162_v40 = vld [vmem:[%s15996_s1 + $0x288] sm:$0xff] }
  0x64   :  { %11837 = vmatmul.mubr.msk.f32.vlgmr.msra.gmra.mrb[22].mxu1 %vm337_vm0, %v40_v42  ;;  %12666 = vmatpush3.bf16.xpose.msk.msra.mxu0 %vm13312_vm1, %v12664_v41  ;;  %v163_v41 = vld [vmem:[%s15996_s1 + $0x290] sm:$0xff]  ;;  %v164_v42 = vld [vmem:[%s15996_s1 + $0x298] sm:$0xff]  ;;  %v12728_v44 = vpack.c.bf16 %v162_v40, %v161_v39 }
  0x65   :  { %12670 = vmatpush3.bf16.xpose.msk.msra.mxu1 %vm13312_vm1, %v12668_v43  ;;  %11843 = vmatprep.mubr.msk.f32.mxu0 %vm13275_vm2, %v16003_v7  ;;  %v55_v43 = vld [vmem:[%s15997_s0 + $0x98] sm:$0xf]  ;;  %v12732_v46 = vpack.c.bf16 %v164_v42, %v163_v41  ;;  %v70_v40 = vld [vmem:[%s15997_s0 + $0xd4] sm:$0xf]  ;;  %v193_v42 = vld [vmem:[%s15996_s1 + $0x380] sm:$0xff] }
  0x66   :  { %11850 = vmatprep.mubr.msk.f32.mxu1 %vm13275_vm2, %v16003_v7  ;;  %12671 = vmatprep.subr.bf16.mxu0 %v16001_v0 }
  0x67   :  { %12675 = vmatprep.subr.bf16.mxu1 %v16001_v0 }
  0x6b   :  { %11844 = vmatmul.mubr.msk.f32.vlgmr.msra.gmra.mrb[24].mxu0 %vm337_vm0, %v41_v48  ;;  %v166_v48 = vld [vmem:[%s15996_s1 + $0x2a8] sm:$0xff] }
  0x6c   :  { %11851 = vmatmul.mubr.msk.f32.vlgmr.msra.gmra.mrb[24].mxu1 %vm337_vm0, %v42_v50  ;;  %12674 = vmatpush3.bf16.xpose.msk.msra.mxu0 %vm13312_vm1, %v12672_v49  ;;  %v167_v49 = vld [vmem:[%s15996_s1 + $0x2b0] sm:$0xff]  ;;  %v168_v50 = vld [vmem:[%s15996_s1 + $0x2b8] sm:$0xff]  ;;  %v12736_v52 = vpack.c.bf16 %v166_v48, %v165_v47 }
  0x6d   :  { %12678 = vmatpush3.bf16.xpose.msk.msra.mxu1 %vm13312_vm1, %v12676_v51  ;;  %11857 = vmatprep.mubr.msk.f32.mxu0 %vm13275_vm2, %v16003_v7  ;;  %v57_v51 = vld [vmem:[%s15997_s0 + $0xa0] sm:$0xf]  ;;  %v12740_v54 = vpack.c.bf16 %v168_v50, %v167_v49 }
  0x6e   :  { %11864 = vmatprep.mubr.msk.f32.mxu1 %vm13275_vm2, %v16003_v7  ;;  %12679 = vmatprep.subr.bf16.mxu0 %v16001_v0 }
  0x6f   :  { %12683 = vmatprep.subr.bf16.mxu1 %v16001_v0 }
  0x73   :  { %11858 = vmatmul.mubr.msk.f32.vlgmr.msra.gmra.mrb[26].mxu0 %vm337_vm0, %v43_v56  ;;  %v170_v56 = vld [vmem:[%s15996_s1 + $0x2c8] sm:$0xff] }
  0x74   :  { %11865 = vmatmul.mubr.msk.f32.vlgmr.msra.gmra.mrb[26].mxu1 %vm337_vm0, %v44_v58  ;;  %12682 = vmatpush3.bf16.xpose.msk.msra.mxu0 %vm13312_vm1, %v12680_v57  ;;  %v171_v57 = vld [vmem:[%s15996_s1 + $0x2d0] sm:$0xff]  ;;  %v172_v58 = vld [vmem:[%s15996_s1 + $0x2d8] sm:$0xff]  ;;  %v12744_v60 = vpack.c.bf16 %v170_v56, %v169_v55 }
  0x75   :  { %12686 = vmatpush3.bf16.xpose.msk.msra.mxu1 %vm13312_vm1, %v12684_v59  ;;  %11871 = vmatprep.mubr.msk.f32.mxu0 %vm13275_vm2, %v16003_v7  ;;  %v59_v59 = vld [vmem:[%s15997_s0 + $0xa8] sm:$0xf]  ;;  %v12748_v62 = vpack.c.bf16 %v172_v58, %v171_v57  ;;  %v72_v55 = vld [vmem:[%s15997_s0 + $0xdc] sm:$0xf]  ;;  %v197_v58 = vld [vmem:[%s15996_s1 + $0x3a0] sm:$0xff] }
  0x76   :  { %11878 = vmatprep.mubr.msk.f32.mxu1 %vm13275_vm2, %v16003_v7  ;;  %12687 = vmatprep.subr.bf16.mxu0 %v16001_v0 }
  0x77   :  { %12691 = vmatprep.subr.bf16.mxu1 %v16001_v0 }
  0x7b   :  { %11872 = vmatmul.mubr.msk.f32.vlgmr.msra.gmra.mrb[28].mxu0 %vm337_vm0, %v45_v1  ;;  %v174_v1 = vld [vmem:[%s15996_s1 + $0x2e8] sm:$0xff] }
  0x7c   :  { %11879 = vmatmul.mubr.msk.f32.vlgmr.msra.gmra.mrb[28].mxu1 %vm337_vm0, %v46_v4  ;;  %12690 = vmatpush3.bf16.xpose.msk.msra.mxu0 %vm13312_vm1, %v12688_v2  ;;  %v175_v2 = vld [vmem:[%s15996_s1 + $0x2f0] sm:$0xff]  ;;  %v176_v4 = vld [vmem:[%s15996_s1 + $0x2f8] sm:$0xff]  ;;  %v12752_v6 = vpack.c.bf16 %v174_v1, %v173_v63 }
  0x7d   :  { %12694 = vmatpush3.bf16.xpose.msk.msra.mxu1 %vm13312_vm1, %v12692_v5  ;;  %11885 = vmatprep.mubr.msk.f32.mxu0 %vm13275_vm2, %v16003_v7  ;;  %v61_v5 = vld [vmem:[%s15997_s0 + $0xb0] sm:$0xf]  ;;  %v12756_v9 = vpack.c.bf16 %v176_v4, %v175_v2 }
  0x7e   :  { %11892 = vmatprep.mubr.msk.f32.mxu1 %vm13275_vm2, %v16003_v7  ;;  %12695 = vmatprep.subr.bf16.mxu0 %v16001_v0 }
  0x7f   :  { %12699 = vmatprep.subr.bf16.mxu1 %v16001_v0 }
  0x83   :  { %11886 = vmatmul.mubr.msk.f32.vlgmr.msra.gmra.mrb[30].mxu0 %vm337_vm0, %v47_v11  ;;  %v178_v11 = vld [vmem:[%s15996_s1 + $0x308] sm:$0xff] }
  0x84   :  { %11893 = vmatmul.mubr.msk.f32.vlgmr.msra.gmra.mrb[30].mxu1 %vm337_vm0, %v48_v13  ;;  %12698 = vmatpush3.bf16.xpose.msk.msra.mxu0 %vm13312_vm1, %v12696_v12  ;;  %v179_v12 = vld [vmem:[%s15996_s1 + $0x310] sm:$0xff]  ;;  %v180_v13 = vld [vmem:[%s15996_s1 + $0x318] sm:$0xff]  ;;  %v12760_v15 = vpack.c.bf16 %v178_v11, %v177_v10  ;;  %v74_v10 = vld [vmem:[%s15997_s0 + $0xe4] sm:$0xf] }
  0x85   :  { %12702 = vmatpush3.bf16.xpose.msk.msra.mxu1 %vm13312_vm1, %v12700_v14  ;;  %11899 = vmatprep.mubr.msk.f32.mxu0 %vm13275_vm2, %v16003_v7  ;;  %v63_v14 = vld [vmem:[%s15997_s0 + $0xb8] sm:$0xf]  ;;  %v12764_v17 = vpack.c.bf16 %v180_v13, %v179_v12  ;;  %v201_v13 = vld [vmem:[%s15996_s1 + $0x3c0] sm:$0xff] }
  0x86   :  { %11906 = vmatprep.mubr.msk.f32.mxu1 %vm13275_vm2, %v16003_v7  ;;  %12703 = vmatprep.subr.bf16.mxu0 %v16001_v0 }
  0x87   :  { %12707 = vmatprep.subr.bf16.mxu1 %v16001_v0 }
  0x8b   :  { %11900 = vmatmul.mubr.msk.f32.vlgmr.msra.gmra.mrb[32].mxu0 %vm337_vm0, %v49_v19  ;;  %v182_v19 = vld [vmem:[%s15996_s1 + $0x328] sm:$0xff] }
  0x8c   :  { %11907 = vmatmul.mubr.msk.f32.vlgmr.msra.gmra.mrb[32].mxu1 %vm337_vm0, %v50_v21  ;;  %12706 = vmatpush3.bf16.xpose.msk.msra.mxu0 %vm13312_vm1, %v12704_v20  ;;  %v183_v20 = vld [vmem:[%s15996_s1 + $0x330] sm:$0xff]  ;;  %v184_v21 = vld [vmem:[%s15996_s1 + $0x338] sm:$0xff]  ;;  %v12768_v23 = vpack.c.bf16 %v182_v19, %v181_v18 }
  0x8d   :  { %12710 = vmatpush3.bf16.xpose.msk.msra.mxu1 %vm13312_vm1, %v12708_v22  ;;  %11913 = vmatprep.mubr.msk.f32.mxu0 %vm13275_vm2, %v16003_v7  ;;  %v65_v22 = vld [vmem:[%s15997_s0 + $0xc0] sm:$0xf]  ;;  %v12772_v25 = vpack.c.bf16 %v184_v21, %v183_v20 }
  0x8e   :  { %11920 = vmatprep.mubr.msk.f32.mxu1 %vm13275_vm2, %v16003_v7  ;;  %12711 = vmatprep.subr.bf16.mxu0 %v16001_v0 }
  0x8f   :  { %12715 = vmatprep.subr.bf16.mxu1 %v16001_v0 }
  0x93   :  { %11914 = vmatmul.mubr.msk.f32.vlgmr.msra.gmra.mrb[34].mxu0 %vm337_vm0, %v51_v27  ;;  %v186_v27 = vld [vmem:[%s15996_s1 + $0x348] sm:$0xff] }
  0x94   :  { %11921 = vmatmul.mubr.msk.f32.vlgmr.msra.gmra.mrb[34].mxu1 %vm337_vm0, %v52_v29  ;;  %12714 = vmatpush3.bf16.xpose.msk.msra.mxu0 %vm13312_vm1, %v12712_v28  ;;  %v187_v28 = vld [vmem:[%s15996_s1 + $0x350] sm:$0xff]  ;;  %v188_v29 = vld [vmem:[%s15996_s1 + $0x358] sm:$0xff]  ;;  %v12776_v31 = vpack.c.bf16 %v186_v27, %v185_v26  ;;  %v76_v26 = vld [vmem:[%s15997_s0 + $0xec] sm:$0xf] }
  0x95   :  { %12718 = vmatpush3.bf16.xpose.msk.msra.mxu1 %vm13312_vm1, %v12716_v30  ;;  %11927 = vmatprep.mubr.msk.f32.mxu0 %vm13275_vm2, %v16003_v7  ;;  %v67_v30 = vld [vmem:[%s15997_s0 + $0xc8] sm:$0xf]  ;;  %v12780_v33 = vpack.c.bf16 %v188_v29, %v187_v28  ;;  %v205_v29 = vld [vmem:[%s15996_s1 + $0x3e0] sm:$0xff] }
  0x96   :  { %11934 = vmatprep.mubr.msk.f32.mxu1 %vm13275_vm2, %v16003_v7  ;;  %12719 = vmatprep.subr.bf16.mxu0 %v16001_v0 }
  0x97   :  { %12723 = vmatprep.subr.bf16.mxu1 %v16001_v0 }
  0x9b   :  { %11928 = vmatmul.mubr.msk.f32.vlgmr.msra.gmra.mrb[36].mxu0 %vm337_vm0, %v53_v35  ;;  %v190_v35 = vld [vmem:[%s15996_s1 + $0x368] sm:$0xff] }
  0x9c   :  { %11935 = vmatmul.mubr.msk.f32.vlgmr.msra.gmra.mrb[36].mxu1 %vm337_vm0, %v54_v37  ;;  %12722 = vmatpush3.bf16.xpose.msk.msra.mxu0 %vm13312_vm1, %v12720_v36  ;;  %v191_v36 = vld [vmem:[%s15996_s1 + $0x370] sm:$0xff]  ;;  %v192_v37 = vld [vmem:[%s15996_s1 + $0x378] sm:$0xff]  ;;  %v12784_v39 = vpack.c.bf16 %v190_v35, %v189_v34 }
  0x9d   :  { %12726 = vmatpush3.bf16.xpose.msk.msra.mxu1 %vm13312_vm1, %v12724_v38  ;;  %11941 = vmatprep.mubr.msk.f32.mxu0 %vm13275_vm2, %v16003_v7  ;;  %v69_v38 = vld [vmem:[%s15997_s0 + $0xd0] sm:$0xf]  ;;  %v12788_v41 = vpack.c.bf16 %v192_v37, %v191_v36 }
  0x9e   :  { %11948 = vmatprep.mubr.msk.f32.mxu1 %vm13275_vm2, %v16003_v7  ;;  %12727 = vmatprep.subr.bf16.mxu0 %v16001_v0 }
  0x9f   :  { %12731 = vmatprep.subr.bf16.mxu1 %v16001_v0 }
  0xa3   :  { %11942 = vmatmul.mubr.msk.f32.vlgmr.msra.gmra.mrb[38].mxu0 %vm337_vm0, %v55_v43  ;;  %v194_v43 = vld [vmem:[%s15996_s1 + $0x388] sm:$0xff] }
  0xa4   :  { %11949 = vmatmul.mubr.msk.f32.vlgmr.msra.gmra.mrb[38].mxu1 %vm337_vm0, %v56_v45  ;;  %12730 = vmatpush3.bf16.xpose.msk.msra.mxu0 %vm13312_vm1, %v12728_v44  ;;  %v195_v45 = vld [vmem:[%s15996_s1 + $0x390] sm:$0xff] }
  0xa5   :  { %12734 = vmatpush3.bf16.xpose.msk.msra.mxu1 %vm13312_vm1, %v12732_v46  ;;  %11955 = vmatprep.mubr.msk.f32.mxu0 %vm13275_vm2, %v16003_v7  ;;  %v196_v46 = vld [vmem:[%s15996_s1 + $0x398] sm:$0xff] }
  0xa6   :  { %11962 = vmatprep.mubr.msk.f32.mxu1 %vm13275_vm2, %v16003_v7  ;;  %12735 = vmatprep.subr.bf16.mxu0 %v16001_v0  ;;  %v12796_v56 = vpack.c.bf16 %v196_v46, %v195_v45 }
  0xa7   :  { %12739 = vmatprep.subr.bf16.mxu1 %v16001_v0 }
  0xab   :  { %11956 = vmatmul.mubr.msk.f32.vlgmr.msra.gmra.mrb[40].mxu0 %vm337_vm0, %v57_v51  ;;  %v71_v51 = vld [vmem:[%s15997_s0 + $0xd8] sm:$0xf] }
  0xac   :  { %11963 = vmatmul.mubr.msk.f32.vlgmr.msra.gmra.mrb[40].mxu1 %vm337_vm0, %v58_v53  ;;  %12738 = vmatpush3.bf16.xpose.msk.msra.mxu0 %vm13312_vm1, %v12736_v52  ;;  %v12792_v52 = vpack.c.bf16 %v194_v43, %v193_v42  ;;  %v78_v42 = vld [vmem:[%s15997_s0 + $0xf4] sm:$0xf] }
  0xad   :  { %12742 = vmatpush3.bf16.xpose.msk.msra.mxu1 %vm13312_vm1, %v12740_v54  ;;  %11969 = vmatprep.mubr.msk.f32.mxu0 %vm13275_vm2, %v16003_v7 }
  0xae   :  { %11976 = vmatprep.mubr.msk.f32.mxu1 %vm13275_vm2, %v16003_v7  ;;  %12743 = vmatprep.subr.bf16.mxu0 %v16001_v0 }
  0xaf   :  { %12747 = vmatprep.subr.bf16.mxu1 %v16001_v0 }
  0xb3   :  { %11970 = vmatmul.mubr.msk.f32.vlgmr.msra.gmra.mrb[42].mxu0 %vm337_vm0, %v59_v59  ;;  %v198_v59 = vld [vmem:[%s15996_s1 + $0x3a8] sm:$0xff] }
  0xb4   :  { %11977 = vmatmul.mubr.msk.f32.vlgmr.msra.gmra.mrb[42].mxu1 %vm337_vm0, %v60_v61  ;;  %12746 = vmatpush3.bf16.xpose.msk.msra.mxu0 %vm13312_vm1, %v12744_v60  ;;  %v199_v61 = vld [vmem:[%s15996_s1 + $0x3b0] sm:$0xff] }
  0xb5   :  { %12750 = vmatpush3.bf16.xpose.msk.msra.mxu1 %vm13312_vm1, %v12748_v62  ;;  %11983 = vmatprep.mubr.msk.f32.mxu0 %vm13275_vm2, %v16003_v7  ;;  %v200_v62 = vld [vmem:[%s15996_s1 + $0x3b8] sm:$0xff] }
  0xb6   :  { %11990 = vmatprep.mubr.msk.f32.mxu1 %vm13275_vm2, %v16003_v7  ;;  %12751 = vmatprep.subr.bf16.mxu0 %v16001_v0  ;;  %v12804_v11 = vpack.c.bf16 %v200_v62, %v199_v61 }
  0xb7   :  { %12755 = vmatprep.subr.bf16.mxu1 %v16001_v0 }
  0xbb   :  { %11984 = vmatmul.mubr.msk.f32.vlgmr.msra.gmra.mrb[44].mxu0 %vm337_vm0, %v61_v5  ;;  %v73_v5 = vld [vmem:[%s15997_s0 + $0xe0] sm:$0xf] }
  0xbc   :  { %11991 = vmatmul.mubr.msk.f32.vlgmr.msra.gmra.mrb[44].mxu1 %vm337_vm0, %v62_v8  ;;  %12754 = vmatpush3.bf16.xpose.msk.msra.mxu0 %vm13312_vm1, %v12752_v6  ;;  %v12800_v6 = vpack.c.bf16 %v198_v59, %v197_v58 }
  0xbd   :  { %12758 = vmatpush3.bf16.xpose.msk.msra.mxu1 %vm13312_vm1, %v12756_v9  ;;  %11997 = vmatprep.mubr.msk.f32.mxu0 %vm13275_vm2, %v16003_v7 }
  0xbe   :  { %12004 = vmatprep.mubr.msk.f32.mxu1 %vm13275_vm2, %v16003_v7  ;;  %12759 = vmatprep.subr.bf16.mxu0 %v16001_v0 }
  0xbf   :  { %12763 = vmatprep.subr.bf16.mxu1 %v16001_v0 }
  0xc3   :  { %11998 = vmatmul.mubr.msk.f32.vlgmr.msra.gmra.mrb[46].mxu0 %vm337_vm0, %v63_v14  ;;  %v202_v14 = vld [vmem:[%s15996_s1 + $0x3c8] sm:$0xff] }
  0xc4   :  { %12005 = vmatmul.mubr.msk.f32.vlgmr.msra.gmra.mrb[46].mxu1 %vm337_vm0, %v64_v16  ;;  %12762 = vmatpush3.bf16.xpose.msk.msra.mxu0 %vm13312_vm1, %v12760_v15  ;;  %v203_v16 = vld [vmem:[%s15996_s1 + $0x3d0] sm:$0xff] }
  0xc5   :  { %12766 = vmatpush3.bf16.xpose.msk.msra.mxu1 %vm13312_vm1, %v12764_v17  ;;  %12011 = vmatprep.mubr.msk.f32.mxu0 %vm13275_vm2, %v16003_v7  ;;  %v204_v17 = vld [vmem:[%s15996_s1 + $0x3d8] sm:$0xff] }
  0xc6   :  { %12018 = vmatprep.mubr.msk.f32.mxu1 %vm13275_vm2, %v16003_v7  ;;  %12767 = vmatprep.subr.bf16.mxu0 %v16001_v0  ;;  %v12812_v27 = vpack.c.bf16 %v204_v17, %v203_v16 }
  0xc7   :  { %12771 = vmatprep.subr.bf16.mxu1 %v16001_v0 }
  0xcb   :  { %12012 = vmatmul.mubr.msk.f32.vlgmr.msra.gmra.mrb[48].mxu0 %vm337_vm0, %v65_v22 }
  0xcc   :  { %12019 = vmatmul.mubr.msk.f32.vlgmr.msra.gmra.mrb[48].mxu1 %vm337_vm0, %v66_v24  ;;  %12770 = vmatpush3.bf16.xpose.msk.msra.mxu0 %vm13312_vm1, %v12768_v23  ;;  %v75_v23 = vld [vmem:[%s15997_s0 + $0xe8] sm:$0xf]  ;;  %v12808_v24 = vpack.c.bf16 %v202_v14, %v201_v13 }
  0xcd   :  { %12774 = vmatpush3.bf16.xpose.msk.msra.mxu1 %vm13312_vm1, %v12772_v25  ;;  %12025 = vmatprep.mubr.msk.f32.mxu0 %vm13275_vm2, %v16003_v7 }
  0xce   :  { %12032 = vmatprep.mubr.msk.f32.mxu1 %vm13275_vm2, %v16003_v7  ;;  %12775 = vmatprep.subr.bf16.mxu0 %v16001_v0 }
  0xcf   :  { %12779 = vmatprep.subr.bf16.mxu1 %v16001_v0 }
  0xd3   :  { %12026 = vmatmul.mubr.msk.f32.vlgmr.msra.gmra.mrb[50].mxu0 %vm337_vm0, %v67_v30  ;;  %v206_v30 = vld [vmem:[%s15996_s1 + $0x3e8] sm:$0xff] }
  0xd4   :  { %12033 = vmatmul.mubr.msk.f32.vlgmr.msra.gmra.mrb[50].mxu1 %vm337_vm0, %v68_v32  ;;  %12778 = vmatpush3.bf16.xpose.msk.msra.mxu0 %vm13312_vm1, %v12776_v31  ;;  %v207_v32 = vld [vmem:[%s15996_s1 + $0x3f0] sm:$0xff] }
  0xd5   :  { %12782 = vmatpush3.bf16.xpose.msk.msra.mxu1 %vm13312_vm1, %v12780_v33  ;;  %12039 = vmatprep.mubr.msk.f32.mxu0 %vm13275_vm2, %v16003_v7  ;;  %v208_v33 = vld [vmem:[%s15996_s1 + $0x3f8] sm:$0xff] }
  0xd6   :  { %12046 = vmatprep.mubr.msk.f32.mxu1 %vm13275_vm2, %v16003_v7  ;;  %12783 = vmatprep.subr.bf16.mxu0 %v16001_v0  ;;  %v12820_v43 = vpack.c.bf16 %v208_v33, %v207_v32 }
  0xd7   :  { %12787 = vmatprep.subr.bf16.mxu1 %v16001_v0 }
  0xdb   :  { %12040 = vmatmul.mubr.msk.f32.vlgmr.msra.gmra.mrb[52].mxu0 %vm337_vm0, %v69_v38 }
  0xdc   :  { %12047 = vmatmul.mubr.msk.f32.vlgmr.msra.gmra.mrb[52].mxu1 %vm337_vm0, %v70_v40  ;;  %12786 = vmatpush3.bf16.xpose.msk.msra.mxu0 %vm13312_vm1, %v12784_v39  ;;  %v77_v39 = vld [vmem:[%s15997_s0 + $0xf0] sm:$0xf]  ;;  %v12816_v40 = vpack.c.bf16 %v206_v30, %v205_v29 }
  0xdd   :  { %12790 = vmatpush3.bf16.xpose.msk.msra.mxu1 %vm13312_vm1, %v12788_v41  ;;  %12053 = vmatprep.mubr.msk.f32.mxu0 %vm13275_vm2, %v16003_v7 }
  0xde   :  { %v413_v44 = vpop.f32.mrb[0].mxu0  ;;  %12060 = vmatprep.mubr.msk.f32.mxu1 %vm13275_vm2, %v16003_v7  ;;  %12791 = vmatprep.subr.bf16.mxu0 %v16001_v0 }
  0xdf   :  { %v14153_v47 = vmul.f32 10.0, %v413_v44  ;;  %v492_v48 = vpop.f32.mrb[0].mxu1  ;;  %v11677_v49 = vpop.f32.mrb[1].mxu0  ;;  %12795 = vmatprep.subr.bf16.mxu1 %v16001_v0 }
  0xe0   :  { %v11684_v50 = vpop.f32.mrb[1].mxu1  ;;  %v14159_v53 = vmul.f32 10.0, %v492_v48 }
  0xe1   :  { %v5459_v54 = vsel %vm5458_vm3, %v14153_v47, -inf }
  0xe2   :  { %5460 = vmax.xlane.f32.xlu0 %v5459_v54  ;;  %v5462_v57 = vsel %vm5458_vm3, %v14159_v53, -inf  ;;  %v80_v54 = vld [vmem:[%s15997_s0 + $0xfc] sm:$0xf] }
  0xe3   :  { %12054 = vmatmul.mubr.msk.f32.vlgmr.msra.gmra.mrb[54].mxu0 %vm337_vm0, %v71_v51 }
  0xe4   :  { %12061 = vmatmul.mubr.msk.f32.vlgmr.msra.gmra.mrb[54].mxu1 %vm337_vm0, %v72_v55  ;;  %12794 = vmatpush3.bf16.xpose.msk.msra.mxu0 %vm13312_vm1, %v12792_v52 }
  0xe5   :  { %12798 = vmatpush3.bf16.xpose.msk.msra.mxu1 %vm13312_vm1, %v12796_v56  ;;  %12067 = vmatprep.mubr.msk.f32.mxu0 %vm13275_vm2, %v16003_v7 }
  0xe6   :  { %5463 = vmax.xlane.f32.xlu0 %v5462_v57  ;;  %v571_v60 = vpop.f32.mrb[2].mxu0  ;;  %12074 = vmatprep.mubr.msk.f32.mxu1 %vm13275_vm2, %v16003_v7 }
  0xe7   :  { %v650_v63 = vpop.f32.mrb[2].mxu1  ;;  %v14190_v1 = vmul.f32 10.0, %v571_v60  ;;  %v11691_v2 = vpop.f32.mrb[3].mxu0  ;;  %12799 = vmatprep.subr.bf16.mxu0 %v16001_v0  ;;  %12803 = vmatprep.subr.bf16.mxu1 %v16001_v0 }
  0xe8   :  { %v11698_v4 = vpop.f32.mrb[3].mxu1  ;;  %v14197_v8 = vmul.f32 10.0, %v650_v63 }
  0xe9   :  { %v5465_v9 = vsel %vm5458_vm3, %v14190_v1, -inf }
  0xea   :  { %5466 = vmax.xlane.f32.xlu1 %v5465_v9  ;;  %v5468_v12 = vsel %vm5458_vm3, %v14197_v8, -inf }
  0xeb   :  { %12068 = vmatmul.mubr.msk.f32.vlgmr.msra.gmra.mrb[56].mxu0 %vm337_vm0, %v73_v5 }
  0xec   :  { %12075 = vmatmul.mubr.msk.f32.vlgmr.msra.gmra.mrb[56].mxu1 %vm337_vm0, %v74_v10  ;;  %12802 = vmatpush3.bf16.xpose.msk.msra.mxu0 %vm13312_vm1, %v12800_v6 }
  0xed   :  { %12806 = vmatpush3.bf16.xpose.msk.msra.mxu1 %vm13312_vm1, %v12804_v11  ;;  %12081 = vmatprep.mubr.msk.f32.mxu0 %vm13275_vm2, %v16003_v7 }
  0xee   :  { %5469 = vmax.xlane.f32.xlu1 %v5468_v12  ;;  %v729_v15 = vpop.f32.mrb[4].mxu0  ;;  %12088 = vmatprep.mubr.msk.f32.mxu1 %vm13275_vm2, %v16003_v7 }
  0xef   :  { %v808_v18 = vpop.f32.mrb[4].mxu1  ;;  %v14228_v19 = vmul.f32 10.0, %v729_v15  ;;  %v11705_v20 = vpop.f32.mrb[5].mxu0  ;;  %12807 = vmatprep.subr.bf16.mxu0 %v16001_v0  ;;  %12811 = vmatprep.subr.bf16.mxu1 %v16001_v0 }
  0xf0   :  { %v14232_v21 = vmul.f32 10.0, %v808_v18  ;;  %v11712_v22 = vpop.f32.mrb[5].mxu1 }
  0xf1   :  { %v5471_v25 = vsel %vm5458_vm3, %v14228_v19, -inf }
  0xf2   :  { %v5474_v28 = vsel %vm5458_vm3, %v14232_v21, -inf  ;;  %5472 = vmax.xlane.f32.xlu0 %v5471_v25 }
  0xf3   :  { %5475 = vmax.xlane.f32.xlu1 %v5474_v28  ;;  %12082 = vmatmul.mubr.msk.f32.vlgmr.msra.gmra.mrb[58].mxu0 %vm337_vm0, %v75_v23 }
  0xf4   :  { %12089 = vmatmul.mubr.msk.f32.vlgmr.msra.gmra.mrb[58].mxu1 %vm337_vm0, %v76_v26  ;;  %12810 = vmatpush3.bf16.xpose.msk.msra.mxu0 %vm13312_vm1, %v12808_v24 }
  0xf5   :  { %12814 = vmatpush3.bf16.xpose.msk.msra.mxu1 %vm13312_vm1, %v12812_v27  ;;  %12095 = vmatprep.mubr.msk.f32.mxu0 %vm13275_vm2, %v16003_v7 }
  0xf6   :  { %v887_v31 = vpop.f32.mrb[6].mxu0  ;;  %12102 = vmatprep.mubr.msk.f32.mxu1 %vm13275_vm2, %v16003_v7  ;;  %12815 = vmatprep.subr.bf16.mxu0 %v16001_v0 }
  0xf7   :  { %v14267_v34 = vmul.f32 10.0, %v887_v31  ;;  %v966_v35 = vpop.f32.mrb[6].mxu1  ;;  %v11719_v36 = vpop.f32.mrb[7].mxu0  ;;  %12819 = vmatprep.subr.bf16.mxu1 %v16001_v0 }
  0xf8   :  { %v14270_v37 = vmul.f32 10.0, %v966_v35  ;;  %v11726_v38 = vpop.f32.mrb[7].mxu1 }
  0xf9   :  { %v5477_v41 = vsel %vm5458_vm3, %v14267_v34, -inf }
  0xfa   :  { %v5480_v44 = vsel %vm5458_vm3, %v14270_v37, -inf  ;;  %5478 = vmax.xlane.f32.xlu0 %v5477_v41 }
  0xfb   :  { %5481 = vmax.xlane.f32.xlu1 %v5480_v44  ;;  %12096 = vmatmul.mubr.msk.f32.vlgmr.msra.gmra.mrb[60].mxu0 %vm337_vm0, %v77_v39 }
  0xfc   :  { %12103 = vmatmul.mubr.msk.f32.vlgmr.msra.gmra.mrb[60].mxu1 %vm337_vm0, %v78_v42  ;;  %12818 = vmatpush3.bf16.xpose.msk.msra.mxu0 %vm13312_vm1, %v12816_v40 }
  0xfd   :  { %12822 = vmatpush3.bf16.xpose.msk.msra.mxu1 %vm13312_vm1, %v12820_v43  ;;  %12109 = vmatprep.mubr.msk.f32.mxu0 %vm13275_vm2, %v16003_v7 }
  0xfe   :  { %v1045_v45 = vpop.f32.mrb[8].mxu0  ;;  %12116 = vmatprep.mubr.msk.f32.mxu1 %vm13275_vm2, %v16003_v7  ;;  %12823 = vmatprep.subr.bf16.mxu0 %v16001_v0 }
  0xff   :  { %v14293_v46 = vmul.f32 10.0, %v1045_v45  ;;  %v1124_v48 = vpop.f32.mrb[8].mxu1  ;;  %v11733_v49 = vpop.f32.mrb[9].mxu0  ;;  %12826 = vmatprep.subr.bf16.mxu1 %v16001_v0 }
 0x100   :  { %v14296_v50 = vmul.f32 10.0, %v1124_v48  ;;  %v11740_v51 = vpop.f32.mrb[9].mxu1 }
 0x101   :  { %v5483_v52 = vsel %vm5458_vm3, %v14293_v46, -inf }
 0x102   :  { %v5486_v55 = vsel %vm5458_vm3, %v14296_v50, -inf  ;;  %5484 = vmax.xlane.f32.xlu0 %v5483_v52 }
 0x103   :  { %5487 = vmax.xlane.f32.xlu1 %v5486_v55  ;;  %12110 = vmatmul.mubr.msk.f32.vlgmr.msra.gmra.mrb[62].mxu0 %vm337_vm0, %v79_v3 }
 0x104   :  { %12117 = vmatmul.mubr.msk.f32.vlgmr.msra.gmra.mrb[62].mxu1 %vm337_vm0, %v80_v54  ;;  %12123 = vmatprep.mubr.msk.f32.mxu0 %vm13275_vm2, %v16003_v7 }
 0x105   :  { %12130 = vmatprep.mubr.msk.f32.mxu1 %vm13275_vm2, %v16003_v7 }
 0x106   :  { %v1203_v56 = vpop.f32.mrb[10].mxu0 }
 0x107   :  { %v14314_v57 = vmul.f32 10.0, %v1203_v56  ;;  %v1282_v58 = vpop.f32.mrb[10].mxu1  ;;  %v11747_v59 = vpop.f32.mrb[11].mxu0 }
 0x108   :  { %v14316_v60 = vmul.f32 10.0, %v1282_v58  ;;  %v11754_v61 = vpop.f32.mrb[11].mxu1 }
 0x109   :  { %v5489_v62 = vsel %vm5458_vm3, %v14314_v57, -inf }
 0x10a   :  { %v5492_v63 = vsel %vm5458_vm3, %v14316_v60, -inf  ;;  %5490 = vmax.xlane.f32.xlu0 %v5489_v62 }
 0x10b   :  { %5493 = vmax.xlane.f32.xlu1 %v5492_v63 }
 0x10e   :  { %v1361_v2 = vpop.f32.mrb[12].mxu0 }
 0x10f   :  { %v14322_v4 = vmul.f32 10.0, %v1361_v2  ;;  %v1440_v5 = vpop.f32.mrb[12].mxu1  ;;  %v11761_v6 = vpop.f32.mrb[13].mxu0 }
 0x110   :  { %v14324_v9 = vmul.f32 10.0, %v1440_v5  ;;  %v11768_v10 = vpop.f32.mrb[13].mxu1 }
 0x111   :  { %v5495_v11 = vsel %vm5458_vm3, %v14322_v4, -inf }
 0x112   :  { %v5498_v12 = vsel %vm5458_vm3, %v14324_v9, -inf  ;;  %5496 = vmax.xlane.f32.xlu0 %v5495_v11 }
 0x113   :  { %5499 = vmax.xlane.f32.xlu1 %v5498_v12 }
 0x116   :  { %v1519_v13 = vpop.f32.mrb[14].mxu0 }
 0x117   :  { %v14330_v14 = vmul.f32 10.0, %v1519_v13  ;;  %v1598_v15 = vpop.f32.mrb[14].mxu1  ;;  %v11775_v16 = vpop.f32.mrb[15].mxu0 }
 0x118   :  { %v14332_v17 = vmul.f32 10.0, %v1598_v15  ;;  %v11782_v18 = vpop.f32.mrb[15].mxu1 }
 0x119   :  { %v5501_v20 = vsel %vm5458_vm3, %v14330_v14, -inf }
 0x11a   :  { %v5504_v22 = vsel %vm5458_vm3, %v14332_v17, -inf  ;;  %5502 = vmax.xlane.f32.xlu0 %v5501_v20 }
 0x11b   :  { %5505 = vmax.xlane.f32.xlu1 %v5504_v22 }
 0x11e   :  { %v1677_v23 = vpop.f32.mrb[16].mxu0 }
 0x11f   :  { %v14338_v24 = vmul.f32 10.0, %v1677_v23  ;;  %v1756_v25 = vpop.f32.mrb[16].mxu1  ;;  %v11789_v26 = vpop.f32.mrb[17].mxu0 }
 0x120   :  { %v14340_v27 = vmul.f32 10.0, %v1756_v25  ;;  %v11796_v28 = vpop.f32.mrb[17].mxu1 }
 0x121   :  { %v5507_v29 = vsel %vm5458_vm3, %v14338_v24, -inf }
 0x122   :  { %v5510_v30 = vsel %vm5458_vm3, %v14340_v27, -inf  ;;  %5508 = vmax.xlane.f32.xlu0 %v5507_v29 }
 0x123   :  { %5511 = vmax.xlane.f32.xlu1 %v5510_v30 }
 0x126   :  { %v1835_v31 = vpop.f32.mrb[18].mxu0 }
 0x127   :  { %v14346_v32 = vmul.f32 10.0, %v1835_v31  ;;  %v1914_v33 = vpop.f32.mrb[18].mxu1  ;;  %v11803_v35 = vpop.f32.mrb[19].mxu0 }
 0x128   :  { %v14348_v36 = vmul.f32 10.0, %v1914_v33  ;;  %v11810_v38 = vpop.f32.mrb[19].mxu1 }
 0x129   :  { %v5513_v39 = vsel %vm5458_vm3, %v14346_v32, -inf }
 0x12a   :  { %v5516_v40 = vsel %vm5458_vm3, %v14348_v36, -inf  ;;  %5514 = vmax.xlane.f32.xlu0 %v5513_v39 }
 0x12b   :  { %5517 = vmax.xlane.f32.xlu1 %v5516_v40 }
 0x12e   :  { %v1993_v41 = vpop.f32.mrb[20].mxu0 }
 0x12f   :  { %v14354_v42 = vmul.f32 10.0, %v1993_v41  ;;  %v2072_v43 = vpop.f32.mrb[20].mxu1  ;;  %v11817_v44 = vpop.f32.mrb[21].mxu0 }
 0x130   :  { %v14356_v45 = vmul.f32 10.0, %v2072_v43  ;;  %v11824_v48 = vpop.f32.mrb[21].mxu1 }
 0x131   :  { %v5519_v49 = vsel %vm5458_vm3, %v14354_v42, -inf }
 0x132   :  { %v5522_v51 = vsel %vm5458_vm3, %v14356_v45, -inf  ;;  %5520 = vmax.xlane.f32.xlu0 %v5519_v49 }
 0x133   :  { %5523 = vmax.xlane.f32.xlu1 %v5522_v51 }
 0x136   :  { %v2151_v3 = vpop.f32.mrb[22].mxu0 }
 0x137   :  { %v14362_v52 = vmul.f32 10.0, %v2151_v3  ;;  %v2230_v54 = vpop.f32.mrb[22].mxu1  ;;  %v11831_v55 = vpop.f32.mrb[23].mxu0 }
 0x138   :  { %v14364_v56 = vmul.f32 10.0, %v2230_v54  ;;  %v11838_v58 = vpop.f32.mrb[23].mxu1 }
 0x139   :  { %v5525_v59 = vsel %vm5458_vm3, %v14362_v52, -inf }
 0x13a   :  { %v5528_v61 = vsel %vm5458_vm3, %v14364_v56, -inf  ;;  %5526 = vmax.xlane.f32.xlu0 %v5525_v59 }
 0x13b   :  { %5529 = vmax.xlane.f32.xlu1 %v5528_v61 }
 0x13e   :  { %v2309_v62 = vpop.f32.mrb[24].mxu0 }
 0x13f   :  { %v14370_v63 = vmul.f32 10.0, %v2309_v62  ;;  %v2388_v2 = vpop.f32.mrb[24].mxu1  ;;  %v11845_v5 = vpop.f32.mrb[25].mxu0 }
 0x140   :  { %v14372_v6 = vmul.f32 10.0, %v2388_v2  ;;  %v11852_v10 = vpop.f32.mrb[25].mxu1 }
 0x141   :  { %v5531_v11 = vsel %vm5458_vm3, %v14370_v63, -inf }
 0x142   :  { %v5534_v12 = vsel %vm5458_vm3, %v14372_v6, -inf  ;;  %5532 = vmax.xlane.f32.xlu0 %v5531_v11 }
 0x143   :  { %5535 = vmax.xlane.f32.xlu1 %v5534_v12 }
 0x146   :  { %v2467_v13 = vpop.f32.mrb[26].mxu0 }
 0x147   :  { %v14378_v15 = vmul.f32 10.0, %v2467_v13  ;;  %v2546_v16 = vpop.f32.mrb[26].mxu1  ;;  %v11859_v18 = vpop.f32.mrb[27].mxu0 }
 0x148   :  { %v14380_v20 = vmul.f32 10.0, %v2546_v16  ;;  %v11866_v22 = vpop.f32.mrb[27].mxu1 }
 0x149   :  { %v5537_v23 = vsel %vm5458_vm3, %v14378_v15, -inf }
 0x14a   :  { %v5540_v25 = vsel %vm5458_vm3, %v14380_v20, -inf  ;;  %5538 = vmax.xlane.f32.xlu0 %v5537_v23 }
 0x14b   :  { %5541 = vmax.xlane.f32.xlu1 %v5540_v25 }
 0x14e   :  { %v2625_v26 = vpop.f32.mrb[28].mxu0 }
 0x14f   :  { %v14386_v28 = vmul.f32 10.0, %v2625_v26  ;;  %v2704_v29 = vpop.f32.mrb[28].mxu1  ;;  %v11873_v30 = vpop.f32.mrb[29].mxu0 }
 0x150   :  { %v14388_v31 = vmul.f32 10.0, %v2704_v29  ;;  %v11880_v33 = vpop.f32.mrb[29].mxu1 }
 0x151   :  { %v5543_v35 = vsel %vm5458_vm3, %v14386_v28, -inf }
 0x152   :  { %v5546_v38 = vsel %vm5458_vm3, %v14388_v31, -inf  ;;  %5544 = vmax.xlane.f32.xlu0 %v5543_v35 }
 0x153   :  { %5547 = vmax.xlane.f32.xlu1 %v5546_v38 }
 0x156   :  { %v2783_v39 = vpop.f32.mrb[30].mxu0 }
 0x157   :  { %v14394_v40 = vmul.f32 10.0, %v2783_v39  ;;  %v2862_v41 = vpop.f32.mrb[30].mxu1  ;;  %v11887_v43 = vpop.f32.mrb[31].mxu0 }
 0x158   :  { %v14396_v44 = vmul.f32 10.0, %v2862_v41  ;;  %v11894_v48 = vpop.f32.mrb[31].mxu1 }
 0x159   :  { %v5549_v49 = vsel %vm5458_vm3, %v14394_v40, -inf }
 0x15a   :  { %v5552_v51 = vsel %vm5458_vm3, %v14396_v44, -inf  ;;  %5550 = vmax.xlane.f32.xlu0 %v5549_v49 }
 0x15b   :  { %5553 = vmax.xlane.f32.xlu1 %v5552_v51 }
 0x15e   :  { %v2941_v3 = vpop.f32.mrb[32].mxu0 }
 0x15f   :  { %v14402_v54 = vmul.f32 10.0, %v2941_v3  ;;  %v3020_v55 = vpop.f32.mrb[32].mxu1  ;;  %v11901_v58 = vpop.f32.mrb[33].mxu0 }
 0x160   :  { %v14404_v59 = vmul.f32 10.0, %v3020_v55  ;;  %v11908_v61 = vpop.f32.mrb[33].mxu1 }
 0x161   :  { %v5555_v62 = vsel %vm5458_vm3, %v14402_v54, -inf }
 0x162   :  { %v5558_v2 = vsel %vm5458_vm3, %v14404_v59, -inf  ;;  %5556 = vmax.xlane.f32.xlu0 %v5555_v62 }
 0x163   :  { %5559 = vmax.xlane.f32.xlu1 %v5558_v2 }
 0x166   :  { %v3099_v5 = vpop.f32.mrb[34].mxu0 }
 0x167   :  { %v14410_v10 = vmul.f32 10.0, %v3099_v5  ;;  %v3178_v11 = vpop.f32.mrb[34].mxu1  ;;  %v11915_v12 = vpop.f32.mrb[35].mxu0 }
 0x168   :  { %v14412_v13 = vmul.f32 10.0, %v3178_v11  ;;  %v11922_v16 = vpop.f32.mrb[35].mxu1 }
 0x169   :  { %v5561_v18 = vsel %vm5458_vm3, %v14410_v10, -inf }
 0x16a   :  { %v5564_v22 = vsel %vm5458_vm3, %v14412_v13, -inf  ;;  %5562 = vmax.xlane.f32.xlu0 %v5561_v18 }
 0x16b   :  { %5565 = vmax.xlane.f32.xlu1 %v5564_v22 }
 0x16e   :  { %v3257_v23 = vpop.f32.mrb[36].mxu0 }
 0x16f   :  { %v14418_v25 = vmul.f32 10.0, %v3257_v23  ;;  %v3336_v26 = vpop.f32.mrb[36].mxu1  ;;  %v5461_v29 = vpop.xlane.xlu0 %5460 }
 0x170   :  { %v14420_v30 = vmul.f32 10.0, %v3336_v26  ;;  %v11936_v33 = vpop.f32.mrb[37].mxu1  ;;  %v5651_v35 = vsub.f32 %v14153_v47, %v5461_v29  ;;  %v11929_v38 = vpop.f32.mrb[37].mxu0 }
 0x171   :  { %v5567_v39 = vsel %vm5458_vm3, %v14418_v25, -inf }
 0x172   :  { %v5715_v41 = vmul.f32 1.442695, %v5651_v35  ;;  %v5570_v43 = vsel %vm5458_vm3, %v14420_v30, -inf  ;;  %5568 = vmax.xlane.f32.xlu0 %v5567_v39 }
 0x173   :  { %5571 = vmax.xlane.f32.xlu1 %v5570_v43  ;;  %v5464_v48 = vpop.xlane.xlu0 %5463 }
 0x174   :  { %13018 = vpow2.f32 %v5715_v41  ;;  %v5652_v49 = vsub.f32 %v14159_v53, %v5464_v48 }
 0x176   :  { %v5717_v51 = vmul.f32 1.442695, %v5652_v49  ;;  %v3415_v3 = vpop.f32.mrb[38].mxu0 }
 0x177   :  { %v14428_v55 = vmul.f32 10.0, %v3415_v3  ;;  %v3494_v58 = vpop.f32.mrb[38].mxu1  ;;  %v5467_v47 = vpop.xlane.xlu1 %5466 }
 0x178   :  { %13020 = vpow2.f32 %v5717_v51  ;;  %v14430_v61 = vmul.f32 10.0, %v3494_v58  ;;  %v11950_v62 = vpop.f32.mrb[39].mxu1  ;;  %v5653_v2 = vsub.f32 %v14190_v1, %v5467_v47  ;;  %v11943_v5 = vpop.f32.mrb[39].mxu0 }
 0x179   :  { %v5573_v11 = vsel %vm5458_vm3, %v14428_v55, -inf }
 0x17a   :  { %v5719_v12 = vmul.f32 1.442695, %v5653_v2  ;;  %v5576_v53 = vsel %vm5458_vm3, %v14430_v61, -inf  ;;  %5574 = vmax.xlane.f32.xlu0 %v5573_v11 }
 0x17b   :  { %5577 = vmax.xlane.f32.xlu1 %v5576_v53  ;;  %v5470_v16 = vpop.xlane.xlu1 %5469 }
 0x17c   :  { %13022 = vpow2.f32 %v5719_v12  ;;  %v5654_v18 = vsub.f32 %v14197_v8, %v5470_v16 }
 0x17e   :  { %v14438_v22 = vpop.eup %13018  ;;  %v5721_v23 = vmul.f32 1.442695, %v5654_v18  ;;  %v3573_v26 = vpop.f32.mrb[40].mxu0 }
 0x17f   :  { %v14440_v29 = vmul.f32 10.0, %v3573_v26  ;;  %v3652_v1 = vpop.f32.mrb[40].mxu1  ;;  %v5473_v33 = vpop.xlane.xlu0 %5472  ;;  %v5843_v35 = vsel %vm5458_vm3, %v14438_v22, 0.0 }
 0x180   :  { %13024 = vpow2.f32 %v5721_v23  ;;  %v11964_v38 = vpop.f32.mrb[41].mxu1  ;;  %v5476_v39 = vpop.xlane.xlu1 %5475  ;;  %v5655_v41 = vsub.f32 %v14228_v19, %v5473_v33  ;;  %5844 = vadd.xlane.f32.xlu0 %v5843_v35  ;;  %v14450_v3 = vmul.f32 10.0, %v3652_v1 }
 0x181   :  { %v5656_v43 = vsub.f32 %v14232_v21, %v5476_v39  ;;  %v11957_v8 = vpop.f32.mrb[41].mxu0  ;;  %v5579_v48 = vsel %vm5458_vm3, %v14440_v29, -inf }
 0x182   :  { %v14448_v49 = vpop.eup %13020  ;;  %v5723_v51 = vmul.f32 1.442695, %v5655_v41  ;;  %v5582_v11 = vsel %vm5458_vm3, %v14450_v3, -inf }
 0x183   :  { %v5725_v58 = vmul.f32 1.442695, %v5656_v43  ;;  %v5846_v47 = vsel %vm5458_vm3, %v14448_v49, 0.0 }
 0x184   :  { %13026 = vpow2.f32 %v5723_v51  ;;  %5847 = vadd.xlane.f32.xlu1 %v5846_v47  ;;  %5580 = vmax.xlane.f32.xlu0 %v5579_v48 }
 0x185   :  { %13028 = vpow2.f32 %v5725_v58 }
 0x186   :  { %v14454_v19 = vpop.eup %13022  ;;  %v3731_v21 = vpop.f32.mrb[42].mxu0 }
 0x187   :  { %v14456_v62 = vmul.f32 10.0, %v3731_v21  ;;  %v3810_v2 = vpop.f32.mrb[42].mxu1  ;;  %v5479_v5 = vpop.xlane.xlu0 %5478  ;;  %v5849_v12 = vsel %vm5458_vm3, %v14454_v19, 0.0 }
 0x188   :  { %v11978_v53 = vpop.f32.mrb[43].mxu1  ;;  %v5482_v16 = vpop.xlane.xlu1 %5481  ;;  %v5657_v18 = vsub.f32 %v14267_v34, %v5479_v5  ;;  %5583 = vmax.xlane.f32.xlu1 %v5582_v11  ;;  %5850 = vadd.xlane.f32.xlu0 %v5849_v12  ;;  %v14468_v38 = vmul.f32 10.0, %v3810_v2 }
 0x189   :  { %v5658_v23 = vsub.f32 %v14270_v37, %v5482_v16  ;;  %v11971_v26 = vpop.f32.mrb[43].mxu0  ;;  %v5585_v1 = vsel %vm5458_vm3, %v14456_v62, -inf }
 0x18a   :  { %v14466_v33 = vpop.eup %13024  ;;  %v5727_v35 = vmul.f32 1.442695, %v5657_v18  ;;  %v5588_v51 = vsel %vm5458_vm3, %v14468_v38, -inf }
 0x18b   :  { %v5729_v39 = vmul.f32 1.442695, %v5658_v23  ;;  %v5852_v41 = vsel %vm5458_vm3, %v14466_v33, 0.0 }
 0x18c   :  { %13030 = vpow2.f32 %v5727_v35  ;;  %5853 = vadd.xlane.f32.xlu1 %v5852_v41  ;;  %5586 = vmax.xlane.f32.xlu0 %v5585_v1 }
 0x18d   :  { %13032 = vpow2.f32 %v5729_v39 }
 0x18e   :  { %v14472_v34 = vpop.eup %13026  ;;  %v3889_v37 = vpop.f32.mrb[44].mxu0 }
 0x18f   :  { %v14474_v43 = vmul.f32 10.0, %v3889_v37  ;;  %v3968_v8 = vpop.f32.mrb[44].mxu1  ;;  %v5485_v48 = vpop.xlane.xlu0 %5484  ;;  %v5855_v58 = vsel %vm5458_vm3, %v14472_v34, 0.0 }
 0x190   :  { %v14480_v47 = vpop.eup %13028  ;;  %v11992_v21 = vpop.f32.mrb[45].mxu1  ;;  %v5659_v5 = vsub.f32 %v14293_v46, %v5485_v48  ;;  %5589 = vmax.xlane.f32.xlu1 %v5588_v51  ;;  %5856 = vadd.xlane.f32.xlu0 %v5855_v58  ;;  %v14486_v18 = vmul.f32 10.0, %v3968_v8 }
 0x191   :  { %v5488_v2 = vpop.xlane.xlu1 %5487  ;;  %v11985_v12 = vpop.f32.mrb[45].mxu0  ;;  %v5591_v53 = vsel %vm5458_vm3, %v14474_v43, -inf  ;;  %v5858_v26 = vsel %vm5458_vm3, %v14480_v47, 0.0 }
 0x192   :  { %v5660_v11 = vsub.f32 %v14296_v50, %v5488_v2  ;;  %v5731_v16 = vmul.f32 1.442695, %v5659_v5  ;;  %v5594_v41 = vsel %vm5458_vm3, %v14486_v18, -inf  ;;  %v210_v12 = vld [vmem:[%s15998_s2 + $0x8] sm:$0xff] }
 0x194   :  { %v5733_v23 = vmul.f32 1.442695, %v5660_v11  ;;  %13034 = vpow2.f32 %v5731_v16  ;;  %5859 = vadd.xlane.f32.xlu1 %v5858_v26  ;;  %5592 = vmax.xlane.f32.xlu0 %v5591_v53  ;;  %v209_v11 = vld [vmem:[%s15998_s2] sm:$0xff]  ;;  %v211_v26 = vld [vmem:[%s15998_s2 + $0x10] sm:$0xff] }
 0x195   :  { %v12824_v16 = vpack.c.bf16 %v210_v12, %v209_v11 }
 0x196   :  { %v14490_v1 = vpop.eup %13030  ;;  %13036 = vpow2.f32 %v5733_v23  ;;  %v4047_v46 = vpop.f32.mrb[46].mxu0 }
 0x197   :  { %v14492_v35 = vmul.f32 10.0, %v4047_v46  ;;  %v4126_v50 = vpop.f32.mrb[46].mxu1  ;;  %v5491_v39 = vpop.xlane.xlu0 %5490  ;;  %v5861_v37 = vsel %vm5458_vm3, %v14490_v1, 0.0  ;;  %12825 = vmatpush3.bf16.msra.mxu0 %v12824_v16  ;;  %v212_v46 = vld [vmem:[%s15998_s2 + $0x18] sm:$0xff] }
 0x198   :  { %v14498_v8 = vpop.eup %13032  ;;  %v12006_v48 = vpop.f32.mrb[47].mxu1  ;;  %v5661_v58 = vsub.f32 %v14314_v57, %v5491_v39  ;;  %5595 = vmax.xlane.f32.xlu1 %v5594_v41  ;;  %5862 = vadd.xlane.f32.xlu0 %v5861_v37  ;;  %v14510_v23 = vmul.f32 10.0, %v4126_v50  ;;  %v12827_v41 = vpack.c.bf16 %v212_v46, %v211_v26 }
 0x199   :  { %v5494_v51 = vpop.xlane.xlu1 %5493  ;;  %v11999_v2 = vpop.f32.mrb[47].mxu0  ;;  %v5597_v5 = vsel %vm5458_vm3, %v14492_v35, -inf  ;;  %12829 = vmatprep.subr.bf16.mxu0 %v16001_v0 }
 0x19a   :  { %v5662_v21 = vsub.f32 %v14316_v60, %v5494_v51  ;;  %v5735_v53 = vmul.f32 1.442695, %v5661_v58  ;;  %v5864_v60 = vsel %vm5458_vm3, %v14498_v8, 0.0  ;;  %v5600_v58 = vsel %vm5458_vm3, %v14510_v23, -inf  ;;  %12828 = vmatpush3.bf16.msra.mxu1 %v12827_v41 }
 0x19b   :  { %12832 = vmatprep.subr.bf16.mxu1 %v16001_v0 }
 0x19c   :  { %v5737_v57 = vmul.f32 1.442695, %v5662_v21  ;;  %13038 = vpow2.f32 %v5735_v53  ;;  %5865 = vadd.xlane.f32.xlu1 %v5864_v60  ;;  %5598 = vmax.xlane.f32.xlu0 %v5597_v5 }
 0x19e   :  { %v14520_v39 = vpop.eup %13034  ;;  %13040 = vpow2.f32 %v5737_v57  ;;  %v4205_v50 = vpop.f32.mrb[48].mxu0 }
 0x19f   :  { %v14523_v37 = vmul.f32 10.0, %v4205_v50  ;;  %v4284_v48 = vpop.f32.mrb[48].mxu1  ;;  %v5497_v51 = vpop.xlane.xlu0 %5496  ;;  %v5867_v21 = vsel %vm5458_vm3, %v14520_v39, 0.0 }
 0x1a0   :  { %v14529_v2 = vpop.eup %13036  ;;  %v12020_v5 = vpop.f32.mrb[49].mxu1  ;;  %v5663_v12 = vsub.f32 %v14322_v4, %v5497_v51  ;;  %5601 = vmax.xlane.f32.xlu1 %v5600_v58  ;;  %5868 = vadd.xlane.f32.xlu0 %v5867_v21  ;;  %v14536_v26 = vmul.f32 10.0, %v4284_v48 }
 0x1a1   :  { %v5500_v11 = vpop.xlane.xlu1 %5499  ;;  %v12013_v16 = vpop.f32.mrb[49].mxu0  ;;  %v5603_v57 = vsel %vm5458_vm3, %v14523_v37, -inf  ;;  %v5870_v50 = vsel %vm5458_vm3, %v14529_v2, 0.0 }
 0x1a2   :  { %v5664_v53 = vsub.f32 %v14324_v9, %v5500_v11  ;;  %v5739_v60 = vmul.f32 1.442695, %v5663_v12  ;;  %v5606_v21 = vsel %vm5458_vm3, %v14536_v26, -inf }
 0x1a4   :  { %v5741_v46 = vmul.f32 1.442695, %v5664_v53  ;;  %13042 = vpow2.f32 %v5739_v60  ;;  %5871 = vadd.xlane.f32.xlu1 %v5870_v50  ;;  %5604 = vmax.xlane.f32.xlu0 %v5603_v57 }
 0x1a6   :  { %v14540_v4 = vpop.eup %13038  ;;  %13044 = vpow2.f32 %v5741_v46  ;;  %v4363_v9 = vpop.f32.mrb[50].mxu0 }
 0x1a7   :  { %v14542_v51 = vmul.f32 10.0, %v4363_v9  ;;  %v4442_v58 = vpop.f32.mrb[50].mxu1  ;;  %v5503_v41 = vpop.xlane.xlu0 %5502  ;;  %v5873_v48 = vsel %vm5458_vm3, %v14540_v4, 0.0 }
 0x1a8   :  { %v14548_v5 = vpop.eup %13040  ;;  %v12034_v11 = vpop.f32.mrb[51].mxu1  ;;  %v5665_v53 = vsub.f32 %v14330_v14, %v5503_v41  ;;  %5607 = vmax.xlane.f32.xlu1 %v5606_v21  ;;  %5874 = vadd.xlane.f32.xlu0 %v5873_v48  ;;  %v14554_v50 = vmul.f32 10.0, %v4442_v58 }
 0x1a9   :  { %v5506_v12 = vpop.xlane.xlu1 %5505  ;;  %v12027_v57 = vpop.f32.mrb[51].mxu0  ;;  %v5609_v60 = vsel %vm5458_vm3, %v14542_v51, -inf  ;;  %v5876_v0 = vsel %vm5458_vm3, %v14548_v5, 0.0 }
 0x1aa   :  { %v5666_v16 = vsub.f32 %v14332_v17, %v5506_v12  ;;  %v5743_v46 = vmul.f32 1.442695, %v5665_v53  ;;  %v5612_v48 = vsel %vm5458_vm3, %v14554_v50, -inf }
 0x1ac   :  { %v5745_v9 = vmul.f32 1.442695, %v5666_v16  ;;  %13046 = vpow2.f32 %v5743_v46  ;;  %5877 = vadd.xlane.f32.xlu1 %v5876_v0  ;;  %5610 = vmax.xlane.f32.xlu0 %v5609_v60 }
 0x1ae   :  { %v14558_v11 = vpop.eup %13042  ;;  %13048 = vpow2.f32 %v5745_v9  ;;  %v4521_v14 = vpop.f32.mrb[52].mxu0 }
 0x1af   :  { %16021 = vst [vmem:[#allocation2_spill] sm:$0xff] %v14558_v11  ;;  %v14560_v41 = vmul.f32 10.0, %v4521_v14  ;;  %v4600_v17 = vpop.f32.mrb[52].mxu1  ;;  %v5509_v21 = vpop.xlane.xlu0 %5508  ;;  %v5879_v58 = vsel %vm5458_vm3, %v14558_v11, 0.0 }
 0x1b0   :  { %v14566_v12 = vpop.eup %13044  ;;  %v12048_v53 = vpop.f32.mrb[53].mxu1  ;;  %v5667_v0 = vsub.f32 %v14338_v24, %v5509_v21  ;;  %5613 = vmax.xlane.f32.xlu1 %v5612_v48  ;;  %5880 = vadd.xlane.f32.xlu0 %v5879_v58  ;;  %v14572_v14 = vmul.f32 10.0, %v4600_v17 }
 0x1b1   :  { %16022 = vst [vmem:[#allocation3_spill] sm:$0xff] %v14566_v12  ;;  %v5512_v16 = vpop.xlane.xlu1 %5511  ;;  %v12041_v60 = vpop.f32.mrb[53].mxu0  ;;  %v5615_v46 = vsel %vm5458_vm3, %v14560_v41, -inf  ;;  %v5882_v11 = vsel %vm5458_vm3, %v14566_v12, 0.0 }
 0x1b2   :  { %v5668_v57 = vsub.f32 %v14340_v27, %v5512_v16  ;;  %v5747_v9 = vmul.f32 1.442695, %v5667_v0  ;;  %v5618_v58 = vsel %vm5458_vm3, %v14572_v14, -inf }
 0x1b4   :  { %v5749_v7 = vmul.f32 1.442695, %v5668_v57  ;;  %13050 = vpow2.f32 %v5747_v9  ;;  %5883 = vadd.xlane.f32.xlu1 %v5882_v11  ;;  %5616 = vmax.xlane.f32.xlu0 %v5615_v46 }
 0x1b6   :  { %v14576_v53 = vpop.eup %13046  ;;  %13052 = vpow2.f32 %v5749_v7  ;;  %v4679_v24 = vpop.f32.mrb[54].mxu0 }
 0x1b7   :  { %16023 = vst [vmem:[#allocation4_spill] sm:$0xff] %v14576_v53  ;;  %v14578_v21 = vmul.f32 10.0, %v4679_v24  ;;  %v4758_v27 = vpop.f32.mrb[54].mxu1  ;;  %v5515_v48 = vpop.xlane.xlu0 %5514  ;;  %v5885_v17 = vsel %vm5458_vm3, %v14576_v53, 0.0 }
 0x1b8   :  { %v14584_v16 = vpop.eup %13048  ;;  %v12062_v0 = vpop.f32.mrb[55].mxu1  ;;  %v5669_v11 = vsub.f32 %v14346_v32, %v5515_v48  ;;  %5619 = vmax.xlane.f32.xlu1 %v5618_v58  ;;  %5886 = vadd.xlane.f32.xlu0 %v5885_v17  ;;  %v14590_v24 = vmul.f32 10.0, %v4758_v27 }
 0x1b9   :  { %16024 = vst [vmem:[#allocation5_spill] sm:$0xff] %v14578_v21  ;;  %16025 = vst [vmem:[#allocation6_spill] sm:$0xff] %v14584_v16  ;;  %v5518_v57 = vpop.xlane.xlu1 %5517  ;;  %v12055_v60 = vpop.f32.mrb[55].mxu0  ;;  %v5621_v46 = vsel %vm5458_vm3, %v14578_v21, -inf  ;;  %v5888_v53 = vsel %vm5458_vm3, %v14584_v16, 0.0 }
 0x1ba   :  { %v5670_v7 = vsub.f32 %v14348_v36, %v5518_v57  ;;  %v5751_v9 = vmul.f32 1.442695, %v5669_v11  ;;  %16026 = vst [vmem:[#allocation7_spill] sm:$0xff] %v14590_v24  ;;  %v5624_v58 = vsel %vm5458_vm3, %v14590_v24, -inf }
 0x1bc   :  { %v5753_v12 = vmul.f32 1.442695, %v5670_v7  ;;  %13054 = vpow2.f32 %v5751_v9  ;;  %5889 = vadd.xlane.f32.xlu1 %v5888_v53  ;;  %5622 = vmax.xlane.f32.xlu0 %v5621_v46 }
 0x1be   :  { %v14594_v0 = vpop.eup %13050  ;;  %13056 = vpow2.f32 %v5753_v12  ;;  %v4837_v32 = vpop.f32.mrb[56].mxu0 }
 0x1bf   :  { %16027 = vst [vmem:[#allocation8_spill] sm:$0xff] %v14594_v0  ;;  %v14596_v48 = vmul.f32 10.0, %v4837_v32  ;;  %v4916_v36 = vpop.f32.mrb[56].mxu1  ;;  %v5891_v27 = vsel %vm5458_vm3, %v14594_v0, 0.0  ;;  %v12069_v53 = vpop.f32.mrb[57].mxu0 }
 0x1c0   :  { %v14602_v17 = vpop.eup %13052  ;;  %v12076_v57 = vpop.f32.mrb[57].mxu1  ;;  %5625 = vmax.xlane.f32.xlu1 %v5624_v58  ;;  %5892 = vadd.xlane.f32.xlu0 %v5891_v27  ;;  %v14606_v12 = vmul.f32 10.0, %v4916_v36 }
 0x1c1   :  { %16028 = vst [vmem:[#allocation9_spill] sm:$0xff] %v14596_v48  ;;  %16029 = vst [vmem:[#allocation10_spill] sm:$0xff] %v14602_v17  ;;  %v5627_v11 = vsel %vm5458_vm3, %v14596_v48, -inf  ;;  %v5894_v7 = vsel %vm5458_vm3, %v14602_v17, 0.0  ;;  %v5521_v60 = vpop.xlane.xlu0 %5520  ;;  %v5524_v9 = vpop.xlane.xlu1 %5523 }
 0x1c2   :  { %16030 = vst [vmem:[#allocation11_spill] sm:$0xff] %v14606_v12  ;;  %v5630_v27 = vsel %vm5458_vm3, %v14606_v12, -inf  ;;  %v5671_v53 = vsub.f32 %v14354_v42, %v5521_v60 }
 0x1c4   :  { %5895 = vadd.xlane.f32.xlu1 %v5894_v7  ;;  %5628 = vmax.xlane.f32.xlu0 %v5627_v11  ;;  %v5672_v11 = vsub.f32 %v14356_v45, %v5524_v9  ;;  %v5755_v12 = vmul.f32 1.442695, %v5671_v53 }
 0x1c6   :  { %v14610_v46 = vpop.eup %13054  ;;  %v4995_v32 = vpop.f32.mrb[58].mxu0  ;;  %v5757_v42 = vmul.f32 1.442695, %v5672_v11  ;;  %13058 = vpow2.f32 %v5755_v12 }
 0x1c7   :  { %16031 = vst [vmem:[#allocation12_spill] sm:$0xff] %v14610_v46  ;;  %v14612_v0 = vmul.f32 10.0, %v4995_v32  ;;  %v5074_v58 = vpop.f32.mrb[58].mxu1  ;;  %v5897_v36 = vsel %vm5458_vm3, %v14610_v46, 0.0  ;;  %v5527_v17 = vpop.xlane.xlu0 %5526 }
 0x1c8   :  { %v14618_v57 = vpop.eup %13056  ;;  %v12090_v7 = vpop.f32.mrb[59].mxu1  ;;  %5631 = vmax.xlane.f32.xlu1 %v5630_v27  ;;  %5898 = vadd.xlane.f32.xlu0 %v5897_v36  ;;  %v14624_v24 = vmul.f32 10.0, %v5074_v58  ;;  %v5673_v21 = vsub.f32 %v14362_v52, %v5527_v17  ;;  %13060 = vpow2.f32 %v5757_v42 }
 0x1c9   :  { %16032 = vst [vmem:[#allocation13_spill] sm:$0xff] %v14618_v57  ;;  %v12083_v16 = vpop.f32.mrb[59].mxu0  ;;  %v5633_v32 = vsel %vm5458_vm3, %v14612_v0, -inf  ;;  %v5530_v48 = vpop.xlane.xlu1 %5529  ;;  %v5900_v46 = vsel %vm5458_vm3, %v14618_v57, 0.0 }
 0x1ca   :  { %v5674_v60 = vsub.f32 %v14364_v56, %v5530_v48  ;;  %v5636_v58 = vsel %vm5458_vm3, %v14624_v24, -inf  ;;  %v5759_v36 = vmul.f32 1.442695, %v5673_v21 }
 0x1cc   :  { %5901 = vadd.xlane.f32.xlu1 %v5900_v46  ;;  %5634 = vmax.xlane.f32.xlu0 %v5633_v32  ;;  %v5761_v17 = vmul.f32 1.442695, %v5674_v60  ;;  %13062 = vpow2.f32 %v5759_v36 }
 0x1ce   :  { %v5153_v45 = vpop.f32.mrb[60].mxu0  ;;  %13064 = vpow2.f32 %v5761_v17 }
 0x1cf   :  { %v14630_v9 = vmul.f32 10.0, %v5153_v45  ;;  %v5232_v16 = vpop.f32.mrb[60].mxu1  ;;  %v5533_v27 = vpop.xlane.xlu0 %5532 }
 0x1d0   :  { %v14634_v7 = vmul.f32 10.0, %v5232_v16  ;;  %v12104_v53 = vpop.f32.mrb[61].mxu1  ;;  %v5536_v57 = vpop.xlane.xlu1 %5535  ;;  %v5675_v52 = vsub.f32 %v14370_v63, %v5533_v27  ;;  %5637 = vmax.xlane.f32.xlu1 %v5636_v58 }
 0x1d1   :  { %v5676_v56 = vsub.f32 %v14372_v6, %v5536_v57  ;;  %v12097_v48 = vpop.f32.mrb[61].mxu0  ;;  %v5639_v46 = vsel %vm5458_vm3, %v14630_v9, -inf  ;;  %v14650_v53 = vpop.eup %13058 }
 0x1d2   :  { %5640 = vmax.xlane.f32.xlu0 %v5639_v46  ;;  %v5642_v12 = vsel %vm5458_vm3, %v14634_v7, -inf  ;;  %v5763_v21 = vmul.f32 1.442695, %v5675_v52 }
 0x1d3   :  { %v5765_v11 = vmul.f32 1.442695, %v5676_v56  ;;  %v14654_v56 = vpop.eup %13060 }
 0x1d4   :  { %5643 = vmax.xlane.f32.xlu1 %v5642_v12  ;;  %13066 = vpow2.f32 %v5763_v21  ;;  %v5906_v46 = vsel %vm5458_vm3, %v14654_v56, 0.0 }
 0x1d5   :  { %13068 = vpow2.f32 %v5765_v11 }
 0x1d6   :  { %v5311_v32 = vpop.f32.mrb[62].mxu0 }
 0x1d7   :  { %v14642_v63 = vmul.f32 10.0, %v5311_v32  ;;  %v5390_v42 = vpop.f32.mrb[62].mxu1  ;;  %v5539_v60 = vpop.xlane.xlu0 %5538 }
 0x1d8   :  { %v14644_v6 = vmul.f32 10.0, %v5390_v42  ;;  %v12118_v57 = vpop.f32.mrb[63].mxu1  ;;  %v5542_v45 = vpop.xlane.xlu1 %5541  ;;  %v5677_v16 = vsub.f32 %v14378_v15, %v5539_v60  ;;  %v5903_v15 = vsel %vm5458_vm3, %v14650_v53, 0.0 }
 0x1d9   :  { %v5678_v27 = vsub.f32 %v14380_v20, %v5542_v45  ;;  %v12111_v58 = vpop.f32.mrb[63].mxu0  ;;  %v5645_v36 = vsel %vm5458_vm3, %v14642_v63, -inf  ;;  %v14658_v20 = vpop.eup %13062 }
 0x1da   :  { %v5767_v52 = vmul.f32 1.442695, %v5677_v16  ;;  %v5648_v17 = vsel %vm5458_vm3, %v14644_v6, -inf  ;;  %5646 = vmax.xlane.f32.xlu0 %v5645_v36  ;;  %v14662_v12 = vpop.eup %13064  ;;  %v5909_v60 = vsel %vm5458_vm3, %v14658_v20, 0.0 }
 0x1db   :  { %v5769_v48 = vmul.f32 1.442695, %v5678_v27  ;;  %5649 = vmax.xlane.f32.xlu1 %v5648_v17  ;;  %v5912_v16 = vsel %vm5458_vm3, %v14662_v12, 0.0 }
 0x1dc   :  { %13070 = vpow2.f32 %v5767_v52 }
 0x1dd   :  { %13072 = vpow2.f32 %v5769_v48 }
 0x1de   :  { %5904 = vadd.xlane.f32.xlu0 %v5903_v15  ;;  %v14668_v57 = vpop.eup %13066 }
 0x1df   :  { %5907 = vadd.xlane.f32.xlu1 %v5906_v46  ;;  %v5545_v21 = vpop.xlane.xlu0 %5544  ;;  %v14672_v27 = vpop.eup %13068 }
 0x1e0   :  { %v5548_v11 = vpop.xlane.xlu1 %5547  ;;  %v5679_v32 = vsub.f32 %v14386_v28, %v5545_v21  ;;  %v5915_v28 = vsel %vm5458_vm3, %v14668_v57, 0.0  ;;  %v5918_v36 = vsel %vm5458_vm3, %v14672_v27, 0.0 }
 0x1e1   :  { %v5680_v42 = vsub.f32 %v14388_v31, %v5548_v11 }
 0x1e2   :  { %v5771_v45 = vmul.f32 1.442695, %v5679_v32  ;;  %5910 = vadd.xlane.f32.xlu0 %v5909_v60 }
 0x1e3   :  { %v5773_v58 = vmul.f32 1.442695, %v5680_v42  ;;  %5913 = vadd.xlane.f32.xlu1 %v5912_v16 }
 0x1e4   :  { %13074 = vpow2.f32 %v5771_v45 }
 0x1e5   :  { %13076 = vpow2.f32 %v5773_v58 }
 0x1e6   :  { %v14676_v31 = vpop.eup %13070  ;;  %5916 = vadd.xlane.f32.xlu0 %v5915_v28 }
 0x1e7   :  { %v14680_v52 = vpop.eup %13072  ;;  %5919 = vadd.xlane.f32.xlu1 %v5918_v36  ;;  %v5551_v17 = vpop.xlane.xlu0 %5550  ;;  %v5921_v21 = vsel %vm5458_vm3, %v14676_v31, 0.0 }
 0x1e8   :  { %v5554_v48 = vpop.xlane.xlu1 %5553  ;;  %v5681_v15 = vsub.f32 %v14394_v40, %v5551_v17  ;;  %v5924_v32 = vsel %vm5458_vm3, %v14680_v52, 0.0 }
 0x1e9   :  { %v5682_v46 = vsub.f32 %v14396_v44, %v5554_v48 }
 0x1ea   :  { %v5775_v11 = vmul.f32 1.442695, %v5681_v15  ;;  %5922 = vadd.xlane.f32.xlu0 %v5921_v21 }
 0x1eb   :  { %v5777_v42 = vmul.f32 1.442695, %v5682_v46  ;;  %5925 = vadd.xlane.f32.xlu1 %v5924_v32 }
 0x1ec   :  { %13078 = vpow2.f32 %v5775_v11 }
 0x1ed   :  { %13080 = vpow2.f32 %v5777_v42 }
 0x1ee   :  { %v14688_v60 = vpop.eup %13074 }
 0x1ef   :  { %v14690_v45 = vpop.eup %13076  ;;  %v5557_v16 = vpop.xlane.xlu0 %5556  ;;  %v5927_v40 = vsel %vm5458_vm3, %v14688_v60, 0.0 }
 0x1f0   :  { %v5560_v44 = vpop.xlane.xlu1 %5559  ;;  %v5683_v58 = vsub.f32 %v14402_v54, %v5557_v16  ;;  %v5930_v28 = vsel %vm5458_vm3, %v14690_v45, 0.0  ;;  %5928 = vadd.xlane.f32.xlu0 %v5927_v40 }
 0x1f1   :  { %v5684_v36 = vsub.f32 %v14404_v59, %v5560_v44  ;;  %5931 = vadd.xlane.f32.xlu1 %v5930_v28 }
 0x1f2   :  { %v5779_v17 = vmul.f32 1.442695, %v5683_v58 }
 0x1f3   :  { %v5781_v48 = vmul.f32 1.442695, %v5684_v36 }
 0x1f4   :  { %13082 = vpow2.f32 %v5779_v17 }
 0x1f5   :  { %13084 = vpow2.f32 %v5781_v48 }
 0x1f6   :  { %v14698_v15 = vpop.eup %13078 }
 0x1f7   :  { %v14700_v46 = vpop.eup %13080  ;;  %v5563_v21 = vpop.xlane.xlu0 %5562  ;;  %v5933_v11 = vsel %vm5458_vm3, %v14698_v15, 0.0 }
 0x1f8   :  { %v5566_v54 = vpop.xlane.xlu1 %5565  ;;  %v5685_v32 = vsub.f32 %v14410_v10, %v5563_v21  ;;  %v5936_v42 = vsel %vm5458_vm3, %v14700_v46, 0.0  ;;  %5934 = vadd.xlane.f32.xlu0 %v5933_v11 }
 0x1f9   :  { %v5686_v59 = vsub.f32 %v14412_v13, %v5566_v54  ;;  %5937 = vadd.xlane.f32.xlu1 %v5936_v42 }
 0x1fa   :  { %v5783_v16 = vmul.f32 1.442695, %v5685_v32 }
 0x1fb   :  { %v5785_v40 = vmul.f32 1.442695, %v5686_v59 }
 0x1fc   :  { %13086 = vpow2.f32 %v5783_v16 }
 0x1fd   :  { %13088 = vpow2.f32 %v5785_v40 }
 0x1fe   :  { %v14708_v44 = vpop.eup %13082 }
 0x1ff   :  { %v14710_v58 = vpop.eup %13084  ;;  %v5569_v28 = vpop.xlane.xlu0 %5568  ;;  %v5939_v36 = vsel %vm5458_vm3, %v14708_v44, 0.0 }
 0x200   :  { %v5572_v10 = vpop.xlane.xlu1 %5571  ;;  %v5687_v17 = vsub.f32 %v14418_v25, %v5569_v28  ;;  %v5942_v48 = vsel %vm5458_vm3, %v14710_v58, 0.0  ;;  %5940 = vadd.xlane.f32.xlu0 %v5939_v36 }
 0x201   :  { %v5688_v13 = vsub.f32 %v14420_v30, %v5572_v10  ;;  %5943 = vadd.xlane.f32.xlu1 %v5942_v48 }
 0x202   :  { %v5787_v21 = vmul.f32 1.442695, %v5687_v17 }
 0x203   :  { %v5789_v11 = vmul.f32 1.442695, %v5688_v13 }
 0x204   :  { %13090 = vpow2.f32 %v5787_v21 }
 0x205   :  { %13092 = vpow2.f32 %v5789_v11 }
 0x206   :  { %v14718_v54 = vpop.eup %13086 }
 0x207   :  { %v14720_v32 = vpop.eup %13088  ;;  %v5575_v42 = vpop.xlane.xlu0 %5574  ;;  %v5945_v59 = vsel %vm5458_vm3, %v14718_v54, 0.0 }
 0x208   :  { %v5578_v25 = vpop.xlane.xlu1 %5577  ;;  %v5689_v16 = vsub.f32 %v14428_v55, %v5575_v42  ;;  %v5948_v40 = vsel %vm5458_vm3, %v14720_v32, 0.0  ;;  %5946 = vadd.xlane.f32.xlu0 %v5945_v59 }
 0x209   :  { %v5690_v30 = vsub.f32 %v14430_v61, %v5578_v25  ;;  %5949 = vadd.xlane.f32.xlu1 %v5948_v40 }
 0x20a   :  { %v5791_v28 = vmul.f32 1.442695, %v5689_v16 }
 0x20b   :  { %v5793_v36 = vmul.f32 1.442695, %v5690_v30 }
 0x20c   :  { %13094 = vpow2.f32 %v5791_v28 }
 0x20d   :  { %13096 = vpow2.f32 %v5793_v36  ;;  %v5845_v10 = vpop.xlane.xlu0 %5844  ;;  %v213_v36 = vld [vmem:[%s15998_s2 + $0x20] sm:$0xff] }
 0x20e   :  { %v14728_v17 = vpop.eup %13090  ;;  %13098 = vrcp.f32 %v5845_v10 }
 0x20f   :  { %v14730_v48 = vpop.eup %13092  ;;  %v5951_v55 = vsel %vm5458_vm3, %v14728_v17, 0.0 }
 0x210   :  { %v5954_v13 = vsel %vm5458_vm3, %v14730_v48, 0.0  ;;  %5952 = vadd.xlane.f32.xlu0 %v5951_v55 }
 0x211   :  { %5955 = vadd.xlane.f32.xlu1 %v5954_v13  ;;  %v5848_v61 = vpop.xlane.xlu1 %5847  ;;  %v5581_v21 = vpop.xlane.xlu0 %5580 }
 0x212   :  { %13100 = vrcp.f32 %v5848_v61  ;;  %v5691_v11 = vsub.f32 %v14440_v29, %v5581_v21  ;;  %v214_v29 = vld [vmem:[%s15998_s2 + $0x28] sm:$0xff] }
 0x214   :  { %v5795_v42 = vmul.f32 1.442695, %v5691_v11 }
 0x215   :  { %v5584_v59 = vpop.xlane.xlu1 %5583  ;;  %v5851_v25 = vpop.xlane.xlu0 %5850 }
 0x216   :  { %v14737_v16 = vpop.eup %13094  ;;  %13102 = vpow2.f32 %v5795_v42  ;;  %v5692_v40 = vsub.f32 %v14450_v3, %v5584_v59  ;;  %v6163_v3 = vld [vmem:[%s15999_s3] sm:$0xf]  ;;  %v12830_v59 = vpack.c.bf16 %v214_v29, %v213_v36 }
 0x217   :  { %16033 = vst [vmem:[#allocation14_spill] sm:$0xff] %v14737_v16  ;;  %v14740_v30 = vpop.eup %13096  ;;  %13104 = vrcp.f32 %v5851_v25  ;;  %v5957_v28 = vsel %vm5458_vm3, %v14737_v16, 0.0 }
 0x218   :  { %16034 = vst [vmem:[#allocation15_spill] sm:$0xff] %v14740_v30  ;;  %v13099_v10 = vpop.eup %13098  ;;  %v5797_v55 = vmul.f32 1.442695, %v5692_v40  ;;  %v5960_v13 = vsel %vm5458_vm3, %v14740_v30, 0.0  ;;  %5958 = vadd.xlane.f32.xlu0 %v5957_v28  ;;  %v215_v40 = vld [vmem:[%s15998_s2 + $0x30] sm:$0xff]  ;;  %v216_v28 = vld [vmem:[%s15998_s2 + $0x38] sm:$0xff] }
 0x219   :  { %v6036_v61 = vmul.f32 %v13099_v10, %v14438_v22  ;;  %5961 = vadd.xlane.f32.xlu1 %v5960_v13  ;;  %v5854_v21 = vpop.xlane.xlu1 %5853  ;;  %v5587_v11 = vpop.xlane.xlu0 %5586  ;;  %v6164_v22 = vld [vmem:[%s15999_s3 + $0x4] sm:$0xf]  ;;  %v12833_v13 = vpack.c.bf16 %v216_v28, %v215_v40 }
 0x21a   :  { %13106 = vpow2.f32 %v5797_v55  ;;  %v5693_v42 = vsub.f32 %v14456_v62, %v5587_v11  ;;  %v16035_v55 = vmov 0.0  }
 0x21b   :  { %13108 = vrcp.f32 %v5854_v21  ;;  %v6227_v25 = vmul.f32 %v6163_v3, %v6036_v61  ;;  %v16036_v61 = vmov 0.0|0.0  }
 0x21c   :  { %v13101_v30 = vpop.eup %13100  ;;  %v5799_v16 = vmul.f32 1.442695, %v5693_v42 }
 0x21d   :  { %v6038_v10 = vmul.f32 %v13101_v30, %v14448_v49  ;;  %v5590_v62 = vpop.xlane.xlu1 %5589  ;;  %12124 = vmatmul.mubr.msk.f32.vlgmr.msra.gmra.mrb[64].mxu0 %vm337_vm0, %v6227_v25  ;;  %v5857_v36 = vpop.xlane.xlu0 %5856  ;;  %v217_v49 = vld [vmem:[%s15998_s2 + $0x40] sm:$0xff]  ;;  %v6165_v25 = vld [vmem:[%s15999_s3 + $0x8] sm:$0xf] }
 0x21e   :  { %13110 = vpow2.f32 %v5799_v16  ;;  %v5694_v29 = vsub.f32 %v14468_v38, %v5590_v62  ;;  %12831 = vmatpush3.bf16.msra.mxu0 %v12830_v59  ;;  %12137 = vmatprep.mubr.msk.f32.mxu0 %vm13275_vm2, %v16035_v55  ;;  %v218_v38 = vld [vmem:[%s15998_s2 + $0x48] sm:$0xff] }
 0x21f   :  { %13112 = vrcp.f32 %v5857_v36  ;;  %v6228_v3 = vmul.f32 %v6164_v22, %v6038_v10  ;;  %12835 = vmatprep.subr.bf16.mxu0 %v16036_v61  ;;  %v12836_v22 = vpack.c.bf16 %v218_v38, %v217_v49  ;;  %v6166_v49 = vld [vmem:[%s15999_s3 + $0xc] sm:$0xf] }
 0x220   :  { %v14772_v21 = vpop.eup %13102  ;;  %v5801_v11 = vmul.f32 1.442695, %v5694_v29 }
 0x221   :  { %v13105_v16 = vpop.eup %13104  ;;  %12131 = vmatmul.mubr.msk.f32.vlgmr.msra.gmra.mrb[64].mxu1 %vm337_vm0, %v6228_v3  ;;  %v5860_v30 = vpop.xlane.xlu1 %5859  ;;  %v5963_v59 = vsel %vm5458_vm3, %v14772_v21, 0.0 }
 0x222   :  { %v5593_v42 = vpop.xlane.xlu0 %5592  ;;  %v6040_v40 = vmul.f32 %v13105_v16, %v14454_v19  ;;  %13114 = vpow2.f32 %v5801_v11  ;;  %5964 = vadd.xlane.f32.xlu0 %v5963_v59  ;;  %12834 = vmatpush3.bf16.msra.mxu1 %v12833_v13  ;;  %v219_v19 = vld [vmem:[%s15998_s2 + $0x50] sm:$0xff] }
 0x223   :  { %v5695_v28 = vsub.f32 %v14474_v43, %v5593_v42  ;;  %13116 = vrcp.f32 %v5860_v30  ;;  %12144 = vmatprep.mubr.msk.f32.mxu1 %vm13275_vm2, %v16035_v55  ;;  %12838 = vmatprep.subr.bf16.mxu1 %v16036_v61  ;;  %v220_v43 = vld [vmem:[%s15998_s2 + $0x58] sm:$0xff] }
 0x224   :  { %v14791_v10 = vpop.eup %13106  ;;  %v6229_v36 = vmul.f32 %v6165_v25, %v6040_v40  ;;  %v12839_v30 = vpack.c.bf16 %v220_v43, %v219_v19 }
 0x225   :  { %v5803_v62 = vmul.f32 1.442695, %v5695_v28  ;;  %v13109_v29 = vpop.eup %13108  ;;  %v5596_v13 = vpop.xlane.xlu1 %5595  ;;  %v5966_v11 = vsel %vm5458_vm3, %v14791_v10, 0.0 }
 0x226   :  { %v5863_v3 = vpop.xlane.xlu0 %5862  ;;  %v6042_v38 = vmul.f32 %v13109_v29, %v14466_v33  ;;  %v5696_v16 = vsub.f32 %v14486_v18, %v5596_v13  ;;  %12138 = vmatmul.mubr.msk.f32.vlgmr.msra.gmra.mrb[66].mxu0 %vm337_vm0, %v6229_v36  ;;  %5967 = vadd.xlane.f32.xlu1 %v5966_v11  ;;  %v221_v33 = vld [vmem:[%s15998_s2 + $0x60] sm:$0xff]  ;;  %v222_v18 = vld [vmem:[%s15998_s2 + $0x68] sm:$0xff]  ;;  %v6167_v36 = vld [vmem:[%s15999_s3 + $0x10] sm:$0xf] }
 0x227   :  { %13118 = vpow2.f32 %v5803_v62  ;;  %12837 = vmatpush3.bf16.msra.mxu0 %v12836_v22  ;;  %12151 = vmatprep.mubr.msk.f32.mxu0 %vm13275_vm2, %v16035_v55  ;;  %v12842_v29 = vpack.c.bf16 %v222_v18, %v221_v33 }
 0x228   :  { %13120 = vrcp.f32 %v5863_v3  ;;  %v14809_v42 = vpop.eup %13110  ;;  %v5805_v59 = vmul.f32 1.442695, %v5696_v16  ;;  %v6230_v25 = vmul.f32 %v6166_v49, %v6042_v38  ;;  %12841 = vmatprep.subr.bf16.mxu0 %v16036_v61 }
 0x229   :  { %v13113_v40 = vpop.eup %13112  ;;  %v5866_v28 = vpop.xlane.xlu1 %5865  ;;  %v5969_v62 = vsel %vm5458_vm3, %v14809_v42, 0.0 }
 0x22a   :  { %v5599_v22 = vpop.xlane.xlu0 %5598  ;;  %v6044_v19 = vmul.f32 %v13113_v40, %v14472_v34  ;;  %13122 = vpow2.f32 %v5805_v59  ;;  %12145 = vmatmul.mubr.msk.f32.vlgmr.msra.gmra.mrb[66].mxu1 %vm337_vm0, %v6230_v25  ;;  %5970 = vadd.xlane.f32.xlu0 %v5969_v62  ;;  %v223_v34 = vld [vmem:[%s15998_s2 + $0x70] sm:$0xff] }
 0x22b   :  { %v5697_v43 = vsub.f32 %v14492_v35, %v5599_v22  ;;  %13124 = vrcp.f32 %v5866_v28  ;;  %12840 = vmatpush3.bf16.msra.mxu1 %v12839_v30  ;;  %12158 = vmatprep.mubr.msk.f32.mxu1 %vm13275_vm2, %v16035_v55  ;;  %v224_v35 = vld [vmem:[%s15998_s2 + $0x78] sm:$0xff]  ;;  %v6168_v59 = vld [vmem:[%s15999_s3 + $0x14] sm:$0xf] }
 0x22c   :  { %v14828_v13 = vpop.eup %13114  ;;  %v6231_v11 = vmul.f32 %v6167_v36, %v6044_v19  ;;  %12844 = vmatprep.subr.bf16.mxu1 %v16036_v61  ;;  %v12845_v18 = vpack.c.bf16 %v224_v35, %v223_v34 }
 0x22d   :  { %v5807_v3 = vmul.f32 1.442695, %v5697_v43  ;;  %v13117_v49 = vpop.eup %13116  ;;  %v5602_v38 = vpop.xlane.xlu1 %5601  ;;  %v5972_v30 = vsel %vm5458_vm3, %v14828_v13, 0.0 }
 0x22e   :  { %v5869_v16 = vpop.xlane.xlu0 %5868  ;;  %v6046_v25 = vmul.f32 %v13117_v49, %v14480_v47  ;;  %v5698_v33 = vsub.f32 %v14510_v23, %v5602_v38  ;;  %12152 = vmatmul.mubr.msk.f32.vlgmr.msra.gmra.mrb[68].mxu0 %vm337_vm0, %v6231_v11  ;;  %5973 = vadd.xlane.f32.xlu1 %v5972_v30  ;;  %v225_v47 = vld [vmem:[%s15998_s2 + $0x80] sm:$0xff]  ;;  %v226_v23 = vld [vmem:[%s15998_s2 + $0x88] sm:$0xff] }
 0x22f   :  { %13126 = vpow2.f32 %v5807_v3  ;;  %12843 = vmatpush3.bf16.msra.mxu0 %v12842_v29  ;;  %12165 = vmatprep.mubr.msk.f32.mxu0 %vm13275_vm2, %v16035_v55  ;;  %v6169_v29 = vld [vmem:[%s15999_s3 + $0x18] sm:$0xf]  ;;  %v12848_v34 = vpack.c.bf16 %v226_v23, %v225_v47 }
 0x230   :  { %13128 = vrcp.f32 %v5869_v16  ;;  %v5809_v28 = vmul.f32 1.442695, %v5698_v33  ;;  %v6232_v22 = vmul.f32 %v6168_v59, %v6046_v25  ;;  %12847 = vmatprep.subr.bf16.mxu0 %v16036_v61  ;;  %v6170_v33 = vld [vmem:[%s15999_s3 + $0x1c] sm:$0xf] }
 0x231   :  { %v14847_v40 = vpop.eup %13118  ;;  %v5872_v36 = vpop.xlane.xlu1 %5871 }
 0x232   :  { %v13121_v62 = vpop.eup %13120  ;;  %v5605_v19 = vpop.xlane.xlu0 %5604  ;;  %v5975_v43 = vsel %vm5458_vm3, %v14847_v40, 0.0  ;;  %13130 = vpow2.f32 %v5809_v28  ;;  %12159 = vmatmul.mubr.msk.f32.vlgmr.msra.gmra.mrb[68].mxu1 %vm337_vm0, %v6232_v22 }
 0x233   :  { %v6048_v3 = vmul.f32 %v13121_v62, %v14490_v1  ;;  %v5699_v11 = vsub.f32 %v14523_v37, %v5605_v19  ;;  %5976 = vadd.xlane.f32.xlu0 %v5975_v43  ;;  %13132 = vrcp.f32 %v5872_v36  ;;  %12846 = vmatpush3.bf16.msra.mxu1 %v12845_v18  ;;  %v227_v1 = vld [vmem:[%s15998_s2 + $0x90] sm:$0xff]  ;;  %v228_v37 = vld [vmem:[%s15998_s2 + $0x98] sm:$0xff] }
 0x234   :  { %12172 = vmatprep.mubr.msk.f32.mxu1 %vm13275_vm2, %v16035_v55  ;;  %v14866_v35 = vpop.eup %13122  ;;  %12850 = vmatprep.subr.bf16.mxu1 %v16036_v61  ;;  %v12851_v22 = vpack.c.bf16 %v228_v37, %v227_v1 }
 0x235   :  { %v5811_v49 = vmul.f32 1.442695, %v5699_v11  ;;  %v6233_v38 = vmul.f32 %v6169_v29, %v6048_v3  ;;  %v13125_v16 = vpop.eup %13124  ;;  %v5608_v30 = vpop.xlane.xlu1 %5607  ;;  %v5978_v25 = vsel %vm5458_vm3, %v14866_v35, 0.0  ;;  %v6171_v3 = vld [vmem:[%s15999_s3 + $0x20] sm:$0xf] }
 0x236   :  { %v5875_v59 = vpop.xlane.xlu0 %5874  ;;  %v6050_v18 = vmul.f32 %v13125_v16, %v14498_v8  ;;  %v5700_v28 = vsub.f32 %v14536_v26, %v5608_v30  ;;  %5979 = vadd.xlane.f32.xlu1 %v5978_v25  ;;  %v229_v8 = vld [vmem:[%s15998_s2 + $0xa0] sm:$0xff]  ;;  %v230_v26 = vld [vmem:[%s15998_s2 + $0xa8] sm:$0xff] }
 0x237   :  { %13134 = vpow2.f32 %v5811_v49  ;;  %12166 = vmatmul.mubr.msk.f32.vlgmr.msra.gmra.mrb[70].mxu0 %vm337_vm0, %v6233_v38  ;;  %v12854_v49 = vpack.c.bf16 %v230_v26, %v229_v8 }
 0x238   :  { %13136 = vrcp.f32 %v5875_v59  ;;  %12849 = vmatpush3.bf16.msra.mxu0 %v12848_v34  ;;  %12179 = vmatprep.mubr.msk.f32.mxu0 %vm13275_vm2, %v16035_v55  ;;  %v5813_v23 = vmul.f32 1.442695, %v5700_v28  ;;  %v6234_v62 = vmul.f32 %v6170_v33, %v6050_v18  ;;  %v6172_v33 = vld [vmem:[%s15999_s3 + $0x24] sm:$0xf] }
 0x239   :  { %v14885_v47 = vpop.eup %13126  ;;  %12853 = vmatprep.subr.bf16.mxu0 %v16036_v61  ;;  %v5878_v19 = vpop.xlane.xlu1 %5877 }
 0x23a   :  { %v13129_v36 = vpop.eup %13128  ;;  %v5611_v43 = vpop.xlane.xlu0 %5610  ;;  %v5981_v29 = vsel %vm5458_vm3, %v14885_v47, 0.0  ;;  %13138 = vpow2.f32 %v5813_v23  ;;  %12173 = vmatmul.mubr.msk.f32.vlgmr.msra.gmra.mrb[70].mxu1 %vm337_vm0, %v6234_v62 }
 0x23b   :  { %v6052_v11 = vmul.f32 %v13129_v36, %v14520_v39  ;;  %v5701_v34 = vsub.f32 %v14542_v51, %v5611_v43  ;;  %5982 = vadd.xlane.f32.xlu0 %v5981_v29  ;;  %13140 = vrcp.f32 %v5878_v19  ;;  %12852 = vmatpush3.bf16.msra.mxu1 %v12851_v22  ;;  %v231_v39 = vld [vmem:[%s15998_s2 + $0xb0] sm:$0xff]  ;;  %v232_v51 = vld [vmem:[%s15998_s2 + $0xb8] sm:$0xff]  ;;  %v6173_v29 = vld [vmem:[%s15999_s3 + $0x28] sm:$0xf] }
 0x23c   :  { %12186 = vmatprep.mubr.msk.f32.mxu1 %vm13275_vm2, %v16035_v55  ;;  %v14904_v38 = vpop.eup %13130  ;;  %12856 = vmatprep.subr.bf16.mxu1 %v16036_v61  ;;  %v12857_v22 = vpack.c.bf16 %v232_v51, %v231_v39 }
 0x23d   :  { %v5815_v1 = vmul.f32 1.442695, %v5701_v34  ;;  %v6235_v37 = vmul.f32 %v6171_v3, %v6052_v11  ;;  %v13133_v16 = vpop.eup %13132  ;;  %v5614_v30 = vpop.xlane.xlu1 %5613  ;;  %v5984_v25 = vsel %vm5458_vm3, %v14904_v38, 0.0 }
 0x23e   :  { %v5881_v59 = vpop.xlane.xlu0 %5880  ;;  %v6054_v18 = vmul.f32 %v13133_v16, %v14529_v2  ;;  %v5702_v28 = vsub.f32 %v14554_v50, %v5614_v30  ;;  %5985 = vadd.xlane.f32.xlu1 %v5984_v25  ;;  %v233_v2 = vld [vmem:[%s15998_s2 + $0xc0] sm:$0xff]  ;;  %v234_v50 = vld [vmem:[%s15998_s2 + $0xc8] sm:$0xff] }
 0x23f   :  { %13142 = vpow2.f32 %v5815_v1  ;;  %12180 = vmatmul.mubr.msk.f32.vlgmr.msra.gmra.mrb[72].mxu0 %vm337_vm0, %v6235_v37  ;;  %v12860_v34 = vpack.c.bf16 %v234_v50, %v233_v2 }
 0x240   :  { %13144 = vrcp.f32 %v5881_v59  ;;  %12855 = vmatpush3.bf16.msra.mxu0 %v12854_v49  ;;  %12193 = vmatprep.mubr.msk.f32.mxu0 %vm13275_vm2, %v16035_v55  ;;  %v5817_v62 = vmul.f32 1.442695, %v5702_v28  ;;  %v6236_v8 = vmul.f32 %v6172_v33, %v6054_v18  ;;  %v6174_v59 = vld [vmem:[%s15999_s3 + $0x2c] sm:$0xf] }
 0x241   :  { %v14923_v23 = vpop.eup %13134  ;;  %12859 = vmatprep.subr.bf16.mxu0 %v16036_v61  ;;  %v5884_v36 = vpop.xlane.xlu1 %5883 }
 0x242   :  { %v13137_v26 = vpop.eup %13136  ;;  %v5617_v19 = vpop.xlane.xlu0 %5616  ;;  %v5987_v43 = vsel %vm5458_vm3, %v14923_v23, 0.0  ;;  %13146 = vpow2.f32 %v5817_v62  ;;  %12187 = vmatmul.mubr.msk.f32.vlgmr.msra.gmra.mrb[72].mxu1 %vm337_vm0, %v6236_v8 }
 0x243   :  { %v6056_v3 = vmul.f32 %v13137_v26, %v14540_v4  ;;  %v5703_v11 = vsub.f32 %v14560_v41, %v5617_v19  ;;  %5988 = vadd.xlane.f32.xlu0 %v5987_v43  ;;  %13148 = vrcp.f32 %v5884_v36  ;;  %12858 = vmatpush3.bf16.msra.mxu1 %v12857_v22  ;;  %v235_v4 = vld [vmem:[%s15998_s2 + $0xd0] sm:$0xff]  ;;  %v236_v41 = vld [vmem:[%s15998_s2 + $0xd8] sm:$0xff]  ;;  %v16037_v19 = vld [vmem:[#allocation2_spill] sm:$0xff] }
 0x244   :  { %12200 = vmatprep.mubr.msk.f32.mxu1 %vm13275_vm2, %v16035_v55  ;;  %v14942_v49 = vpop.eup %13138  ;;  %12862 = vmatprep.subr.bf16.mxu1 %v16036_v61  ;;  %v12863_v18 = vpack.c.bf16 %v236_v41, %v235_v4  ;;  %v6175_v36 = vld [vmem:[%s15999_s3 + $0x30] sm:$0xf]  ;;  %v240_v41 = vld [vmem:[%s15998_s2 + $0xf8] sm:$0xff] }
 0x245   :  { %v5819_v1 = vmul.f32 1.442695, %v5703_v11  ;;  %v6237_v37 = vmul.f32 %v6173_v29, %v6056_v3  ;;  %v13141_v39 = vpop.eup %13140  ;;  %v5620_v51 = vpop.xlane.xlu1 %5619  ;;  %v5990_v30 = vsel %vm5458_vm3, %v14942_v49, 0.0  ;;  %v16038_v29 = vld [vmem:[#allocation5_spill] sm:$0xff]  ;;  %v239_v4 = vld [vmem:[%s15998_s2 + $0xf0] sm:$0xff] }
 0x246   :  { %v5887_v16 = vpop.xlane.xlu0 %5886  ;;  %v6058_v25 = vmul.f32 %v13141_v39, %v14548_v5  ;;  %v5704_v33 = vsub.f32 %v14572_v14, %v5620_v51  ;;  %5991 = vadd.xlane.f32.xlu1 %v5990_v30  ;;  %v237_v5 = vld [vmem:[%s15998_s2 + $0xe0] sm:$0xff]  ;;  %v238_v14 = vld [vmem:[%s15998_s2 + $0xe8] sm:$0xff] }
 0x247   :  { %13150 = vpow2.f32 %v5819_v1  ;;  %12194 = vmatmul.mubr.msk.f32.vlgmr.msra.gmra.mrb[74].mxu0 %vm337_vm0, %v6237_v37  ;;  %v12866_v11 = vpack.c.bf16 %v238_v14, %v237_v5 }
 0x248   :  { %13152 = vrcp.f32 %v5887_v16  ;;  %12861 = vmatpush3.bf16.msra.mxu0 %v12860_v34  ;;  %12207 = vmatprep.mubr.msk.f32.mxu0 %vm13275_vm2, %v16035_v55  ;;  %v5821_v22 = vmul.f32 1.442695, %v5704_v33  ;;  %v6238_v62 = vmul.f32 %v6174_v59, %v6058_v25  ;;  %v6176_v59 = vld [vmem:[%s15999_s3 + $0x34] sm:$0xf]  ;;  %v16039_v25 = vld [vmem:[#allocation3_spill] sm:$0xff] }
 0x249   :  { %v14961_v28 = vpop.eup %13142  ;;  %12865 = vmatprep.subr.bf16.mxu0 %v16036_v61  ;;  %v5890_v2 = vpop.xlane.xlu1 %5889 }
 0x24a   :  { %v13145_v8 = vpop.eup %13144  ;;  %v5623_v50 = vpop.xlane.xlu0 %5622  ;;  %v5993_v26 = vsel %vm5458_vm3, %v14961_v28, 0.0  ;;  %13154 = vpow2.f32 %v5821_v22  ;;  %12201 = vmatmul.mubr.msk.f32.vlgmr.msra.gmra.mrb[74].mxu1 %vm337_vm0, %v6238_v62  ;;  %v12869_v62 = vpack.c.bf16 %v240_v41, %v239_v4 }
 0x24b   :  { %v6060_v43 = vmul.f32 %v13145_v8, %v16037_v19  ;;  %v5705_v3 = vsub.f32 %v16038_v29, %v5623_v50  ;;  %5994 = vadd.xlane.f32.xlu0 %v5993_v26  ;;  %13156 = vrcp.f32 %v5890_v2  ;;  %12864 = vmatpush3.bf16.msra.mxu1 %v12863_v18  ;;  %v16040_v18 = vld [vmem:[#allocation7_spill] sm:$0xff]  ;;  %v241_v2 = vld [vmem:[%s15998_s2 + $0x100] sm:$0xff]  ;;  %v6177_v29 = vld [vmem:[%s15999_s3 + $0x38] sm:$0xf] }
 0x24c   :  { %12214 = vmatprep.mubr.msk.f32.mxu1 %vm13275_vm2, %v16035_v55  ;;  %v14980_v34 = vpop.eup %13146  ;;  %12868 = vmatprep.subr.bf16.mxu1 %v16036_v61  ;;  %v242_v50 = vld [vmem:[%s15998_s2 + $0x108] sm:$0xff] }
 0x24d   :  { %v5823_v1 = vmul.f32 1.442695, %v5705_v3  ;;  %v6239_v37 = vmul.f32 %v6175_v36, %v6060_v43  ;;  %v13149_v39 = vpop.eup %13148  ;;  %v5626_v51 = vpop.xlane.xlu1 %5625  ;;  %v5996_v30 = vsel %vm5458_vm3, %v14980_v34, 0.0  ;;  %v16041_v3 = vld [vmem:[#allocation4_spill] sm:$0xff]  ;;  %v12872_v4 = vpack.c.bf16 %v242_v50, %v241_v2 }
 0x24e   :  { %v5893_v16 = vpop.xlane.xlu0 %5892  ;;  %v6062_v33 = vmul.f32 %v13149_v39, %v16039_v25  ;;  %v5706_v22 = vsub.f32 %v16040_v18, %v5626_v51  ;;  %5997 = vadd.xlane.f32.xlu1 %v5996_v30  ;;  %v244_v30 = vld [vmem:[%s15998_s2 + $0x118] sm:$0xff] }
 0x24f   :  { %13158 = vpow2.f32 %v5823_v1  ;;  %12208 = vmatmul.mubr.msk.f32.vlgmr.msra.gmra.mrb[76].mxu0 %vm337_vm0, %v6239_v37  ;;  %v16042_v1 = vld [vmem:[#allocation9_spill] sm:$0xff] }
 0x250   :  { %13160 = vrcp.f32 %v5893_v16  ;;  %12867 = vmatpush3.bf16.msra.mxu0 %v12866_v11  ;;  %12221 = vmatprep.mubr.msk.f32.mxu0 %vm13275_vm2, %v16035_v55  ;;  %v5825_v14 = vmul.f32 1.442695, %v5706_v22  ;;  %v6240_v8 = vmul.f32 %v6176_v59, %v6062_v33  ;;  %v243_v16 = vld [vmem:[%s15998_s2 + $0x110] sm:$0xff]  ;;  %v6178_v22 = vld [vmem:[%s15999_s3 + $0x3c] sm:$0xf] }
 0x251   :  { %v14999_v5 = vpop.eup %13150  ;;  %12871 = vmatprep.subr.bf16.mxu0 %v16036_v61  ;;  %v5896_v36 = vpop.xlane.xlu1 %5895  ;;  %v12875_v50 = vpack.c.bf16 %v244_v30, %v243_v16 }
 0x252   :  { %v13153_v26 = vpop.eup %13152  ;;  %v5629_v19 = vpop.xlane.xlu0 %5628  ;;  %v5999_v43 = vsel %vm5458_vm3, %v14999_v5, 0.0  ;;  %13162 = vpow2.f32 %v5825_v14  ;;  %12215 = vmatmul.mubr.msk.f32.vlgmr.msra.gmra.mrb[76].mxu1 %vm337_vm0, %v6240_v8  ;;  %v16044_v8 = vld [vmem:[#allocation11_spill] sm:$0xff] }
 0x253   :  { %v6064_v11 = vmul.f32 %v13153_v26, %v16041_v3  ;;  %v5707_v37 = vsub.f32 %v16042_v1, %v5629_v19  ;;  %6000 = vadd.xlane.f32.xlu0 %v5999_v43  ;;  %13164 = vrcp.f32 %v5896_v36  ;;  %12870 = vmatpush3.bf16.msra.mxu1 %v12869_v62  ;;  %v16043_v62 = vld [vmem:[#allocation6_spill] sm:$0xff] }
 0x254   :  { %12228 = vmatprep.mubr.msk.f32.mxu1 %vm13275_vm2, %v16035_v55  ;;  %v15018_v41 = vpop.eup %13154  ;;  %12874 = vmatprep.subr.bf16.mxu1 %v16036_v61  ;;  %v245_v43 = vld [vmem:[%s15998_s2 + $0x120] sm:$0xff] }
 0x255   :  { %v5827_v39 = vmul.f32 1.442695, %v5707_v37  ;;  %v6241_v51 = vmul.f32 %v6177_v29, %v6064_v11  ;;  %v13157_v59 = vpop.eup %13156  ;;  %v5632_v25 = vpop.xlane.xlu1 %5631  ;;  %v6002_v18 = vsel %vm5458_vm3, %v15018_v41, 0.0  ;;  %v246_v29 = vld [vmem:[%s15998_s2 + $0x128] sm:$0xff] }
 0x256   :  { %v5899_v33 = vpop.xlane.xlu0 %5898  ;;  %v6066_v14 = vmul.f32 %v13157_v59, %v16043_v62  ;;  %v5708_v2 = vsub.f32 %v16044_v8, %v5632_v25  ;;  %6003 = vadd.xlane.f32.xlu1 %v6002_v18  ;;  %v12878_v30 = vpack.c.bf16 %v246_v29, %v245_v43  ;;  %v247_v18 = vld [vmem:[%s15998_s2 + $0x130] sm:$0xff]  ;;  %v6180_v8 = vld [vmem:[%s15999_s3 + $0x44] sm:$0xf] }
 0x257   :  { %13166 = vpow2.f32 %v5827_v39  ;;  %12222 = vmatmul.mubr.msk.f32.vlgmr.msra.gmra.mrb[78].mxu0 %vm337_vm0, %v6241_v51  ;;  %v16045_v39 = vld [vmem:[#allocation8_spill] sm:$0xff] }
 0x258   :  { %13168 = vrcp.f32 %v5899_v33  ;;  %12873 = vmatpush3.bf16.msra.mxu0 %v12872_v4  ;;  %12235 = vmatprep.mubr.msk.f32.mxu0 %vm13275_vm2, %v16035_v55  ;;  %v5829_v36 = vmul.f32 1.442695, %v5708_v2  ;;  %v6242_v19 = vmul.f32 %v6178_v22, %v6066_v14  ;;  %v6179_v4 = vld [vmem:[%s15999_s3 + $0x40] sm:$0xf] }
 0x259   :  { %v15037_v26 = vpop.eup %13158  ;;  %12877 = vmatprep.subr.bf16.mxu0 %v16036_v61  ;;  %v5902_v11 = vpop.xlane.xlu1 %5901  ;;  %v16046_v2 = vld [vmem:[#allocation10_spill] sm:$0xff] }
 0x25a   :  { %v13161_v3 = vpop.eup %13160  ;;  %v5635_v1 = vpop.xlane.xlu0 %5634  ;;  %v6005_v37 = vsel %vm5458_vm3, %v15037_v26, 0.0  ;;  %13170 = vpow2.f32 %v5829_v36  ;;  %12229 = vmatmul.mubr.msk.f32.vlgmr.msra.gmra.mrb[78].mxu1 %vm337_vm0, %v6242_v19 }
 0x25b   :  { %v6068_v51 = vmul.f32 %v13161_v3, %v16045_v39  ;;  %v5709_v16 = vsub.f32 %v14612_v0, %v5635_v1  ;;  %6006 = vadd.xlane.f32.xlu0 %v6005_v37  ;;  %13172 = vrcp.f32 %v5902_v11  ;;  %12876 = vmatpush3.bf16.msra.mxu1 %v12875_v50  ;;  %v248_v0 = vld [vmem:[%s15998_s2 + $0x138] sm:$0xff]  ;;  %v250_v37 = vld [vmem:[%s15998_s2 + $0x148] sm:$0xff] }
 0x25c   :  { %12242 = vmatprep.mubr.msk.f32.mxu1 %vm13275_vm2, %v16035_v55  ;;  %v15056_v59 = vpop.eup %13162  ;;  %12880 = vmatprep.subr.bf16.mxu1 %v16036_v61  ;;  %v12881_v43 = vpack.c.bf16 %v248_v0, %v247_v18 }
 0x25d   :  { %v5831_v25 = vmul.f32 1.442695, %v5709_v16  ;;  %v6243_v33 = vmul.f32 %v6179_v4, %v6068_v51  ;;  %v13165_v22 = vpop.eup %13164  ;;  %v5638_v62 = vpop.xlane.xlu1 %5637  ;;  %v6008_v14 = vsel %vm5458_vm3, %v15056_v59, 0.0  ;;  %v16047_v16 = vld [vmem:[#allocation12_spill] sm:$0xff] }
 0x25e   :  { %v6070_v50 = vmul.f32 %v13165_v22, %v16046_v2  ;;  %v5710_v36 = vsub.f32 %v14624_v24, %v5638_v62  ;;  %6009 = vadd.xlane.f32.xlu1 %v6008_v14  ;;  %v249_v24 = vld [vmem:[%s15998_s2 + $0x140] sm:$0xff]  ;;  %v251_v14 = vld [vmem:[%s15998_s2 + $0x150] sm:$0xff] }
 0x25f   :  { %13174 = vpow2.f32 %v5831_v25  ;;  %12236 = vmatmul.mubr.msk.f32.vlgmr.msra.gmra.mrb[80].mxu0 %vm337_vm0, %v6243_v33  ;;  %v5641_v19 = vpop.xlane.xlu0 %5640  ;;  %v12884_v18 = vpack.c.bf16 %v250_v37, %v249_v24 }
 0x260   :  { %12879 = vmatpush3.bf16.msra.mxu0 %v12878_v30  ;;  %12249 = vmatprep.mubr.msk.f32.mxu0 %vm13275_vm2, %v16035_v55  ;;  %v5833_v3 = vmul.f32 1.442695, %v5710_v36  ;;  %v5711_v11 = vsub.f32 %v14630_v9, %v5641_v19  ;;  %v6244_v1 = vmul.f32 %v6180_v8, %v6070_v50  ;;  %v6181_v9 = vld [vmem:[%s15999_s3 + $0x48] sm:$0xf]  ;;  %v6182_v50 = vld [vmem:[%s15999_s3 + $0x4c] sm:$0xf] }
 0x261   :  { %v15075_v29 = vpop.eup %13166  ;;  %12883 = vmatprep.subr.bf16.mxu0 %v16036_v61  ;;  %v5644_v39 = vpop.xlane.xlu1 %5643  ;;  %v16048_v36 = vld [vmem:[#allocation13_spill] sm:$0xff] }
 0x262   :  { %v13169_v4 = vpop.eup %13168  ;;  %v6011_v51 = vsel %vm5458_vm3, %v15075_v29, 0.0  ;;  %13176 = vpow2.f32 %v5833_v3  ;;  %v5835_v25 = vmul.f32 1.442695, %v5711_v11  ;;  %12243 = vmatmul.mubr.msk.f32.vlgmr.msra.gmra.mrb[80].mxu1 %vm337_vm0, %v6244_v1  ;;  %v5712_v33 = vsub.f32 %v14634_v7, %v5644_v39  ;;  %v252_v7 = vld [vmem:[%s15998_s2 + $0x158] sm:$0xff] }
 0x263   :  { %v6072_v30 = vmul.f32 %v13169_v4, %v16047_v16  ;;  %6012 = vadd.xlane.f32.xlu0 %v6011_v51  ;;  %12882 = vmatpush3.bf16.msra.mxu1 %v12881_v43  ;;  %v12887_v3 = vpack.c.bf16 %v252_v7, %v251_v14 }
 0x264   :  { %12256 = vmatprep.mubr.msk.f32.mxu1 %vm13275_vm2, %v16035_v55  ;;  %v15095_v0 = vpop.eup %13170  ;;  %13178 = vpow2.f32 %v5835_v25  ;;  %v5837_v22 = vmul.f32 1.442695, %v5712_v33  ;;  %12886 = vmatprep.subr.bf16.mxu1 %v16036_v61 }
 0x265   :  { %v6245_v62 = vmul.f32 %v6181_v9, %v6072_v30  ;;  %v13173_v8 = vpop.eup %13172  ;;  %v6014_v2 = vsel %vm5458_vm3, %v15095_v0, 0.0 }
 0x266   :  { %v6074_v19 = vmul.f32 %v13173_v8, %v16048_v36  ;;  %13180 = vpow2.f32 %v5837_v22  ;;  %6015 = vadd.xlane.f32.xlu1 %v6014_v2 }
 0x267   :  { %12250 = vmatmul.mubr.msk.f32.vlgmr.msra.gmra.mrb[82].mxu0 %vm337_vm0, %v6245_v62  ;;  %v5647_v43 = vpop.xlane.xlu0 %5646 }
 0x268   :  { %12885 = vmatpush3.bf16.msra.mxu0 %v12884_v18  ;;  %12263 = vmatprep.mubr.msk.f32.mxu0 %vm13275_vm2, %v16035_v55  ;;  %v5650_v1 = vpop.xlane.xlu1 %5649  ;;  %v5713_v24 = vsub.f32 %v14642_v63, %v5647_v43  ;;  %v6246_v37 = vmul.f32 %v6182_v50, %v6074_v19  ;;  %v255_v43 = vld [vmem:[%s15998_s2 + $0x170] sm:$0xff] }
 0x269   :  { %v15113_v11 = vpop.eup %13174  ;;  %12889 = vmatprep.subr.bf16.mxu0 %v16036_v61  ;;  %v5714_v4 = vsub.f32 %v14644_v6, %v5650_v1 }
 0x26a   :  { %v6017_v39 = vsel %vm5458_vm3, %v15113_v11, 0.0  ;;  %v5839_v51 = vmul.f32 1.442695, %v5713_v24  ;;  %12257 = vmatmul.mubr.msk.f32.vlgmr.msra.gmra.mrb[82].mxu1 %vm337_vm0, %v6246_v37 }
 0x26b   :  { %6018 = vadd.xlane.f32.xlu0 %v6017_v39  ;;  %v5841_v9 = vmul.f32 1.442695, %v5714_v4  ;;  %v5905_v16 = vpop.xlane.xlu0 %5904  ;;  %12888 = vmatpush3.bf16.msra.mxu1 %v12887_v3  ;;  %v256_v3 = vld [vmem:[%s15998_s2 + $0x178] sm:$0xff]  ;;  %v6184_v4 = vld [vmem:[%s15999_s3 + $0x54] sm:$0xf]  ;;  %v253_v39 = vld [vmem:[%s15998_s2 + $0x160] sm:$0xff] }
 0x26c   :  { %12270 = vmatprep.mubr.msk.f32.mxu1 %vm13275_vm2, %v16035_v55  ;;  %v15123_v30 = vpop.eup %13176  ;;  %13182 = vpow2.f32 %v5839_v51  ;;  %v5908_v63 = vpop.xlane.xlu1 %5907  ;;  %12892 = vmatprep.subr.bf16.mxu1 %v16036_v61  ;;  %v254_v51 = vld [vmem:[%s15998_s2 + $0x168] sm:$0xff] }
 0x26d   :  { %13184 = vpow2.f32 %v5841_v9  ;;  %v6020_v6 = vsel %vm5458_vm3, %v15123_v30, 0.0 }
 0x26e   :  { %v15128_v25 = vpop.eup %13178  ;;  %13186 = vrcp.f32 %v5908_v63  ;;  %6021 = vadd.xlane.f32.xlu1 %v6020_v6  ;;  %v6183_v63 = vld [vmem:[%s15999_s3 + $0x50] sm:$0xf] }
 0x26f   :  { %13188 = vrcp.f32 %v5905_v16  ;;  %v5911_v33 = vpop.xlane.xlu0 %5910  ;;  %v6023_v18 = vsel %vm5458_vm3, %v15128_v25, 0.0 }
 0x270   :  { %v15132_v22 = vpop.eup %13180  ;;  %v5914_v62 = vpop.xlane.xlu1 %5913  ;;  %13190 = vrcp.f32 %v5911_v33  ;;  %6024 = vadd.xlane.f32.xlu0 %v6023_v18  ;;  %v12893_v18 = vpack.c.bf16 %v256_v3, %v255_v43 }
 0x271   :  { %13192 = vrcp.f32 %v5914_v62  ;;  %v6026_v14 = vsel %vm5458_vm3, %v15132_v22, 0.0  ;;  %v6185_v62 = vld [vmem:[%s15999_s3 + $0x58] sm:$0xf] }
 0x272   :  { %6027 = vadd.xlane.f32.xlu1 %v6026_v14 }
 0x273   :  { %v5917_v7 = vpop.xlane.xlu0 %5916 }
 0x274   :  { %v5920_v8 = vpop.xlane.xlu1 %5919  ;;  %13194 = vrcp.f32 %v5917_v7 }
 0x275   :  { %13196 = vrcp.f32 %v5920_v8 }
 0x276   :  { %v15136_v2 = vpop.eup %13182 }
 0x277   :  { %v15138_v50 = vpop.eup %13184  ;;  %v5923_v36 = vpop.xlane.xlu0 %5922  ;;  %v6029_v19 = vsel %vm5458_vm3, %v15136_v2, 0.0 }
 0x278   :  { %v13187_v1 = vpop.eup %13186  ;;  %v5926_v24 = vpop.xlane.xlu1 %5925  ;;  %13198 = vrcp.f32 %v5923_v36  ;;  %v6032_v37 = vsel %vm5458_vm3, %v15138_v50, 0.0  ;;  %6030 = vadd.xlane.f32.xlu0 %v6029_v19  ;;  %v12890_v36 = vpack.c.bf16 %v254_v51, %v253_v39  ;;  %v259_v19 = vld [vmem:[%s15998_s2 + $0x190] sm:$0xff] }
 0x279   :  { %v13189_v9 = vpop.eup %13188  ;;  %v6078_v16 = vmul.f32 %v13187_v1, %v14654_v56  ;;  %13200 = vrcp.f32 %v5926_v24  ;;  %6033 = vadd.xlane.f32.xlu1 %v6032_v37  ;;  %v6186_v56 = vld [vmem:[%s15999_s3 + $0x5c] sm:$0xf]  ;;  %v258_v1 = vld [vmem:[%s15998_s2 + $0x188] sm:$0xff] }
 0x27a   :  { %v13191_v6 = vpop.eup %13190  ;;  %v6076_v33 = vmul.f32 %v13189_v9, %v14650_v53  ;;  %v260_v53 = vld [vmem:[%s15998_s2 + $0x198] sm:$0xff]  ;;  %v6187_v9 = vld [vmem:[%s15999_s3 + $0x60] sm:$0xf] }
 0x27b   :  { %v13193_v14 = vpop.eup %13192  ;;  %v6080_v7 = vmul.f32 %v13191_v6, %v14658_v20  ;;  %v6248_v8 = vmul.f32 %v6184_v4, %v6078_v16  ;;  %v257_v20 = vld [vmem:[%s15998_s2 + $0x180] sm:$0xff]  ;;  %v12899_v51 = vpack.c.bf16 %v260_v53, %v259_v19  ;;  %v6189_v19 = vld [vmem:[%s15999_s3 + $0x68] sm:$0xf] }
 0x27c   :  { %v6082_v43 = vmul.f32 %v13193_v14, %v14662_v12  ;;  %v6247_v3 = vmul.f32 %v6183_v63, %v6076_v33  ;;  %v12896_v6 = vpack.c.bf16 %v258_v1, %v257_v20  ;;  %v6188_v33 = vld [vmem:[%s15999_s3 + $0x64] sm:$0xf]  ;;  %v6190_v20 = vld [vmem:[%s15999_s3 + $0x6c] sm:$0xf]  ;;  %v267_v1 = vld [vmem:[%s15998_s2 + $0x1d0] sm:$0xff] }
 0x27d   :  { %12271 = vmatmul.mubr.msk.f32.vlgmr.msra.gmra.mrb[84].mxu1 %vm337_vm0, %v6248_v8  ;;  %v5929_v24 = vpop.xlane.xlu0 %5928  ;;  %v6249_v39 = vmul.f32 %v6185_v62, %v6080_v7  ;;  %v264_v62 = vld [vmem:[%s15998_s2 + $0x1b8] sm:$0xff]  ;;  %v261_v14 = vld [vmem:[%s15998_s2 + $0x1a0] sm:$0xff]  ;;  %v262_v7 = vld [vmem:[%s15998_s2 + $0x1a8] sm:$0xff] }
 0x27e   :  { %v13195_v37 = vpop.eup %13194  ;;  %12264 = vmatmul.mubr.msk.f32.vlgmr.msra.gmra.mrb[84].mxu0 %vm337_vm0, %v6247_v3  ;;  %12894 = vmatpush3.bf16.msra.mxu1 %v12893_v18  ;;  %v5932_v4 = vpop.xlane.xlu1 %5931  ;;  %13202 = vrcp.f32 %v5929_v24  ;;  %v6250_v12 = vmul.f32 %v6186_v56, %v6082_v43  ;;  %v263_v18 = vld [vmem:[%s15998_s2 + $0x1b0] sm:$0xff]  ;;  %v12902_v3 = vpack.c.bf16 %v262_v7, %v261_v14  ;;  %v268_v24 = vld [vmem:[%s15998_s2 + $0x1d8] sm:$0xff] }
 0x27f   :  { %v13197_v16 = vpop.eup %13196  ;;  %v6084_v63 = vmul.f32 %v13195_v37, %v14668_v57  ;;  %12891 = vmatpush3.bf16.msra.mxu0 %v12890_v36  ;;  %13204 = vrcp.f32 %v5932_v4  ;;  %12277 = vmatprep.mubr.msk.f32.mxu0 %vm13275_vm2, %v16035_v55  ;;  %v12905_v56 = vpack.c.bf16 %v264_v62, %v263_v18  ;;  %v266_v4 = vld [vmem:[%s15998_s2 + $0x1c8] sm:$0xff]  ;;  %v271_v62 = vld [vmem:[%s15998_s2 + $0x1f0] sm:$0xff] }
 0x280   :  { %v6086_v57 = vmul.f32 %v13197_v16, %v14672_v27  ;;  %12284 = vmatprep.mubr.msk.f32.mxu1 %vm13275_vm2, %v16035_v55  ;;  %12895 = vmatprep.subr.bf16.mxu0 %v16036_v61  ;;  %v270_v18 = vld [vmem:[%s15998_s2 + $0x1e8] sm:$0xff] }
 0x281   :  { %12285 = vmatmul.mubr.msk.f32.vlgmr.msra.gmra.mrb[86].mxu1 %vm337_vm0, %v6250_v12  ;;  %12898 = vmatprep.subr.bf16.mxu1 %v16036_v61  ;;  %v6251_v27 = vmul.f32 %v6187_v9, %v6084_v63  ;;  %v12911_v9 = vpack.c.bf16 %v268_v24, %v267_v1  ;;  %v6191_v63 = vld [vmem:[%s15999_s3 + $0x70] sm:$0xf]  ;;  %v6193_v1 = vld [vmem:[%s15999_s3 + $0x78] sm:$0xf] }
 0x282   :  { %v13199_v8 = vpop.eup %13198  ;;  %12278 = vmatmul.mubr.msk.f32.vlgmr.msra.gmra.mrb[86].mxu0 %vm337_vm0, %v6249_v39  ;;  %12900 = vmatpush3.bf16.msra.mxu1 %v12899_v51  ;;  %v6252_v36 = vmul.f32 %v6188_v33, %v6086_v57  ;;  %v272_v57 = vld [vmem:[%s15998_s2 + $0x1f8] sm:$0xff]  ;;  %v275_v24 = vld [vmem:[%s15998_s2 + $0x210] sm:$0xff] }
 0x283   :  { %v13201_v53 = vpop.eup %13200  ;;  %v6088_v43 = vmul.f32 %v13199_v8, %v14676_v31  ;;  %12897 = vmatpush3.bf16.msra.mxu0 %v12896_v6  ;;  %12291 = vmatprep.mubr.msk.f32.mxu0 %vm13275_vm2, %v16035_v55  ;;  %v265_v31 = vld [vmem:[%s15998_s2 + $0x1c0] sm:$0xff]  ;;  %v6192_v8 = vld [vmem:[%s15999_s3 + $0x74] sm:$0xf] }
 0x284   :  { %v6090_v37 = vmul.f32 %v13201_v53, %v14680_v52  ;;  %12298 = vmatprep.mubr.msk.f32.mxu1 %vm13275_vm2, %v16035_v55  ;;  %12901 = vmatprep.subr.bf16.mxu0 %v16036_v61  ;;  %v12908_v16 = vpack.c.bf16 %v266_v4, %v265_v31  ;;  %v269_v6 = vld [vmem:[%s15998_s2 + $0x1e0] sm:$0xff] }
 0x285   :  { %12299 = vmatmul.mubr.msk.f32.vlgmr.msra.gmra.mrb[88].mxu1 %vm337_vm0, %v6252_v36  ;;  %12904 = vmatprep.subr.bf16.mxu1 %v16036_v61  ;;  %v5935_v39 = vpop.xlane.xlu0 %5934  ;;  %v6253_v12 = vmul.f32 %v6189_v19, %v6088_v43  ;;  %v273_v43 = vld [vmem:[%s15998_s2 + $0x200] sm:$0xff] }
 0x286   :  { %12292 = vmatmul.mubr.msk.f32.vlgmr.msra.gmra.mrb[88].mxu0 %vm337_vm0, %v6251_v27  ;;  %12906 = vmatpush3.bf16.msra.mxu1 %v12905_v56  ;;  %v5938_v52 = vpop.xlane.xlu1 %5937  ;;  %13206 = vrcp.f32 %v5935_v39  ;;  %v6254_v51 = vmul.f32 %v6190_v20, %v6090_v37  ;;  %v12914_v56 = vpack.c.bf16 %v270_v18, %v269_v6  ;;  %v276_v37 = vld [vmem:[%s15998_s2 + $0x218] sm:$0xff]  ;;  %v278_v6 = vld [vmem:[%s15998_s2 + $0x228] sm:$0xff]  ;;  %v6195_v18 = vld [vmem:[%s15999_s3 + $0x80] sm:$0xf] }
 0x287   :  { %12903 = vmatpush3.bf16.msra.mxu0 %v12902_v3  ;;  %13208 = vrcp.f32 %v5938_v52  ;;  %12305 = vmatprep.mubr.msk.f32.mxu0 %vm13275_vm2, %v16035_v55  ;;  %v274_v3 = vld [vmem:[%s15998_s2 + $0x208] sm:$0xff]  ;;  %v6194_v39 = vld [vmem:[%s15999_s3 + $0x7c] sm:$0xf] }
 0x288   :  { %v13203_v33 = vpop.eup %13202  ;;  %12312 = vmatprep.mubr.msk.f32.mxu1 %vm13275_vm2, %v16035_v55  ;;  %12907 = vmatprep.subr.bf16.mxu0 %v16036_v61 }
 0x289   :  { %v13205_v14 = vpop.eup %13204  ;;  %v6092_v7 = vmul.f32 %v13203_v33, %v14688_v60  ;;  %12313 = vmatmul.mubr.msk.f32.vlgmr.msra.gmra.mrb[90].mxu1 %vm337_vm0, %v6254_v51  ;;  %12910 = vmatprep.subr.bf16.mxu1 %v16036_v61  ;;  %v12917_v60 = vpack.c.bf16 %v272_v57, %v271_v62  ;;  %v279_v62 = vld [vmem:[%s15998_s2 + $0x230] sm:$0xff]  ;;  %v280_v57 = vld [vmem:[%s15998_s2 + $0x238] sm:$0xff] }
 0x28a   :  { %v6094_v27 = vmul.f32 %v13205_v14, %v14690_v45  ;;  %12306 = vmatmul.mubr.msk.f32.vlgmr.msra.gmra.mrb[90].mxu0 %vm337_vm0, %v6253_v12  ;;  %12912 = vmatpush3.bf16.msra.mxu1 %v12911_v9  ;;  %v12920_v12 = vpack.c.bf16 %v274_v3, %v273_v43  ;;  %v12923_v9 = vpack.c.bf16 %v276_v37, %v275_v24  ;;  %v6197_v3 = vld [vmem:[%s15999_s3 + $0x88] sm:$0xf] }
 0x28b   :  { %12909 = vmatpush3.bf16.msra.mxu0 %v12908_v16  ;;  %12319 = vmatprep.mubr.msk.f32.mxu0 %vm13275_vm2, %v16035_v55  ;;  %v6255_v36 = vmul.f32 %v6191_v63, %v6092_v7 }
 0x28c   :  { %12326 = vmatprep.mubr.msk.f32.mxu1 %vm13275_vm2, %v16035_v55  ;;  %v6256_v19 = vmul.f32 %v6192_v8, %v6094_v27  ;;  %12913 = vmatprep.subr.bf16.mxu0 %v16036_v61  ;;  %v6196_v8 = vld [vmem:[%s15999_s3 + $0x84] sm:$0xf] }
 0x28d   :  { %v5941_v53 = vpop.xlane.xlu0 %5940  ;;  %12916 = vmatprep.subr.bf16.mxu1 %v16036_v61 }
 0x28e   :  { %12327 = vmatmul.mubr.msk.f32.vlgmr.msra.gmra.mrb[92].mxu1 %vm337_vm0, %v6256_v19  ;;  %v5944_v45 = vpop.xlane.xlu1 %5943  ;;  %12320 = vmatmul.mubr.msk.f32.vlgmr.msra.gmra.mrb[92].mxu0 %vm337_vm0, %v6255_v36  ;;  %13210 = vrcp.f32 %v5941_v53 }
 0x28f   :  { %13212 = vrcp.f32 %v5944_v45  ;;  %12915 = vmatpush3.bf16.msra.mxu0 %v12914_v56  ;;  %12918 = vmatpush3.bf16.msra.mxu1 %v12917_v60  ;;  %v12929_v60 = vpack.c.bf16 %v280_v57, %v279_v62  ;;  %v6200_v62 = vld [vmem:[%s15999_s3 + $0x94] sm:$0xf] }
 0x290   :  { %v13207_v20 = vpop.eup %13206  ;;  %12333 = vmatprep.mubr.msk.f32.mxu0 %vm13275_vm2, %v16035_v55  ;;  %12340 = vmatprep.mubr.msk.f32.mxu1 %vm13275_vm2, %v16035_v55 }
 0x291   :  { %v13209_v31 = vpop.eup %13208  ;;  %v6096_v4 = vmul.f32 %v13207_v20, %v14698_v15  ;;  %12919 = vmatprep.subr.bf16.mxu0 %v16036_v61  ;;  %12922 = vmatprep.subr.bf16.mxu1 %v16036_v61  ;;  %v283_v20 = vld [vmem:[%s15998_s2 + $0x250] sm:$0xff] }
 0x292   :  { %v6098_v52 = vmul.f32 %v13209_v31, %v14700_v46  ;;  %v277_v46 = vld [vmem:[%s15998_s2 + $0x220] sm:$0xff]  ;;  %v6198_v31 = vld [vmem:[%s15999_s3 + $0x8c] sm:$0xf] }
 0x293   :  { %v6257_v51 = vmul.f32 %v6193_v1, %v6096_v4  ;;  %v12926_v36 = vpack.c.bf16 %v278_v6, %v277_v46  ;;  %v284_v1 = vld [vmem:[%s15998_s2 + $0x258] sm:$0xff]  ;;  %v287_v46 = vld [vmem:[%s15998_s2 + $0x270] sm:$0xff] }
 0x294   :  { %v6258_v16 = vmul.f32 %v6194_v39, %v6098_v52  ;;  %v288_v6 = vld [vmem:[%s15998_s2 + $0x278] sm:$0xff] }
 0x295   :  { %12334 = vmatmul.mubr.msk.f32.vlgmr.msra.gmra.mrb[94].mxu0 %vm337_vm0, %v6257_v51  ;;  %v5947_v63 = vpop.xlane.xlu0 %5946 }
 0x296   :  { %12341 = vmatmul.mubr.msk.f32.vlgmr.msra.gmra.mrb[94].mxu1 %vm337_vm0, %v6258_v16  ;;  %v5950_v15 = vpop.xlane.xlu1 %5949  ;;  %13214 = vrcp.f32 %v5947_v63  ;;  %12921 = vmatpush3.bf16.msra.mxu0 %v12920_v12  ;;  %v12935_v12 = vpack.c.bf16 %v284_v1, %v283_v20 }
 0x297   :  { %13216 = vrcp.f32 %v5950_v15  ;;  %12924 = vmatpush3.bf16.msra.mxu1 %v12923_v9  ;;  %12347 = vmatprep.mubr.msk.f32.mxu0 %vm13275_vm2, %v16035_v55  ;;  %v6199_v15 = vld [vmem:[%s15999_s3 + $0x90] sm:$0xf] }
 0x298   :  { %v13211_v33 = vpop.eup %13210  ;;  %12354 = vmatprep.mubr.msk.f32.mxu1 %vm13275_vm2, %v16035_v55  ;;  %12925 = vmatprep.subr.bf16.mxu0 %v16036_v61 }
 0x299   :  { %v13213_v14 = vpop.eup %13212  ;;  %v6100_v7 = vmul.f32 %v13211_v33, %v14708_v44  ;;  %12928 = vmatprep.subr.bf16.mxu1 %v16036_v61  ;;  %v281_v44 = vld [vmem:[%s15998_s2 + $0x240] sm:$0xff] }
 0x29a   :  { %v6102_v27 = vmul.f32 %v13213_v14, %v14710_v58  ;;  %v282_v58 = vld [vmem:[%s15998_s2 + $0x248] sm:$0xff] }
 0x29b   :  { %v6259_v56 = vmul.f32 %v6195_v18, %v6100_v7  ;;  %v12932_v39 = vpack.c.bf16 %v282_v58, %v281_v44  ;;  %v16049_v44 = vld [vmem:[#allocation14_spill] sm:$0xff] }
 0x29c   :  { %v6260_v19 = vmul.f32 %v6196_v8, %v6102_v27  ;;  %v12941_v8 = vpack.c.bf16 %v288_v6, %v287_v46  ;;  %v296_v46 = vld [vmem:[%s15998_s2 + $0x2b8] sm:$0xff] }
 0x29d   :  { %12348 = vmatmul.mubr.msk.f32.vlgmr.msra.gmra.mrb[96].mxu0 %vm337_vm0, %v6259_v56  ;;  %v5953_v53 = vpop.xlane.xlu0 %5952 }
 0x29e   :  { %12355 = vmatmul.mubr.msk.f32.vlgmr.msra.gmra.mrb[96].mxu1 %vm337_vm0, %v6260_v19  ;;  %v5956_v45 = vpop.xlane.xlu1 %5955  ;;  %13218 = vrcp.f32 %v5953_v53  ;;  %12927 = vmatpush3.bf16.msra.mxu0 %v12926_v36  ;;  %v291_v19 = vld [vmem:[%s15998_s2 + $0x290] sm:$0xff]  ;;  %v292_v53 = vld [vmem:[%s15998_s2 + $0x298] sm:$0xff] }
 0x29f   :  { %13220 = vrcp.f32 %v5956_v45  ;;  %12930 = vmatpush3.bf16.msra.mxu1 %v12929_v60  ;;  %12361 = vmatprep.mubr.msk.f32.mxu0 %vm13275_vm2, %v16035_v55  ;;  %v6201_v60 = vld [vmem:[%s15999_s3 + $0x98] sm:$0xf] }
 0x2a0   :  { %v13215_v43 = vpop.eup %13214  ;;  %12368 = vmatprep.mubr.msk.f32.mxu1 %vm13275_vm2, %v16035_v55  ;;  %12931 = vmatprep.subr.bf16.mxu0 %v16036_v61 }
 0x2a1   :  { %v13217_v24 = vpop.eup %13216  ;;  %v6104_v37 = vmul.f32 %v13215_v43, %v14718_v54  ;;  %12934 = vmatprep.subr.bf16.mxu1 %v16036_v61  ;;  %v285_v54 = vld [vmem:[%s15998_s2 + $0x260] sm:$0xff]  ;;  %v6202_v43 = vld [vmem:[%s15999_s3 + $0x9c] sm:$0xf] }
 0x2a2   :  { %v6106_v4 = vmul.f32 %v13217_v24, %v14720_v32  ;;  %v286_v32 = vld [vmem:[%s15998_s2 + $0x268] sm:$0xff] }
 0x2a3   :  { %v6261_v52 = vmul.f32 %v6197_v3, %v6104_v37  ;;  %v12938_v14 = vpack.c.bf16 %v286_v32, %v285_v54  ;;  %v16050_v3 = vld [vmem:[#allocation15_spill] sm:$0xff] }
 0x2a4   :  { %v6262_v51 = vmul.f32 %v6198_v31, %v6106_v4  ;;  %v12947_v31 = vpack.c.bf16 %v292_v53, %v291_v19  ;;  %v6206_v19 = vld [vmem:[%s15999_s3 + $0xac] sm:$0xf] }
 0x2a5   :  { %12362 = vmatmul.mubr.msk.f32.vlgmr.msra.gmra.mrb[98].mxu0 %vm337_vm0, %v6261_v52  ;;  %v5959_v9 = vpop.xlane.xlu0 %5958  ;;  %v293_v52 = vld [vmem:[%s15998_s2 + $0x2a0] sm:$0xff] }
 0x2a6   :  { %12369 = vmatmul.mubr.msk.f32.vlgmr.msra.gmra.mrb[98].mxu1 %vm337_vm0, %v6262_v51  ;;  %v5962_v16 = vpop.xlane.xlu1 %5961  ;;  %13222 = vrcp.f32 %v5959_v9  ;;  %12933 = vmatpush3.bf16.msra.mxu0 %v12932_v39  ;;  %v6203_v9 = vld [vmem:[%s15999_s3 + $0xa0] sm:$0xf] }
 0x2a7   :  { %13224 = vrcp.f32 %v5962_v16  ;;  %12936 = vmatpush3.bf16.msra.mxu1 %v12935_v12  ;;  %12375 = vmatprep.mubr.msk.f32.mxu0 %vm13275_vm2, %v16035_v55  ;;  %v294_v12 = vld [vmem:[%s15998_s2 + $0x2a8] sm:$0xff] }
 0x2a8   :  { %v13219_v63 = vpop.eup %13218  ;;  %12382 = vmatprep.mubr.msk.f32.mxu1 %vm13275_vm2, %v16035_v55  ;;  %12937 = vmatprep.subr.bf16.mxu0 %v16036_v61  ;;  %v12950_v32 = vpack.c.bf16 %v294_v12, %v293_v52  ;;  %v6208_v52 = vld [vmem:[%s15999_s3 + $0xb4] sm:$0xf] }
 0x2a9   :  { %v13221_v33 = vpop.eup %13220  ;;  %v6108_v18 = vmul.f32 %v13219_v63, %v14728_v17  ;;  %12940 = vmatprep.subr.bf16.mxu1 %v16036_v61  ;;  %v289_v17 = vld [vmem:[%s15998_s2 + $0x280] sm:$0xff] }
 0x2aa   :  { %v6110_v57 = vmul.f32 %v13221_v33, %v14730_v48  ;;  %v290_v48 = vld [vmem:[%s15998_s2 + $0x288] sm:$0xff]  ;;  %v6204_v33 = vld [vmem:[%s15999_s3 + $0xa4] sm:$0xf] }
 0x2ab   :  { %v6263_v7 = vmul.f32 %v6199_v15, %v6108_v18  ;;  %v12944_v1 = vpack.c.bf16 %v290_v48, %v289_v17  ;;  %v295_v15 = vld [vmem:[%s15998_s2 + $0x2b0] sm:$0xff] }
 0x2ac   :  { %v6264_v27 = vmul.f32 %v6200_v62, %v6110_v57  ;;  %v12953_v62 = vpack.c.bf16 %v296_v46, %v295_v15 }
 0x2ad   :  { %12376 = vmatmul.mubr.msk.f32.vlgmr.msra.gmra.mrb[100].mxu0 %vm337_vm0, %v6263_v7 }
 0x2ae   :  { %12383 = vmatmul.mubr.msk.f32.vlgmr.msra.gmra.mrb[100].mxu1 %vm337_vm0, %v6264_v27  ;;  %12939 = vmatpush3.bf16.msra.mxu0 %v12938_v14  ;;  %v297_v14 = vld [vmem:[%s15998_s2 + $0x2c0] sm:$0xff] }
 0x2af   :  { %v5965_v36 = vpop.xlane.xlu0 %5964  ;;  %12942 = vmatpush3.bf16.msra.mxu1 %v12941_v8  ;;  %12389 = vmatprep.mubr.msk.f32.mxu0 %vm13275_vm2, %v16035_v55  ;;  %v6205_v8 = vld [vmem:[%s15999_s3 + $0xa8] sm:$0xf] }
 0x2b0   :  { %v13223_v56 = vpop.eup %13222  ;;  %13226 = vrcp.f32 %v5965_v36  ;;  %12396 = vmatprep.mubr.msk.f32.mxu1 %vm13275_vm2, %v16035_v55  ;;  %12943 = vmatprep.subr.bf16.mxu0 %v16036_v61 }
 0x2b1   :  { %v13225_v45 = vpop.eup %13224  ;;  %v6112_v58 = vmul.f32 %v13223_v56, %v16049_v44  ;;  %12946 = vmatprep.subr.bf16.mxu1 %v16036_v61  ;;  %v299_v56 = vld [vmem:[%s15998_s2 + $0x2d0] sm:$0xff] }
 0x2b2   :  { %v6114_v20 = vmul.f32 %v13225_v45, %v16050_v3 }
 0x2b3   :  { %v5968_v24 = vpop.xlane.xlu1 %5967  ;;  %v6265_v37 = vmul.f32 %v6201_v60, %v6112_v58 }
 0x2b4   :  { %13228 = vrcp.f32 %v5968_v24  ;;  %v6266_v4 = vmul.f32 %v6202_v43, %v6114_v20  ;;  %v301_v43 = vld [vmem:[%s15998_s2 + $0x2e0] sm:$0xff]  ;;  %v6207_v20 = vld [vmem:[%s15999_s3 + $0xb0] sm:$0xf] }
 0x2b5   :  { %12390 = vmatmul.mubr.msk.f32.vlgmr.msra.gmra.mrb[102].mxu0 %vm337_vm0, %v6265_v37 }
 0x2b6   :  { %12397 = vmatmul.mubr.msk.f32.vlgmr.msra.gmra.mrb[102].mxu1 %vm337_vm0, %v6266_v4  ;;  %12945 = vmatpush3.bf16.msra.mxu0 %v12944_v1  ;;  %v303_v4 = vld [vmem:[%s15998_s2 + $0x2f0] sm:$0xff] }
 0x2b7   :  { %v5971_v39 = vpop.xlane.xlu0 %5970  ;;  %12403 = vmatprep.mubr.msk.f32.mxu0 %vm13275_vm2, %v16035_v55  ;;  %12948 = vmatpush3.bf16.msra.mxu1 %v12947_v31 }
 0x2b8   :  { %13230 = vrcp.f32 %v5971_v39  ;;  %12410 = vmatprep.mubr.msk.f32.mxu1 %vm13275_vm2, %v16035_v55  ;;  %12949 = vmatprep.subr.bf16.mxu0 %v16036_v61 }
 0x2b9   :  { %12952 = vmatprep.subr.bf16.mxu1 %v16036_v61 }
 0x2ba   :  { %v13227_v51 = vpop.eup %13226 }
 0x2bb   :  { %v6116_v16 = vmul.f32 %v13227_v51, %v14772_v21  ;;  %v5974_v54 = vpop.xlane.xlu1 %5973 }
 0x2bc   :  { %13232 = vrcp.f32 %v5974_v54  ;;  %v305_v54 = vld [vmem:[%s15998_s2 + $0x300] sm:$0xff] }
 0x2bd   :  { %v6267_v63 = vmul.f32 %v6203_v9, %v6116_v16 }
 0x2be   :  { %v13229_v6 = vpop.eup %13228 }
 0x2bf   :  { %v6118_v18 = vmul.f32 %v13229_v6, %v14791_v10  ;;  %12404 = vmatmul.mubr.msk.f32.vlgmr.msra.gmra.mrb[104].mxu0 %vm337_vm0, %v6267_v63  ;;  %v298_v10 = vld [vmem:[%s15998_s2 + $0x2c8] sm:$0xff]  ;;  %v6209_v63 = vld [vmem:[%s15999_s3 + $0xb8] sm:$0xf] }
 0x2c0   :  { %v5977_v21 = vpop.xlane.xlu0 %5976  ;;  %12951 = vmatpush3.bf16.msra.mxu0 %v12950_v32  ;;  %12417 = vmatprep.mubr.msk.f32.mxu0 %vm13275_vm2, %v16035_v55  ;;  %v12956_v17 = vpack.c.bf16 %v298_v10, %v297_v14 }
 0x2c1   :  { %13234 = vrcp.f32 %v5977_v21  ;;  %v6268_v57 = vmul.f32 %v6204_v33, %v6118_v18  ;;  %12955 = vmatprep.subr.bf16.mxu0 %v16036_v61  ;;  %v307_v18 = vld [vmem:[%s15998_s2 + $0x310] sm:$0xff] }
 0x2c2   :  { %v13231_v7 = vpop.eup %13230 }
 0x2c3   :  { %v6120_v27 = vmul.f32 %v13231_v7, %v14809_v42  ;;  %12411 = vmatmul.mubr.msk.f32.vlgmr.msra.gmra.mrb[104].mxu1 %vm337_vm0, %v6268_v57  ;;  %v5980_v36 = vpop.xlane.xlu1 %5979  ;;  %v300_v42 = vld [vmem:[%s15998_s2 + $0x2d8] sm:$0xff] }
 0x2c4   :  { %13236 = vrcp.f32 %v5980_v36  ;;  %12954 = vmatpush3.bf16.msra.mxu1 %v12953_v62  ;;  %12424 = vmatprep.mubr.msk.f32.mxu1 %vm13275_vm2, %v16035_v55  ;;  %v12959_v44 = vpack.c.bf16 %v300_v42, %v299_v56  ;;  %v6210_v62 = vld [vmem:[%s15999_s3 + $0xbc] sm:$0xf]  ;;  %v6211_v36 = vld [vmem:[%s15999_s3 + $0xc0] sm:$0xf] }
 0x2c5   :  { %v6269_v48 = vmul.f32 %v6205_v8, %v6120_v27  ;;  %12958 = vmatprep.subr.bf16.mxu1 %v16036_v61  ;;  %v309_v8 = vld [vmem:[%s15998_s2 + $0x320] sm:$0xff] }
 0x2c6   :  { %v13233_v60 = vpop.eup %13232 }
 0x2c7   :  { %v6122_v53 = vmul.f32 %v13233_v60, %v14828_v13  ;;  %12418 = vmatmul.mubr.msk.f32.vlgmr.msra.gmra.mrb[106].mxu0 %vm337_vm0, %v6269_v48  ;;  %v302_v13 = vld [vmem:[%s15998_s2 + $0x2e8] sm:$0xff]  ;;  %v311_v60 = vld [vmem:[%s15998_s2 + $0x330] sm:$0xff] }
 0x2c8   :  { %v5983_v45 = vpop.xlane.xlu0 %5982  ;;  %12957 = vmatpush3.bf16.msra.mxu0 %v12956_v17  ;;  %12431 = vmatprep.mubr.msk.f32.mxu0 %vm13275_vm2, %v16035_v55  ;;  %v12962_v37 = vpack.c.bf16 %v302_v13, %v301_v43  ;;  %v313_v13 = vld [vmem:[%s15998_s2 + $0x340] sm:$0xff] }
 0x2c9   :  { %13238 = vrcp.f32 %v5983_v45  ;;  %v6270_v58 = vmul.f32 %v6206_v19, %v6122_v53  ;;  %12961 = vmatprep.subr.bf16.mxu0 %v16036_v61  ;;  %v6212_v53 = vld [vmem:[%s15999_s3 + $0xc4] sm:$0xf] }
 0x2cb   :  { %v13235_v3 = vpop.eup %13234  ;;  %12425 = vmatmul.mubr.msk.f32.vlgmr.msra.gmra.mrb[106].mxu1 %vm337_vm0, %v6270_v58  ;;  %v5986_v24 = vpop.xlane.xlu1 %5985 }
 0x2cc   :  { %v6124_v1 = vmul.f32 %v13235_v3, %v14847_v40  ;;  %13240 = vrcp.f32 %v5986_v24  ;;  %12960 = vmatpush3.bf16.msra.mxu1 %v12959_v44  ;;  %12438 = vmatprep.mubr.msk.f32.mxu1 %vm13275_vm2, %v16035_v55  ;;  %v304_v40 = vld [vmem:[%s15998_s2 + $0x2f8] sm:$0xff] }
 0x2cd   :  { %12964 = vmatprep.subr.bf16.mxu1 %v16036_v61  ;;  %v12965_v9 = vpack.c.bf16 %v304_v40, %v303_v4  ;;  %v315_v4 = vld [vmem:[%s15998_s2 + $0x350] sm:$0xff] }
 0x2ce   :  { %v6271_v31 = vmul.f32 %v6207_v20, %v6124_v1  ;;  %v13237_v39 = vpop.eup %13236  ;;  %v6213_v20 = vld [vmem:[%s15999_s3 + $0xc8] sm:$0xf] }
 0x2cf   :  { %v6126_v12 = vmul.f32 %v13237_v39, %v14866_v35  ;;  %v306_v35 = vld [vmem:[%s15998_s2 + $0x308] sm:$0xff] }
 0x2d0   :  { %12432 = vmatmul.mubr.msk.f32.vlgmr.msra.gmra.mrb[108].mxu0 %vm337_vm0, %v6271_v31  ;;  %v5989_v51 = vpop.xlane.xlu0 %5988  ;;  %v12968_v6 = vpack.c.bf16 %v306_v35, %v305_v54  ;;  %v6214_v39 = vld [vmem:[%s15999_s3 + $0xcc] sm:$0xf]  ;;  %v6215_v35 = vld [vmem:[%s15999_s3 + $0xd0] sm:$0xf] }
 0x2d1   :  { %13242 = vrcp.f32 %v5989_v51  ;;  %12963 = vmatpush3.bf16.msra.mxu0 %v12962_v37  ;;  %12445 = vmatprep.mubr.msk.f32.mxu0 %vm13275_vm2, %v16035_v55  ;;  %v6272_v16 = vmul.f32 %v6208_v52, %v6126_v12 }
 0x2d2   :  { %12967 = vmatprep.subr.bf16.mxu0 %v16036_v61 }
 0x2d3   :  { %v13239_v32 = vpop.eup %13238  ;;  %12439 = vmatmul.mubr.msk.f32.vlgmr.msra.gmra.mrb[108].mxu1 %vm337_vm0, %v6272_v16  ;;  %v5992_v46 = vpop.xlane.xlu1 %5991  ;;  %v317_v16 = vld [vmem:[%s15998_s2 + $0x360] sm:$0xff] }
 0x2d4   :  { %v6128_v15 = vmul.f32 %v13239_v32, %v14885_v47  ;;  %13244 = vrcp.f32 %v5992_v46  ;;  %12966 = vmatpush3.bf16.msra.mxu1 %v12965_v9  ;;  %12452 = vmatprep.mubr.msk.f32.mxu1 %vm13275_vm2, %v16035_v55  ;;  %v308_v47 = vld [vmem:[%s15998_s2 + $0x318] sm:$0xff] }
 0x2d5   :  { %12970 = vmatprep.subr.bf16.mxu1 %v16036_v61  ;;  %v12971_v10 = vpack.c.bf16 %v308_v47, %v307_v18  ;;  %v6216_v18 = vld [vmem:[%s15999_s3 + $0xd4] sm:$0xf] }
 0x2d6   :  { %v6273_v33 = vmul.f32 %v6209_v63, %v6128_v15  ;;  %v13241_v21 = vpop.eup %13240 }
 0x2d7   :  { %v6130_v57 = vmul.f32 %v13241_v21, %v14904_v38  ;;  %v310_v38 = vld [vmem:[%s15998_s2 + $0x328] sm:$0xff] }
 0x2d8   :  { %12446 = vmatmul.mubr.msk.f32.vlgmr.msra.gmra.mrb[110].mxu0 %vm337_vm0, %v6273_v33  ;;  %v5995_v14 = vpop.xlane.xlu0 %5994  ;;  %v12974_v56 = vpack.c.bf16 %v310_v38, %v309_v8  ;;  %v6217_v38 = vld [vmem:[%s15999_s3 + $0xd8] sm:$0xf] }
 0x2d9   :  { %13246 = vrcp.f32 %v5995_v14  ;;  %12969 = vmatpush3.bf16.msra.mxu0 %v12968_v6  ;;  %12459 = vmatprep.mubr.msk.f32.mxu0 %vm13275_vm2, %v16035_v55  ;;  %v6274_v7 = vmul.f32 %v6210_v62, %v6130_v57  ;;  %v319_v6 = vld [vmem:[%s15998_s2 + $0x370] sm:$0xff] }
 0x2da   :  { %12973 = vmatprep.subr.bf16.mxu0 %v16036_v61 }
 0x2db   :  { %v13243_v27 = vpop.eup %13242  ;;  %12453 = vmatmul.mubr.msk.f32.vlgmr.msra.gmra.mrb[110].mxu1 %vm337_vm0, %v6274_v7  ;;  %v5998_v48 = vpop.xlane.xlu1 %5997  ;;  %v322_v7 = vld [vmem:[%s15998_s2 + $0x388] sm:$0xff] }
 0x2dc   :  { %v6132_v17 = vmul.f32 %v13243_v27, %v14923_v23  ;;  %13248 = vrcp.f32 %v5998_v48  ;;  %12972 = vmatpush3.bf16.msra.mxu1 %v12971_v10  ;;  %12466 = vmatprep.mubr.msk.f32.mxu1 %vm13275_vm2, %v16035_v55  ;;  %v312_v23 = vld [vmem:[%s15998_s2 + $0x338] sm:$0xff] }
 0x2dd   :  { %12976 = vmatprep.subr.bf16.mxu1 %v16036_v61  ;;  %v12977_v58 = vpack.c.bf16 %v312_v23, %v311_v60  ;;  %v324_v60 = vld [vmem:[%s15998_s2 + $0x398] sm:$0xff] }
 0x2de   :  { %v6275_v42 = vmul.f32 %v6211_v36, %v6132_v17  ;;  %v13245_v19 = vpop.eup %13244 }
 0x2df   :  { %v6134_v45 = vmul.f32 %v13245_v19, %v14942_v49  ;;  %v314_v49 = vld [vmem:[%s15998_s2 + $0x348] sm:$0xff]  ;;  %v6218_v19 = vld [vmem:[%s15999_s3 + $0xdc] sm:$0xf] }
 0x2e0   :  { %12460 = vmatmul.mubr.msk.f32.vlgmr.msra.gmra.mrb[112].mxu0 %vm337_vm0, %v6275_v42  ;;  %v6001_v44 = vpop.xlane.xlu0 %6000  ;;  %v12980_v37 = vpack.c.bf16 %v314_v49, %v313_v13  ;;  %v325_v13 = vld [vmem:[%s15998_s2 + $0x3a0] sm:$0xff] }
 0x2e1   :  { %13250 = vrcp.f32 %v6001_v44  ;;  %12975 = vmatpush3.bf16.msra.mxu0 %v12974_v56  ;;  %12473 = vmatprep.mubr.msk.f32.mxu0 %vm13275_vm2, %v16035_v55  ;;  %v6276_v43 = vmul.f32 %v6212_v53, %v6134_v45 }
 0x2e2   :  { %12979 = vmatprep.subr.bf16.mxu0 %v16036_v61 }
 0x2e3   :  { %v13247_v3 = vpop.eup %13246  ;;  %12467 = vmatmul.mubr.msk.f32.vlgmr.msra.gmra.mrb[112].mxu1 %vm337_vm0, %v6276_v43  ;;  %v6004_v24 = vpop.xlane.xlu1 %6003 }
 0x2e4   :  { %v6136_v1 = vmul.f32 %v13247_v3, %v14961_v28  ;;  %13252 = vrcp.f32 %v6004_v24  ;;  %12978 = vmatpush3.bf16.msra.mxu1 %v12977_v58  ;;  %12480 = vmatprep.mubr.msk.f32.mxu1 %vm13275_vm2, %v16035_v55  ;;  %v316_v28 = vld [vmem:[%s15998_s2 + $0x358] sm:$0xff] }
 0x2e5   :  { %12982 = vmatprep.subr.bf16.mxu1 %v16036_v61  ;;  %v12983_v51 = vpack.c.bf16 %v316_v28, %v315_v4 }
 0x2e6   :  { %v6277_v31 = vmul.f32 %v6213_v20, %v6136_v1  ;;  %v13249_v40 = vpop.eup %13248  ;;  %v6219_v20 = vld [vmem:[%s15999_s3 + $0xe0] sm:$0xf] }
 0x2e7   :  { %v6138_v52 = vmul.f32 %v13249_v40, %v14980_v34  ;;  %v318_v34 = vld [vmem:[%s15998_s2 + $0x368] sm:$0xff]  ;;  %v327_v40 = vld [vmem:[%s15998_s2 + $0x3b0] sm:$0xff] }
 0x2e8   :  { %12474 = vmatmul.mubr.msk.f32.vlgmr.msra.gmra.mrb[114].mxu0 %vm337_vm0, %v6277_v31  ;;  %v6007_v12 = vpop.xlane.xlu0 %6006  ;;  %v12986_v15 = vpack.c.bf16 %v318_v34, %v317_v16 }
 0x2e9   :  { %13254 = vrcp.f32 %v6007_v12  ;;  %12981 = vmatpush3.bf16.msra.mxu0 %v12980_v37  ;;  %12487 = vmatprep.mubr.msk.f32.mxu0 %vm13275_vm2, %v16035_v55  ;;  %v6278_v9 = vmul.f32 %v6214_v39, %v6138_v52  ;;  %v6220_v12 = vld [vmem:[%s15999_s3 + $0xe4] sm:$0xf] }
 0x2ea   :  { %12985 = vmatprep.subr.bf16.mxu0 %v16036_v61 }
 0x2eb   :  { %v13251_v54 = vpop.eup %13250  ;;  %12481 = vmatmul.mubr.msk.f32.vlgmr.msra.gmra.mrb[114].mxu1 %vm337_vm0, %v6278_v9  ;;  %v6010_v63 = vpop.xlane.xlu1 %6009 }
 0x2ec   :  { %v6140_v32 = vmul.f32 %v13251_v54, %v14999_v5  ;;  %13256 = vrcp.f32 %v6010_v63  ;;  %12984 = vmatpush3.bf16.msra.mxu1 %v12983_v51  ;;  %12494 = vmatprep.mubr.msk.f32.mxu1 %vm13275_vm2, %v16035_v55  ;;  %v320_v5 = vld [vmem:[%s15998_s2 + $0x378] sm:$0xff] }
 0x2ed   :  { %12988 = vmatprep.subr.bf16.mxu1 %v16036_v61  ;;  %v12989_v57 = vpack.c.bf16 %v320_v5, %v319_v6 }
 0x2ee   :  { %v6279_v46 = vmul.f32 %v6215_v35, %v6140_v32  ;;  %v13253_v33 = vpop.eup %13252  ;;  %v329_v35 = vld [vmem:[%s15998_s2 + $0x3c0] sm:$0xff] }
 0x2ef   :  { %v6142_v47 = vmul.f32 %v13253_v33, %v15018_v41  ;;  %v321_v41 = vld [vmem:[%s15998_s2 + $0x380] sm:$0xff] }
 0x2f0   :  { %12488 = vmatmul.mubr.msk.f32.vlgmr.msra.gmra.mrb[116].mxu0 %vm337_vm0, %v6279_v46  ;;  %v6013_v21 = vpop.xlane.xlu0 %6012  ;;  %v6360_v62 = vpop.f32.mrb[64].mxu0  ;;  %v12992_v48 = vpack.c.bf16 %v322_v7, %v321_v41  ;;  %v333_v41 = vld [vmem:[%s15998_s2 + $0x3e0] sm:$0xff]  ;;  %v334_v7 = vld [vmem:[%s15998_s2 + $0x3e8] sm:$0xff] }
 0x2f1   :  { %13258 = vrcp.f32 %v6013_v21  ;;  %12987 = vmatpush3.bf16.msra.mxu0 %v12986_v15  ;;  %12501 = vmatprep.mubr.msk.f32.mxu0 %vm13275_vm2, %v16035_v55  ;;  %10963 = vst.msk [vmem:[%s16000_s4] sm:$0xf] %vm5458_vm3, %v6360_v62  ;;  %v12125_v14 = vpop.f32.mrb[65].mxu0  ;;  %v6280_v10 = vmul.f32 %v6216_v18, %v6142_v47  ;;  %v6221_v15 = vld [vmem:[%s15999_s3 + $0xe8] sm:$0xf]  ;;  %v331_v47 = vld [vmem:[%s15998_s2 + $0x3d0] sm:$0xff] }
 0x2f2   :  { %12991 = vmatprep.subr.bf16.mxu0 %v16036_v61  ;;  %v6222_v14 = vld [vmem:[%s15999_s3 + $0xec] sm:$0xf] }
 0x2f3   :  { %v13255_v8 = vpop.eup %13254  ;;  %12495 = vmatmul.mubr.msk.f32.vlgmr.msra.gmra.mrb[116].mxu1 %vm337_vm0, %v6280_v10  ;;  %v6016_v36 = vpop.xlane.xlu1 %6015 }
 0x2f4   :  { %v6144_v27 = vmul.f32 %v13255_v8, %v15037_v26  ;;  %13260 = vrcp.f32 %v6016_v36  ;;  %v6433_v17 = vpop.f32.mrb[64].mxu1  ;;  %12990 = vmatpush3.bf16.msra.mxu1 %v12989_v57  ;;  %12508 = vmatprep.mubr.msk.f32.mxu1 %vm13275_vm2, %v16035_v55  ;;  %v323_v26 = vld [vmem:[%s15998_s2 + $0x390] sm:$0xff] }
 0x2f5   :  { %10964 = vst.msk [vmem:[%s16000_s4 + $0x4] sm:$0xf] %vm5458_vm3, %v6433_v17  ;;  %v12132_v56 = vpop.f32.mrb[65].mxu1  ;;  %12994 = vmatprep.subr.bf16.mxu1 %v16036_v61  ;;  %v12995_v44 = vpack.c.bf16 %v324_v60, %v323_v26  ;;  %v13010_v60 = vpack.c.bf16 %v334_v7, %v333_v41 }
 0x2f6   :  { %v6281_v42 = vmul.f32 %v6217_v38, %v6144_v27  ;;  %v13257_v23 = vpop.eup %13256  ;;  %v336_v56 = vld [vmem:[%s15998_s2 + $0x3f8] sm:$0xff] }
 0x2f7   :  { %v6146_v53 = vmul.f32 %v13257_v23, %v15056_v59  ;;  %v326_v59 = vld [vmem:[%s15998_s2 + $0x3a8] sm:$0xff] }
 0x2f8   :  { %12502 = vmatmul.mubr.msk.f32.vlgmr.msra.gmra.mrb[118].mxu0 %vm337_vm0, %v6281_v42  ;;  %v6019_v45 = vpop.xlane.xlu0 %6018  ;;  %v12998_v37 = vpack.c.bf16 %v326_v59, %v325_v13 }
 0x2f9   :  { %13262 = vrcp.f32 %v6019_v45  ;;  %12993 = vmatpush3.bf16.msra.mxu0 %v12992_v48  ;;  %12515 = vmatprep.mubr.msk.f32.mxu0 %vm13275_vm2, %v16035_v55  ;;  %v6506_v58 = vpop.f32.mrb[66].mxu0  ;;  %v6282_v43 = vmul.f32 %v6218_v19, %v6146_v53  ;;  %v335_v48 = vld [vmem:[%s15998_s2 + $0x3f0] sm:$0xff] }
 0x2fa   :  { %12997 = vmatprep.subr.bf16.mxu0 %v16036_v61  ;;  %10965 = vst.msk [vmem:[%s16000_s4 + $0x8] sm:$0xf] %vm5458_vm3, %v6506_v58  ;;  %v12139_v3 = vpop.f32.mrb[67].mxu0  ;;  %v13013_v53 = vpack.c.bf16 %v336_v56, %v335_v48 }
 0x2fb   :  { %v13259_v49 = vpop.eup %13258  ;;  %12509 = vmatmul.mubr.msk.f32.vlgmr.msra.gmra.mrb[118].mxu1 %vm337_vm0, %v6282_v43  ;;  %v6022_v24 = vpop.xlane.xlu1 %6021 }
 0x2fc   :  { %v6148_v1 = vmul.f32 %v13259_v49, %v15075_v29  ;;  %13264 = vrcp.f32 %v6022_v24  ;;  %12996 = vmatpush3.bf16.msra.mxu1 %v12995_v44  ;;  %12522 = vmatprep.mubr.msk.f32.mxu1 %vm13275_vm2, %v16035_v55  ;;  %v328_v29 = vld [vmem:[%s15998_s2 + $0x3b8] sm:$0xff] }
 0x2fd   :  { %v6579_v31 = vpop.f32.mrb[66].mxu1  ;;  %v6025_v4 = vpop.xlane.xlu0 %6024  ;;  %13000 = vmatprep.subr.bf16.mxu1 %v16036_v61  ;;  %v13001_v16 = vpack.c.bf16 %v328_v29, %v327_v40  ;;  %v6226_v49 = vld [vmem:[%s15999_s3 + $0xfc] sm:$0xf] }
 0x2fe   :  { %v6283_v28 = vmul.f32 %v6219_v20, %v6148_v1  ;;  %v13261_v39 = vpop.eup %13260  ;;  %10966 = vst.msk [vmem:[%s16000_s4 + $0xc] sm:$0xf] %vm5458_vm3, %v6579_v31  ;;  %v12146_v52 = vpop.f32.mrb[67].mxu1  ;;  %13266 = vrcp.f32 %v6025_v4 }
 0x2ff   :  { %v6150_v51 = vmul.f32 %v13261_v39, %v15095_v0  ;;  %v6028_v9 = vpop.xlane.xlu1 %6027  ;;  %v330_v0 = vld [vmem:[%s15998_s2 + $0x3c8] sm:$0xff] }
 0x300   :  { %12516 = vmatmul.mubr.msk.f32.vlgmr.msra.gmra.mrb[120].mxu0 %vm337_vm0, %v6283_v28  ;;  %13268 = vrcp.f32 %v6028_v9  ;;  %v13004_v6 = vpack.c.bf16 %v330_v0, %v329_v35 }
 0x301   :  { %12999 = vmatpush3.bf16.msra.mxu0 %v12998_v37  ;;  %12529 = vmatprep.mubr.msk.f32.mxu0 %vm13275_vm2, %v16035_v55  ;;  %v6652_v34 = vpop.f32.mrb[68].mxu0  ;;  %v6284_v54 = vmul.f32 %v6220_v12, %v6150_v51 }
 0x302   :  { %13003 = vmatprep.subr.bf16.mxu0 %v16036_v61  ;;  %10967 = vst.msk [vmem:[%s16000_s4 + $0x10] sm:$0xf] %vm5458_vm3, %v6652_v34  ;;  %v12153_v63 = vpop.f32.mrb[69].mxu0 }
 0x303   :  { %v13263_v32 = vpop.eup %13262  ;;  %12523 = vmatmul.mubr.msk.f32.vlgmr.msra.gmra.mrb[120].mxu1 %vm337_vm0, %v6284_v54 }
 0x304   :  { %v6152_v46 = vmul.f32 %v13263_v32, %v15113_v11  ;;  %13002 = vmatpush3.bf16.msra.mxu1 %v13001_v16  ;;  %12536 = vmatprep.mubr.msk.f32.mxu1 %vm13275_vm2, %v16035_v55  ;;  %v332_v11 = vld [vmem:[%s15998_s2 + $0x3d8] sm:$0xff] }
 0x305   :  { %v6725_v5 = vpop.f32.mrb[68].mxu1  ;;  %v6031_v33 = vpop.xlane.xlu0 %6030  ;;  %13006 = vmatprep.subr.bf16.mxu1 %v16036_v61  ;;  %v13007_v38 = vpack.c.bf16 %v332_v11, %v331_v47 }
 0x306   :  { %v6285_v18 = vmul.f32 %v6221_v15, %v6152_v46  ;;  %v13265_v21 = vpop.eup %13264  ;;  %10968 = vst.msk [vmem:[%s16000_s4 + $0x14] sm:$0xf] %vm5458_vm3, %v6725_v5  ;;  %v12160_v62 = vpop.f32.mrb[69].mxu1  ;;  %13270 = vrcp.f32 %v6031_v33 }
 0x307   :  { %v6034_v57 = vpop.xlane.xlu1 %6033  ;;  %v6154_v10 = vmul.f32 %v13265_v21, %v15123_v30  ;;  %v6223_v30 = vld [vmem:[%s15999_s3 + $0xf0] sm:$0xf] }
 0x308   :  { %13272 = vrcp.f32 %v6034_v57  ;;  %12530 = vmatmul.mubr.msk.f32.vlgmr.msra.gmra.mrb[122].mxu0 %vm337_vm0, %v6285_v18  ;;  %v13267_v8 = vpop.eup %13266 }
 0x309   :  { %13005 = vmatpush3.bf16.msra.mxu0 %v13004_v6  ;;  %12543 = vmatprep.mubr.msk.f32.mxu0 %vm13275_vm2, %v16035_v55  ;;  %v6156_v27 = vmul.f32 %v13267_v8, %v15128_v25  ;;  %v6286_v17 = vmul.f32 %v6222_v14, %v6154_v10  ;;  %v6224_v25 = vld [vmem:[%s15999_s3 + $0xf4] sm:$0xf] }
 0x30a   :  { %v6798_v36 = vpop.f32.mrb[70].mxu0  ;;  %13009 = vmatprep.subr.bf16.mxu0 %v16036_v61  ;;  %v13269_v42 = vpop.eup %13268 }
 0x30b   :  { %10969 = vst.msk [vmem:[%s16000_s4 + $0x18] sm:$0xf] %vm5458_vm3, %v6798_v36  ;;  %v12167_v26 = vpop.f32.mrb[71].mxu0  ;;  %v6158_v23 = vmul.f32 %v13269_v42, %v15132_v22  ;;  %12537 = vmatmul.mubr.msk.f32.vlgmr.msra.gmra.mrb[122].mxu1 %vm337_vm0, %v6286_v17  ;;  %v6287_v19 = vmul.f32 %v6223_v30, %v6156_v27 }
 0x30c   :  { %13008 = vmatpush3.bf16.msra.mxu1 %v13007_v38  ;;  %12550 = vmatprep.mubr.msk.f32.mxu1 %vm13275_vm2, %v16035_v55 }
 0x30d   :  { %v6871_v45 = vpop.f32.mrb[70].mxu1  ;;  %12544 = vmatmul.mubr.msk.f32.vlgmr.msra.gmra.mrb[124].mxu0 %vm337_vm0, %v6287_v19  ;;  %v6288_v44 = vmul.f32 %v6224_v25, %v6158_v23  ;;  %13012 = vmatprep.subr.bf16.mxu1 %v16036_v61  ;;  %v6225_v61 = vld [vmem:[%s15999_s3 + $0xf8] sm:$0xf] }
 0x30e   :  { %10970 = vst.msk [vmem:[%s16000_s4 + $0x1c] sm:$0xf] %vm5458_vm3, %v6871_v45  ;;  %v12174_v22 = vpop.f32.mrb[71].mxu1  ;;  %13011 = vmatpush3.bf16.msra.mxu0 %v13010_v60  ;;  %12557 = vmatprep.mubr.msk.f32.mxu0 %vm13275_vm2, %v16035_v55 }
 0x30f   :  { %12551 = vmatmul.mubr.msk.f32.vlgmr.msra.gmra.mrb[124].mxu1 %vm337_vm0, %v6288_v44 }
 0x310   :  { %v13271_v58 = vpop.eup %13270  ;;  %13014 = vmatpush3.bf16.msra.mxu1 %v13013_v53  ;;  %12564 = vmatprep.mubr.msk.f32.mxu1 %vm13275_vm2, %v16035_v55 }
 0x311   :  { %v6160_v13 = vmul.f32 %v13271_v58, %v15136_v2 }
 0x312   :  { %v13273_v43 = vpop.eup %13272  ;;  %v6944_v59 = vpop.f32.mrb[72].mxu0 }
 0x313   :  { %v6162_v3 = vmul.f32 %v13273_v43, %v15138_v50  ;;  %10971 = vst.msk [vmem:[%s16000_s4 + $0x20] sm:$0xf] %vm5458_vm3, %v6944_v59  ;;  %v12181_v55 = vpop.f32.mrb[73].mxu0  ;;  %v6289_v20 = vmul.f32 %v6225_v61, %v6160_v13 }
 0x315   :  { %v6290_v1 = vmul.f32 %v6226_v49, %v6162_v3  ;;  %v7017_v24 = vpop.f32.mrb[72].mxu1  ;;  %12558 = vmatmul.mubr.msk.f32.vlgmr.msra.gmra.mrb[126].mxu0 %vm337_vm0, %v6289_v20 }
 0x316   :  { %10972 = vst.msk [vmem:[%s16000_s4 + $0x24] sm:$0xf] %vm5458_vm3, %v7017_v24  ;;  %v12188_v2 = vpop.f32.mrb[73].mxu1 }
 0x317   :  { %12565 = vmatmul.mubr.msk.f32.vlgmr.msra.gmra.mrb[126].mxu1 %vm337_vm0, %v6290_v1 }
 0x31a   :  { %v7090_v50 = vpop.f32.mrb[74].mxu0 }
 0x31b   :  { %10973 = vst.msk [vmem:[%s16000_s4 + $0x28] sm:$0xf] %vm5458_vm3, %v7090_v50  ;;  %v12195_v37 = vpop.f32.mrb[75].mxu0 }
 0x31d   :  { %v7163_v31 = vpop.f32.mrb[74].mxu1 }
 0x31e   :  { %10974 = vst.msk [vmem:[%s16000_s4 + $0x2c] sm:$0xf] %vm5458_vm3, %v7163_v31  ;;  %v12202_v4 = vpop.f32.mrb[75].mxu1 }
 0x322   :  { %v7236_v28 = vpop.f32.mrb[76].mxu0 }
 0x323   :  { %10975 = vst.msk [vmem:[%s16000_s4 + $0x30] sm:$0xf] %vm5458_vm3, %v7236_v28  ;;  %v12209_v40 = vpop.f32.mrb[77].mxu0 }
 0x325   :  { %v7309_v29 = vpop.f32.mrb[76].mxu1 }
 0x326   :  { %10976 = vst.msk [vmem:[%s16000_s4 + $0x34] sm:$0xf] %vm5458_vm3, %v7309_v29  ;;  %v12216_v39 = vpop.f32.mrb[77].mxu1 }
 0x32a   :  { %v7382_v52 = vpop.f32.mrb[78].mxu0 }
 0x32b   :  { %10977 = vst.msk [vmem:[%s16000_s4 + $0x38] sm:$0xf] %vm5458_vm3, %v7382_v52  ;;  %v12223_v12 = vpop.f32.mrb[79].mxu0 }
 0x32d   :  { %v7455_v51 = vpop.f32.mrb[78].mxu1 }
 0x32e   :  { %10978 = vst.msk [vmem:[%s16000_s4 + $0x3c] sm:$0xf] %vm5458_vm3, %v7455_v51  ;;  %v12230_v9 = vpop.f32.mrb[79].mxu1 }
 0x332   :  { %v7528_v16 = vpop.f32.mrb[80].mxu0 }
 0x333   :  { %10979 = vst.msk [vmem:[%s16000_s4 + $0x40] sm:$0xf] %vm5458_vm3, %v7528_v16  ;;  %v12237_v34 = vpop.f32.mrb[81].mxu0 }
 0x335   :  { %v7601_v54 = vpop.f32.mrb[80].mxu1 }
 0x336   :  { %10980 = vst.msk [vmem:[%s16000_s4 + $0x44] sm:$0xf] %vm5458_vm3, %v7601_v54  ;;  %v12244_v35 = vpop.f32.mrb[81].mxu1 }
 0x33a   :  { %v7674_v0 = vpop.f32.mrb[82].mxu0 }
 0x33b   :  { %10981 = vst.msk [vmem:[%s16000_s4 + $0x48] sm:$0xf] %vm5458_vm3, %v7674_v0  ;;  %v12251_v32 = vpop.f32.mrb[83].mxu0 }
 0x33d   :  { %v7747_v63 = vpop.f32.mrb[82].mxu1 }
 0x33e   :  { %10982 = vst.msk [vmem:[%s16000_s4 + $0x4c] sm:$0xf] %vm5458_vm3, %v7747_v63  ;;  %v12258_v15 = vpop.f32.mrb[83].mxu1 }
 0x350   :  { %v7893_v46 = vpop.f32.mrb[84].mxu1 }
 0x351   :  { %v7820_v6 = vpop.f32.mrb[84].mxu0  ;;  %10984 = vst.msk [vmem:[%s16000_s4 + $0x54] sm:$0xf] %vm5458_vm3, %v7893_v46  ;;  %v12272_v5 = vpop.f32.mrb[85].mxu1 }
 0x352   :  { %10983 = vst.msk [vmem:[%s16000_s4 + $0x50] sm:$0xf] %vm5458_vm3, %v7820_v6  ;;  %v12265_v33 = vpop.f32.mrb[85].mxu0 }
 0x354   :  { %v8039_v18 = vpop.f32.mrb[86].mxu1 }
 0x355   :  { %v7966_v47 = vpop.f32.mrb[86].mxu0  ;;  %10986 = vst.msk [vmem:[%s16000_s4 + $0x5c] sm:$0xf] %vm5458_vm3, %v8039_v18  ;;  %v12286_v11 = vpop.f32.mrb[87].mxu1 }
 0x356   :  { %10985 = vst.msk [vmem:[%s16000_s4 + $0x58] sm:$0xf] %vm5458_vm3, %v7966_v47  ;;  %v12279_v21 = vpop.f32.mrb[87].mxu0 }
 0x358   :  { %v8185_v62 = vpop.f32.mrb[88].mxu1 }
 0x359   :  { %v8112_v57 = vpop.f32.mrb[88].mxu0  ;;  %10988 = vst.msk [vmem:[%s16000_s4 + $0x64] sm:$0xf] %vm5458_vm3, %v8185_v62  ;;  %v12300_v14 = vpop.f32.mrb[89].mxu1 }
 0x35a   :  { %10987 = vst.msk [vmem:[%s16000_s4 + $0x60] sm:$0xf] %vm5458_vm3, %v8112_v57  ;;  %v12293_v10 = vpop.f32.mrb[89].mxu0 }
 0x35c   :  { %v8331_v41 = vpop.f32.mrb[90].mxu1 }
 0x35d   :  { %v8258_v7 = vpop.f32.mrb[90].mxu0  ;;  %10990 = vst.msk [vmem:[%s16000_s4 + $0x6c] sm:$0xf] %vm5458_vm3, %v8331_v41  ;;  %v12314_v8 = vpop.f32.mrb[91].mxu1 }
 0x35e   :  { %10989 = vst.msk [vmem:[%s16000_s4 + $0x68] sm:$0xf] %vm5458_vm3, %v8258_v7  ;;  %v12307_v38 = vpop.f32.mrb[91].mxu0 }
 0x361   :  { %v8404_v30 = vpop.f32.mrb[92].mxu0  ;;  %v8477_v27 = vpop.f32.mrb[92].mxu1 }
 0x362   :  { %10991 = vst.msk [vmem:[%s16000_s4 + $0x70] sm:$0xf] %vm5458_vm3, %v8404_v30  ;;  %10992 = vst.msk [vmem:[%s16000_s4 + $0x74] sm:$0xf] %vm5458_vm3, %v8477_v27  ;;  %v12321_v36 = vpop.f32.mrb[93].mxu0  ;;  %v12328_v17 = vpop.f32.mrb[93].mxu1 }
 0x368   :  { %v8550_v48 = vpop.f32.mrb[94].mxu0 }
 0x369   :  { %10993 = vst.msk [vmem:[%s16000_s4 + $0x78] sm:$0xf] %vm5458_vm3, %v8550_v48  ;;  %v8623_v56 = vpop.f32.mrb[94].mxu1  ;;  %v12335_v42 = vpop.f32.mrb[95].mxu0 }
 0x36a   :  { %10994 = vst.msk [vmem:[%s16000_s4 + $0x7c] sm:$0xf] %vm5458_vm3, %v8623_v56  ;;  %v12342_v26 = vpop.f32.mrb[95].mxu1 }
 0x370   :  { %v8696_v25 = vpop.f32.mrb[96].mxu0 }
 0x371   :  { %10995 = vst.msk [vmem:[%s16000_s4 + $0x80] sm:$0xf] %vm5458_vm3, %v8696_v25  ;;  %v8769_v60 = vpop.f32.mrb[96].mxu1  ;;  %v12349_v23 = vpop.f32.mrb[97].mxu0 }
 0x372   :  { %10996 = vst.msk [vmem:[%s16000_s4 + $0x84] sm:$0xf] %vm5458_vm3, %v8769_v60  ;;  %v12356_v19 = vpop.f32.mrb[97].mxu1 }
 0x378   :  { %v8842_v53 = vpop.f32.mrb[98].mxu0 }
 0x379   :  { %10997 = vst.msk [vmem:[%s16000_s4 + $0x88] sm:$0xf] %vm5458_vm3, %v8842_v53  ;;  %v8915_v45 = vpop.f32.mrb[98].mxu1  ;;  %v12363_v44 = vpop.f32.mrb[99].mxu0 }
 0x37a   :  { %10998 = vst.msk [vmem:[%s16000_s4 + $0x8c] sm:$0xf] %vm5458_vm3, %v8915_v45  ;;  %v12370_v22 = vpop.f32.mrb[99].mxu1 }
 0x380   :  { %v8988_v58 = vpop.f32.mrb[100].mxu0 }
 0x381   :  { %10999 = vst.msk [vmem:[%s16000_s4 + $0x90] sm:$0xf] %vm5458_vm3, %v8988_v58  ;;  %v9061_v61 = vpop.f32.mrb[100].mxu1  ;;  %v12377_v43 = vpop.f32.mrb[101].mxu0 }
 0x382   :  { %11000 = vst.msk [vmem:[%s16000_s4 + $0x94] sm:$0xf] %vm5458_vm3, %v9061_v61  ;;  %v12384_v13 = vpop.f32.mrb[101].mxu1 }
 0x388   :  { %v9134_v59 = vpop.f32.mrb[102].mxu0 }
 0x389   :  { %11001 = vst.msk [vmem:[%s16000_s4 + $0x98] sm:$0xf] %vm5458_vm3, %v9134_v59  ;;  %v9207_v49 = vpop.f32.mrb[102].mxu1  ;;  %v12391_v3 = vpop.f32.mrb[103].mxu0 }
 0x38a   :  { %11002 = vst.msk [vmem:[%s16000_s4 + $0x9c] sm:$0xf] %vm5458_vm3, %v9207_v49  ;;  %v12398_v55 = vpop.f32.mrb[103].mxu1 }
 0x392   :  { %v9280_v20 = vpop.f32.mrb[104].mxu0 }
 0x393   :  { %11003 = vst.msk [vmem:[%s16000_s4 + $0xa0] sm:$0xf] %vm5458_vm3, %v9280_v20  ;;  %v12405_v1 = vpop.f32.mrb[105].mxu0 }
 0x396   :  { %v9353_v24 = vpop.f32.mrb[104].mxu1 }
 0x397   :  { %11004 = vst.msk [vmem:[%s16000_s4 + $0xa4] sm:$0xf] %vm5458_vm3, %v9353_v24  ;;  %v12412_v2 = vpop.f32.mrb[105].mxu1 }
 0x39a   :  { %v9426_v50 = vpop.f32.mrb[106].mxu0 }
 0x39b   :  { %11005 = vst.msk [vmem:[%s16000_s4 + $0xa8] sm:$0xf] %vm5458_vm3, %v9426_v50  ;;  %v12419_v37 = vpop.f32.mrb[107].mxu0 }
 0x39e   :  { %v9499_v31 = vpop.f32.mrb[106].mxu1 }
 0x39f   :  { %11006 = vst.msk [vmem:[%s16000_s4 + $0xac] sm:$0xf] %vm5458_vm3, %v9499_v31  ;;  %v12426_v4 = vpop.f32.mrb[107].mxu1 }
 0x3a3   :  { %v9572_v28 = vpop.f32.mrb[108].mxu0 }
 0x3a4   :  { %11007 = vst.msk [vmem:[%s16000_s4 + $0xb0] sm:$0xf] %vm5458_vm3, %v9572_v28  ;;  %v12433_v40 = vpop.f32.mrb[109].mxu0 }
 0x3a6   :  { %v9645_v29 = vpop.f32.mrb[108].mxu1 }
 0x3a7   :  { %11008 = vst.msk [vmem:[%s16000_s4 + $0xb4] sm:$0xf] %vm5458_vm3, %v9645_v29  ;;  %v12440_v39 = vpop.f32.mrb[109].mxu1 }
 0x3ab   :  { %v9718_v52 = vpop.f32.mrb[110].mxu0 }
 0x3ac   :  { %11009 = vst.msk [vmem:[%s16000_s4 + $0xb8] sm:$0xf] %vm5458_vm3, %v9718_v52  ;;  %v12447_v12 = vpop.f32.mrb[111].mxu0 }
 0x3ae   :  { %v9791_v51 = vpop.f32.mrb[110].mxu1 }
 0x3af   :  { %11010 = vst.msk [vmem:[%s16000_s4 + $0xbc] sm:$0xf] %vm5458_vm3, %v9791_v51  ;;  %v12454_v9 = vpop.f32.mrb[111].mxu1 }
 0x3b3   :  { %v9864_v16 = vpop.f32.mrb[112].mxu0 }
 0x3b4   :  { %11011 = vst.msk [vmem:[%s16000_s4 + $0xc0] sm:$0xf] %vm5458_vm3, %v9864_v16  ;;  %v12461_v34 = vpop.f32.mrb[113].mxu0 }
 0x3b6   :  { %v9937_v54 = vpop.f32.mrb[112].mxu1 }
 0x3b7   :  { %11012 = vst.msk [vmem:[%s16000_s4 + $0xc4] sm:$0xf] %vm5458_vm3, %v9937_v54  ;;  %v12468_v35 = vpop.f32.mrb[113].mxu1 }
 0x3bb   :  { %v10010_v0 = vpop.f32.mrb[114].mxu0 }
 0x3bc   :  { %11013 = vst.msk [vmem:[%s16000_s4 + $0xc8] sm:$0xf] %vm5458_vm3, %v10010_v0  ;;  %v12475_v32 = vpop.f32.mrb[115].mxu0 }
 0x3be   :  { %v10083_v63 = vpop.f32.mrb[114].mxu1 }
 0x3bf   :  { %11014 = vst.msk [vmem:[%s16000_s4 + $0xcc] sm:$0xf] %vm5458_vm3, %v10083_v63  ;;  %v12482_v15 = vpop.f32.mrb[115].mxu1 }
 0x3c3   :  { %v10156_v46 = vpop.f32.mrb[116].mxu0 }
 0x3c4   :  { %11015 = vst.msk [vmem:[%s16000_s4 + $0xd0] sm:$0xf] %vm5458_vm3, %v10156_v46  ;;  %v12489_v6 = vpop.f32.mrb[117].mxu0 }
 0x3c6   :  { %v10229_v5 = vpop.f32.mrb[116].mxu1 }
 0x3c7   :  { %11016 = vst.msk [vmem:[%s16000_s4 + $0xd4] sm:$0xf] %vm5458_vm3, %v10229_v5  ;;  %v12496_v33 = vpop.f32.mrb[117].mxu1 }
 0x3cb   :  { %v10302_v18 = vpop.f32.mrb[118].mxu0 }
 0x3cc   :  { %11017 = vst.msk [vmem:[%s16000_s4 + $0xd8] sm:$0xf] %vm5458_vm3, %v10302_v18  ;;  %v12503_v47 = vpop.f32.mrb[119].mxu0 }
 0x3ce   :  { %v10375_v11 = vpop.f32.mrb[118].mxu1 }
 0x3cf   :  { %11018 = vst.msk [vmem:[%s16000_s4 + $0xdc] sm:$0xf] %vm5458_vm3, %v10375_v11  ;;  %v12510_v21 = vpop.f32.mrb[119].mxu1 }
 0x3d3   :  { %v10448_v62 = vpop.f32.mrb[120].mxu0 }
 0x3d4   :  { %11019 = vst.msk [vmem:[%s16000_s4 + $0xe0] sm:$0xf] %vm5458_vm3, %v10448_v62  ;;  %v12517_v57 = vpop.f32.mrb[121].mxu0 }
 0x3d6   :  { %v10521_v14 = vpop.f32.mrb[120].mxu1 }
 0x3d7   :  { %11020 = vst.msk [vmem:[%s16000_s4 + $0xe4] sm:$0xf] %vm5458_vm3, %v10521_v14  ;;  %v12524_v10 = vpop.f32.mrb[121].mxu1 }
 0x3db   :  { %v10594_v41 = vpop.f32.mrb[122].mxu0 }
 0x3dc   :  { %11021 = vst.msk [vmem:[%s16000_s4 + $0xe8] sm:$0xf] %vm5458_vm3, %v10594_v41  ;;  %v12531_v7 = vpop.f32.mrb[123].mxu0 }
 0x3de   :  { %v10667_v8 = vpop.f32.mrb[122].mxu1 }
 0x3df   :  { %11022 = vst.msk [vmem:[%s16000_s4 + $0xec] sm:$0xf] %vm5458_vm3, %v10667_v8  ;;  %v12538_v38 = vpop.f32.mrb[123].mxu1 }
 0x3e0   :  { %v10740_v30 = vpop.f32.mrb[124].mxu0 }
 0x3e1   :  { %11023 = vst.msk [vmem:[%s16000_s4 + $0xf0] sm:$0xf] %vm5458_vm3, %v10740_v30  ;;  %v12545_v27 = vpop.f32.mrb[125].mxu0 }
 0x3e2   :  { %v10813_v36 = vpop.f32.mrb[124].mxu1 }
 0x3e3   :  { %11024 = vst.msk [vmem:[%s16000_s4 + $0xf4] sm:$0xf] %vm5458_vm3, %v10813_v36  ;;  %v12552_v17 = vpop.f32.mrb[125].mxu1 }
 0x3e8   :  { %v10886_v48 = vpop.f32.mrb[126].mxu0 }
 0x3e9   :  { %11025 = vst.msk [vmem:[%s16000_s4 + $0xf8] sm:$0xf] %vm5458_vm3, %v10886_v48  ;;  %v12559_v42 = vpop.f32.mrb[127].mxu0 }
 0x3ea   :  { %v10959_v56 = vpop.f32.mrb[126].mxu1 }
 0x3eb   :  { %11026 = vst.msk [vmem:[%s16000_s4 + $0xfc] sm:$0xf] %vm5458_vm3, %v10959_v56  ;;  %v12566_v26 = vpop.f32.mrb[127].mxu1 }

</bundles_post_ra>
